<compile_context>
chip_gen: v6e
topology: v6e:2x2x1
jax: 0.10.0
libtpu: 0.0.40
codegen_flags: <defaults>
</compile_context>

<pallas_src>
import functools
import math

import jax
import jax.numpy as jnp
from jax.experimental import pallas as pl
from jax.experimental.pallas import tpu as pltpu

# ----------------------------- small config -----------------------------
VOCAB = 32          # vocab_size
SEQ = 8             # sequence length
BATCH = 2           # batch size
TOKEN_EMB = 32      # token_embedding_size
HIDDEN = 128        # model_hidden (multiple of 128 -> lane-dense)
NUM_HEAD = 4        # num_head (head_dim = 32)
HEAD_DIM = HIDDEN // NUM_HEAD
LAYER_ITER = 4      # layer_iter (cross-layer parameter sharing)
NUM_GROUP = 1       # num_group
FFN = HIDDEN * 4    # feed_forward_hidden
N_SEGMENTS = 2
LN_EPS = 1e-12


def _layer_norm(y, g, b):
    # g / b are already broadcast to y.shape (hoisted outside the layer loop).
    mu = jnp.mean(y, axis=-1, keepdims=True)
    var = jnp.mean((y - mu) ** 2, axis=-1, keepdims=True)
    return (y - mu) * jax.lax.rsqrt(var + LN_EPS) * g + b


# -------------------- fused ALBERT encoder kernel -------------------------
def _albert_kernel(x_ref, bias_ref,
                   wqkv_ref, bqkv_ref, wo_ref, bo_ref,
                   g1_ref, be1_ref, w1_ref, b1_ref, w2_ref, b2_ref,
                   g2_ref, be2_ref, o_ref,
                   *, batch, seq, hidden, num_head, layer_iter, num_group):
    rows = batch * seq                    # token rows handled by this grid step
    hd = hidden // num_head
    bh = batch * num_head
    ffn = w1_ref.shape[-1]

    x = x_ref[...]                        # (rows, hidden) f32, already projected

    # Additive attention-mask bias, broadcast ONCE for all heads and layers.
    bias = jnp.broadcast_to(bias_ref[...][:, None, :, :],
                            (batch, num_head, seq, seq)).reshape(bh, seq, seq)

    # Hoist per-group weight reads and all (1,.) -> (rows,.) broadcasts above
    # the unrolled layer loop.
    wqkv_g = [wqkv_ref[g] for g in range(num_group)]
    wo_g = [wo_ref[g] for g in range(num_group)]
    w1_g = [w1_ref[g] for g in range(num_group)]
    w2_g = [w2_ref[g] for g in range(num_group)]
    bqkv_g = [jnp.broadcast_to(bqkv_ref[g], (rows, 3 * hidden))
              for g in range(num_group)]
    bo_g = [jnp.broadcast_to(bo_ref[g], (rows, hidden)) for g in range(num_group)]
    b1_g = [jnp.broadcast_to(b1_ref[g], (rows, ffn)) for g in range(num_group)]
    b2_g = [jnp.broadcast_to(b2_ref[g], (rows, hidden)) for g in range(num_group)]
    g1_g = [jnp.broadcast_to(g1_ref[g], (rows, hidden)) for g in range(num_group)]
    be1_g = [jnp.broadcast_to(be1_ref[g], (rows, hidden)) for g in range(num_group)]
    g2_g = [jnp.broadcast_to(g2_ref[g], (rows, hidden)) for g in range(num_group)]
    be2_g = [jnp.broadcast_to(be2_ref[g], (rows, hidden)) for g in range(num_group)]

    def split_heads(t):
        # (rows, hidden) -> (batch*num_head, seq, hd) without any 4-D transpose:
        # lane-slice per head, stack heads on a new major axis, merge leading dims.
        parts = [t[:, h * hd:(h + 1) * hd].reshape(batch, seq, hd)
                 for h in range(num_head)]
        return jnp.stack(parts, axis=1).reshape(bh, seq, hd)

    # Cross-layer parameter sharing: weights stay resident in VMEM; the layer
    # loop is a static unroll inside the single kernel invocation.
    for i in range(layer_iter):
        g = (i * num_group) // layer_iter     # static group index

        # Fused QKV projection (softmax scale pre-folded into the Q columns).
        qkv = jnp.dot(x.astype(jnp.bfloat16), wqkv_g[g],
                      preferred_element_type=jnp.float32) + bqkv_g[g]
        q = split_heads(qkv[:, :hidden]).astype(jnp.bfloat16)
        k = split_heads(qkv[:, hidden:2 * hidden]).astype(jnp.bfloat16)
        v = split_heads(qkv[:, 2 * hidden:]).astype(jnp.bfloat16)

        # One batched score matmul; K transposed once per layer (not per head).
        kt = jnp.swapaxes(k, 1, 2)                                    # (bh, hd, S)
        s = jnp.einsum('bqd,bdk->bqk', q, kt,
                       preferred_element_type=jnp.float32) + bias     # (bh, S, S)

        # Softmax in f32 (EUP reciprocal). A fully-masked query row would give
        # a uniform distribution rather than zeros -- cannot happen here.
        m = jnp.max(s, axis=-1, keepdims=True)
        p = jnp.exp(s - m)
        p = p * pl.reciprocal(jnp.sum(p, axis=-1, keepdims=True), approx=True)

        ctx = jnp.einsum('bqk,bkd->bqd', p.astype(jnp.bfloat16), v,
                         preferred_element_type=jnp.float32)          # (bh, S, hd)

        # Merge heads back onto lanes; ONE output-projection matmul.
        ctx4 = ctx.reshape(batch, num_head, seq, hd)
        ctx_full = jnp.concatenate(
            [ctx4[:, h].reshape(rows, hd) for h in range(num_head)], axis=-1)
        attn = jnp.dot(ctx_full.astype(jnp.bfloat16), wo_g[g],
                       preferred_element_type=jnp.float32) + bo_g[g]

        # Residual + LayerNorm 1.
        h1 = _layer_norm(x + attn, g1_g[g], be1_g[g])

        # Feed-forward.  TODO(synk): dropout omitted (eval-mode identity).
        ff = jnp.dot(h1.astype(jnp.bfloat16), w1_g[g],
                     preferred_element_type=jnp.float32) + b1_g[g]
        # TODO(synk): PyTorch nn.GELU default is exact erf; tanh approximation used.
        ff = jax.nn.gelu(ff, approximate=True)
        ff = jnp.dot(ff.astype(jnp.bfloat16), w2_g[g],
                     preferred_element_type=jnp.float32) + b2_g[g]

        # Residual + LayerNorm 2.
        x = _layer_norm(h1 + ff, g2_g[g], be2_g[g])

    o_ref[...] = x


# ------------------------- parameter construction ------------------------
def init_params(key):
    ks = iter(jax.random.split(key, 32))

    def w(shape, std=0.02):
        return jax.random.normal(next(ks), shape, jnp.float32) * std

    return {
        'tok_emb': w((VOCAB, TOKEN_EMB)),
        'seg_emb': w((N_SEGMENTS, TOKEN_EMB)),
        'pos_emb': w((SEQ, TOKEN_EMB)),
        'proj_w': w((TOKEN_EMB, HIDDEN)),
        'proj_b': jnp.zeros((1, HIDDEN), jnp.float32),
        # Per-group stacked transformer weights (leading axis = NUM_GROUP);
        # Q/K/V fused into one (H, 3H) matrix.
        'wqkv': w((NUM_GROUP, HIDDEN, 3 * HIDDEN)),
        'bqkv': jnp.zeros((NUM_GROUP, 1, 3 * HIDDEN), jnp.float32),
        'wo':   w((NUM_GROUP, HIDDEN, HIDDEN)),
        'bo':   jnp.zeros((NUM_GROUP, 1, HIDDEN), jnp.float32),
        'g1':   jnp.ones((NUM_GROUP, 1, HIDDEN), jnp.float32),
        'be1':  jnp.zeros((NUM_GROUP, 1, HIDDEN), jnp.float32),
        'w1':   w((NUM_GROUP, HIDDEN, FFN)),
        'b1':   jnp.zeros((NUM_GROUP, 1, FFN), jnp.float32),
        'w2':   w((NUM_GROUP, FFN, HIDDEN)),
        'b2':   jnp.zeros((NUM_GROUP, 1, HIDDEN), jnp.float32),
        'g2':   jnp.ones((NUM_GROUP, 1, HIDDEN), jnp.float32),
        'be2':  jnp.zeros((NUM_GROUP, 1, HIDDEN), jnp.float32),
    }


def prepare_kernel_params(params):
    """One-time (init-style), mathematically identity-preserving preprocessing:
       * fold the token->hidden projection into the embedding tables,
       * fold the 1/sqrt(head_dim) softmax scale into the Q columns of wqkv/bqkv,
       * cast matmul weights to bf16 (f32 accumulation happens in the kernel)."""
    bf = jnp.bfloat16
    scale = 1.0 / math.sqrt(HEAD_DIM)
    pw, pb = params['proj_w'], params['proj_b']
    wqkv = params['wqkv'].at[..., :HIDDEN].multiply(scale)
    bqkv = params['bqkv'].at[..., :HIDDEN].multiply(scale)
    return {
        'tok_emb_h': params['tok_emb'] @ pw,            # (VOCAB, H)
        'seg_emb_h': params['seg_emb'] @ pw,            # (N_SEG, H)
        'pos_emb_h': params['pos_emb'] @ pw + pb,       # (SEQ, H), proj bias folded
        'wqkv': wqkv.astype(bf), 'bqkv': bqkv,
        'wo': params['wo'].astype(bf), 'bo': params['bo'],
        'g1': params['g1'], 'be1': params['be1'],
        'w1': params['w1'].astype(bf), 'b1': params['b1'],
        'w2': params['w2'].astype(bf), 'b2': params['b2'],
        'g2': params['g2'], 'be2': params['be2'],
    }


# ------------------------------ forward ----------------------------------
def _replicated_spec(shape):
    zeros = (0,) * len(shape)
    return pl.BlockSpec(shape, lambda b: zeros)


def albert_forward(prep, input_ids, segment_ids=None, mask=None):
    B, S = input_ids.shape

    # ALBERTTokenEmbedding: token + segment + position, already 128-wide because
    # the hidden projection was folded into the tables at prepare time.
    # TODO(synk): ALBERTTokenEmbedding source not provided; any embedding
    # LayerNorm / dropout inside it is omitted (eval semantics).
    x = jnp.take(prep['tok_emb_h'], input_ids, axis=0)                 # (B, S, H)
    if segment_ids is not None:
        x = x + jnp.take(prep['seg_emb_h'], segment_ids, axis=0)
    x = x + prep['pos_emb_h'][None, :S, :]
    x_flat = x.reshape(B * S, HIDDEN).astype(jnp.float32)

    if mask is None:
        mask = jnp.ones((B, S), jnp.float32)
    # Additive attention bias: 0 for keep, -1e9 for padded keys.
    mask_bias = ((mask.astype(jnp.float32) - 1.0) * 1e9).reshape(B, 1, S)

    weights = (prep['wqkv'], prep['bqkv'], prep['wo'], prep['bo'],
               prep['g1'], prep['be1'], prep['w1'], prep['b1'],
               prep['w2'], prep['b2'], prep['g2'], prep['be2'])

    kernel = functools.partial(
        _albert_kernel, batch=1, seq=S, hidden=HIDDEN, num_head=NUM_HEAD,
        layer_iter=LAYER_ITER, num_group=NUM_GROUP)

    out = pl.pallas_call(
        kernel,
        out_shape=jax.ShapeDtypeStruct((B * S, HIDDEN), jnp.float32),
        grid=(B,),                                        # one batch row / step
        in_specs=[pl.BlockSpec((S, HIDDEN), lambda b: (b, 0)),      # activations
                  pl.BlockSpec((1, 1, S), lambda b: (b, 0, 0))]     # mask bias
                 + [_replicated_spec(wt.shape) for wt in weights],  # shared weights
        out_specs=pl.BlockSpec((S, HIDDEN), lambda b: (b, 0)),
        compiler_params=pltpu.CompilerParams(
            dimension_semantics=("parallel",)),           # v7x: 2 rows -> 2 TCs
    )(x_flat, mask_bias, *weights)
    return out.reshape(B, S, HIDDEN)


# -------------------------------- main ------------------------------------
if __name__ == "__main__":
    key = jax.random.PRNGKey(0)
    k_ids, k_seg, k_par = jax.random.split(key, 3)

    input_ids = jax.random.randint(k_ids, (BATCH, SEQ), 0, VOCAB, dtype=jnp.int32)
    segment_ids = jax.random.randint(k_seg, (BATCH, SEQ), 0, N_SEGMENTS,
                                     dtype=jnp.int32)
    mask = jnp.ones((BATCH, SEQ), jnp.float32).at[1, SEQ - 2:].set(0.0)

    params = init_params(k_par)
    prep = prepare_kernel_params(params)

    out = albert_forward(prep, input_ids, segment_ids, mask)
    out = jax.block_until_ready(out)

    assert out.shape == (BATCH, SEQ, HIDDEN)
    assert bool(jnp.all(jnp.isfinite(out)))
    print("KERNEL_OK")
</pallas_src>

<mosaic_0001>
module attributes {stable_mosaic.version = 11 : i64} {
  func.func @_albert_kernel(%arg0: i32, %arg1: memref<8x128xf32, #tpu.memory_space<vmem>>, %arg2: memref<1x1x8xf32, #tpu.memory_space<vmem>>, %arg3: memref<1x128x384xbf16, #tpu.memory_space<vmem>>, %arg4: memref<1x1x384xf32, #tpu.memory_space<vmem>>, %arg5: memref<1x128x128xbf16, #tpu.memory_space<vmem>>, %arg6: memref<1x1x128xf32, #tpu.memory_space<vmem>>, %arg7: memref<1x1x128xf32, #tpu.memory_space<vmem>>, %arg8: memref<1x1x128xf32, #tpu.memory_space<vmem>>, %arg9: memref<1x128x512xbf16, #tpu.memory_space<vmem>>, %arg10: memref<1x1x512xf32, #tpu.memory_space<vmem>>, %arg11: memref<1x512x128xbf16, #tpu.memory_space<vmem>>, %arg12: memref<1x1x128xf32, #tpu.memory_space<vmem>>, %arg13: memref<1x1x128xf32, #tpu.memory_space<vmem>>, %arg14: memref<1x1x128xf32, #tpu.memory_space<vmem>>, %arg15: memref<8x128xf32, #tpu.memory_space<vmem>>) attributes {dimension_semantics = [#tpu.dimension_semantics<parallel>], iteration_bounds = array<i64: 2>, scalar_prefetch = 0 : i64, scratch_operands = 0 : i64, tpu.core_type = #tpu.core_type<tc>, window_params = [{transform_indices = @transform_0, window_bounds = array<i64: 8, 128>}, {transform_indices = @transform_1, window_bounds = array<i64: 1, 1, 8>}, {pipeline_mode = #tpu.pipeline_mode<synchronous>, transform_indices = @transform_2, window_bounds = array<i64: 1, 128, 384>}, {pipeline_mode = #tpu.pipeline_mode<synchronous>, transform_indices = @transform_3, window_bounds = array<i64: 1, 1, 384>}, {pipeline_mode = #tpu.pipeline_mode<synchronous>, transform_indices = @transform_4, window_bounds = array<i64: 1, 128, 128>}, {pipeline_mode = #tpu.pipeline_mode<synchronous>, transform_indices = @transform_5, window_bounds = array<i64: 1, 1, 128>}, {pipeline_mode = #tpu.pipeline_mode<synchronous>, transform_indices = @transform_6, window_bounds = array<i64: 1, 1, 128>}, {pipeline_mode = #tpu.pipeline_mode<synchronous>, transform_indices = @transform_7, window_bounds = array<i64: 1, 1, 128>}, {pipeline_mode = #tpu.pipeline_mode<synchronous>, transform_indices = @transform_8, window_bounds = array<i64: 1, 128, 512>}, {pipeline_mode = #tpu.pipeline_mode<synchronous>, transform_indices = @transform_9, window_bounds = array<i64: 1, 1, 512>}, {pipeline_mode = #tpu.pipeline_mode<synchronous>, transform_indices = @transform_10, window_bounds = array<i64: 1, 512, 128>}, {pipeline_mode = #tpu.pipeline_mode<synchronous>, transform_indices = @transform_11, window_bounds = array<i64: 1, 1, 128>}, {pipeline_mode = #tpu.pipeline_mode<synchronous>, transform_indices = @transform_12, window_bounds = array<i64: 1, 1, 128>}, {pipeline_mode = #tpu.pipeline_mode<synchronous>, transform_indices = @transform_13, window_bounds = array<i64: 1, 1, 128>}, {transform_indices = @transform_14, window_bounds = array<i64: 8, 128>}]} {
    %c0 = arith.constant 0 : index
    %c0_0 = arith.constant 0 : index
    %0 = vector.load %arg1[%c0, %c0_0] : memref<8x128xf32, #tpu.memory_space<vmem>>, vector<8x128xf32>
    %c0_1 = arith.constant 0 : index
    %c0_2 = arith.constant 0 : index
    %c0_3 = arith.constant 0 : index
    %1 = vector.load %arg2[%c0_1, %c0_2, %c0_3] : memref<1x1x8xf32, #tpu.memory_space<vmem>>, vector<1x1x8xf32>
    %2 = vector.shape_cast %1 : vector<1x1x8xf32> to vector<1x1x1x8xf32>
    %3 = vector.shape_cast %2 : vector<1x1x1x8xf32> to vector<1x1x1x8xf32>
    %4 = vector.broadcast %3 : vector<1x1x1x8xf32> to vector<1x4x8x8xf32>
    %5 = vector.shape_cast %4 : vector<1x4x8x8xf32> to vector<4x8x8xf32>
    %c0_4 = arith.constant 0 : index
    %c0_5 = arith.constant 0 : index
    %c0_6 = arith.constant 0 : index
    %6 = vector.load %arg3[%c0_4, %c0_5, %c0_6] : memref<1x128x384xbf16, #tpu.memory_space<vmem>>, vector<1x128x384xbf16>
    %7 = vector.shape_cast %6 : vector<1x128x384xbf16> to vector<128x384xbf16>
    %c0_7 = arith.constant 0 : index
    %c0_8 = arith.constant 0 : index
    %c0_9 = arith.constant 0 : index
    %8 = vector.load %arg5[%c0_7, %c0_8, %c0_9] : memref<1x128x128xbf16, #tpu.memory_space<vmem>>, vector<1x128x128xbf16>
    %9 = vector.shape_cast %8 : vector<1x128x128xbf16> to vector<128x128xbf16>
    %c0_10 = arith.constant 0 : index
    %c0_11 = arith.constant 0 : index
    %c0_12 = arith.constant 0 : index
    %10 = vector.load %arg9[%c0_10, %c0_11, %c0_12] : memref<1x128x512xbf16, #tpu.memory_space<vmem>>, vector<1x128x512xbf16>
    %11 = vector.shape_cast %10 : vector<1x128x512xbf16> to vector<128x512xbf16>
    %c0_13 = arith.constant 0 : index
    %c0_14 = arith.constant 0 : index
    %c0_15 = arith.constant 0 : index
    %12 = vector.load %arg11[%c0_13, %c0_14, %c0_15] : memref<1x512x128xbf16, #tpu.memory_space<vmem>>, vector<1x512x128xbf16>
    %13 = vector.shape_cast %12 : vector<1x512x128xbf16> to vector<512x128xbf16>
    %c0_16 = arith.constant 0 : index
    %c0_17 = arith.constant 0 : index
    %c0_18 = arith.constant 0 : index
    %14 = vector.load %arg4[%c0_16, %c0_17, %c0_18] : memref<1x1x384xf32, #tpu.memory_space<vmem>>, vector<1x1x384xf32>
    %15 = vector.shape_cast %14 : vector<1x1x384xf32> to vector<1x384xf32>
    %16 = vector.shape_cast %15 : vector<1x384xf32> to vector<1x384xf32>
    %17 = vector.broadcast %16 : vector<1x384xf32> to vector<8x384xf32>
    %c0_19 = arith.constant 0 : index
    %c0_20 = arith.constant 0 : index
    %c0_21 = arith.constant 0 : index
    %18 = vector.load %arg6[%c0_19, %c0_20, %c0_21] : memref<1x1x128xf32, #tpu.memory_space<vmem>>, vector<1x1x128xf32>
    %19 = vector.shape_cast %18 : vector<1x1x128xf32> to vector<1x128xf32>
    %20 = vector.shape_cast %19 : vector<1x128xf32> to vector<1x128xf32>
    %21 = vector.broadcast %20 : vector<1x128xf32> to vector<8x128xf32>
    %c0_22 = arith.constant 0 : index
    %c0_23 = arith.constant 0 : index
    %c0_24 = arith.constant 0 : index
    %22 = vector.load %arg10[%c0_22, %c0_23, %c0_24] : memref<1x1x512xf32, #tpu.memory_space<vmem>>, vector<1x1x512xf32>
    %23 = vector.shape_cast %22 : vector<1x1x512xf32> to vector<1x512xf32>
    %24 = vector.shape_cast %23 : vector<1x512xf32> to vector<1x512xf32>
    %25 = vector.broadcast %24 : vector<1x512xf32> to vector<8x512xf32>
    %c0_25 = arith.constant 0 : index
    %c0_26 = arith.constant 0 : index
    %c0_27 = arith.constant 0 : index
    %26 = vector.load %arg12[%c0_25, %c0_26, %c0_27] : memref<1x1x128xf32, #tpu.memory_space<vmem>>, vector<1x1x128xf32>
    %27 = vector.shape_cast %26 : vector<1x1x128xf32> to vector<1x128xf32>
    %28 = vector.shape_cast %27 : vector<1x128xf32> to vector<1x128xf32>
    %29 = vector.broadcast %28 : vector<1x128xf32> to vector<8x128xf32>
    %c0_28 = arith.constant 0 : index
    %c0_29 = arith.constant 0 : index
    %c0_30 = arith.constant 0 : index
    %30 = vector.load %arg7[%c0_28, %c0_29, %c0_30] : memref<1x1x128xf32, #tpu.memory_space<vmem>>, vector<1x1x128xf32>
    %31 = vector.shape_cast %30 : vector<1x1x128xf32> to vector<1x128xf32>
    %32 = vector.shape_cast %31 : vector<1x128xf32> to vector<1x128xf32>
    %33 = vector.broadcast %32 : vector<1x128xf32> to vector<8x128xf32>
    %c0_31 = arith.constant 0 : index
    %c0_32 = arith.constant 0 : index
    %c0_33 = arith.constant 0 : index
    %34 = vector.load %arg8[%c0_31, %c0_32, %c0_33] : memref<1x1x128xf32, #tpu.memory_space<vmem>>, vector<1x1x128xf32>
    %35 = vector.shape_cast %34 : vector<1x1x128xf32> to vector<1x128xf32>
    %36 = vector.shape_cast %35 : vector<1x128xf32> to vector<1x128xf32>
    %37 = vector.broadcast %36 : vector<1x128xf32> to vector<8x128xf32>
    %c0_34 = arith.constant 0 : index
    %c0_35 = arith.constant 0 : index
    %c0_36 = arith.constant 0 : index
    %38 = vector.load %arg13[%c0_34, %c0_35, %c0_36] : memref<1x1x128xf32, #tpu.memory_space<vmem>>, vector<1x1x128xf32>
    %39 = vector.shape_cast %38 : vector<1x1x128xf32> to vector<1x128xf32>
    %40 = vector.shape_cast %39 : vector<1x128xf32> to vector<1x128xf32>
    %41 = vector.broadcast %40 : vector<1x128xf32> to vector<8x128xf32>
    %c0_37 = arith.constant 0 : index
    %c0_38 = arith.constant 0 : index
    %c0_39 = arith.constant 0 : index
    %42 = vector.load %arg14[%c0_37, %c0_38, %c0_39] : memref<1x1x128xf32, #tpu.memory_space<vmem>>, vector<1x1x128xf32>
    %43 = vector.shape_cast %42 : vector<1x1x128xf32> to vector<1x128xf32>
    %44 = vector.shape_cast %43 : vector<1x128xf32> to vector<1x128xf32>
    %45 = vector.broadcast %44 : vector<1x128xf32> to vector<8x128xf32>
    %46 = arith.truncf %0 : vector<8x128xf32> to vector<8x128xbf16>
    %cst = arith.constant dense<0.000000e+00> : vector<8x384xf32>
    %47 = tpu.matmul %46, %7, %cst {dimension_numbers = #tpu.dot_dimension_numbers<[1], [0], [0], [1], [0, 0, 1, 1], [], []>} : vector<8x128xbf16>, vector<128x384xbf16>, vector<8x384xf32> -> vector<8x384xf32>
    %48 = arith.addf %47, %17 : vector<8x384xf32>
    %49 = vector.extract_strided_slice %48 {offsets = [0, 0], sizes = [8, 128], strides = [1, 1]} : vector<8x384xf32> to vector<8x128xf32>
    %50 = vector.extract_strided_slice %49 {offsets = [0, 0], sizes = [8, 32], strides = [1, 1]} : vector<8x128xf32> to vector<8x32xf32>
    %51 = vector.shape_cast %50 : vector<8x32xf32> to vector<1x8x32xf32>
    %52 = vector.extract_strided_slice %49 {offsets = [0, 32], sizes = [8, 32], strides = [1, 1]} : vector<8x128xf32> to vector<8x32xf32>
    %53 = vector.shape_cast %52 : vector<8x32xf32> to vector<1x8x32xf32>
    %54 = vector.extract_strided_slice %49 {offsets = [0, 64], sizes = [8, 32], strides = [1, 1]} : vector<8x128xf32> to vector<8x32xf32>
    %55 = vector.shape_cast %54 : vector<8x32xf32> to vector<1x8x32xf32>
    %56 = vector.extract_strided_slice %49 {offsets = [0, 96], sizes = [8, 32], strides = [1, 1]} : vector<8x128xf32> to vector<8x32xf32>
    %57 = vector.shape_cast %56 : vector<8x32xf32> to vector<1x8x32xf32>
    %58 = vector.shape_cast %51 : vector<1x8x32xf32> to vector<1x1x8x32xf32>
    %59 = vector.shape_cast %53 : vector<1x8x32xf32> to vector<1x1x8x32xf32>
    %60 = vector.shape_cast %55 : vector<1x8x32xf32> to vector<1x1x8x32xf32>
    %61 = vector.shape_cast %57 : vector<1x8x32xf32> to vector<1x1x8x32xf32>
    %62 = tpu.concatenate %58, %59, %60, %61 in 1 : vector<1x1x8x32xf32>, vector<1x1x8x32xf32>, vector<1x1x8x32xf32>, vector<1x1x8x32xf32> -> vector<1x4x8x32xf32>
    %63 = vector.shape_cast %62 : vector<1x4x8x32xf32> to vector<4x8x32xf32>
    %64 = arith.truncf %63 : vector<4x8x32xf32> to vector<4x8x32xbf16>
    %65 = vector.extract_strided_slice %48 {offsets = [0, 128], sizes = [8, 128], strides = [1, 1]} : vector<8x384xf32> to vector<8x128xf32>
    %66 = vector.extract_strided_slice %65 {offsets = [0, 0], sizes = [8, 32], strides = [1, 1]} : vector<8x128xf32> to vector<8x32xf32>
    %67 = vector.shape_cast %66 : vector<8x32xf32> to vector<1x8x32xf32>
    %68 = vector.extract_strided_slice %65 {offsets = [0, 32], sizes = [8, 32], strides = [1, 1]} : vector<8x128xf32> to vector<8x32xf32>
    %69 = vector.shape_cast %68 : vector<8x32xf32> to vector<1x8x32xf32>
    %70 = vector.extract_strided_slice %65 {offsets = [0, 64], sizes = [8, 32], strides = [1, 1]} : vector<8x128xf32> to vector<8x32xf32>
    %71 = vector.shape_cast %70 : vector<8x32xf32> to vector<1x8x32xf32>
    %72 = vector.extract_strided_slice %65 {offsets = [0, 96], sizes = [8, 32], strides = [1, 1]} : vector<8x128xf32> to vector<8x32xf32>
    %73 = vector.shape_cast %72 : vector<8x32xf32> to vector<1x8x32xf32>
    %74 = vector.shape_cast %67 : vector<1x8x32xf32> to vector<1x1x8x32xf32>
    %75 = vector.shape_cast %69 : vector<1x8x32xf32> to vector<1x1x8x32xf32>
    %76 = vector.shape_cast %71 : vector<1x8x32xf32> to vector<1x1x8x32xf32>
    %77 = vector.shape_cast %73 : vector<1x8x32xf32> to vector<1x1x8x32xf32>
    %78 = tpu.concatenate %74, %75, %76, %77 in 1 : vector<1x1x8x32xf32>, vector<1x1x8x32xf32>, vector<1x1x8x32xf32>, vector<1x1x8x32xf32> -> vector<1x4x8x32xf32>
    %79 = vector.shape_cast %78 : vector<1x4x8x32xf32> to vector<4x8x32xf32>
    %80 = arith.truncf %79 : vector<4x8x32xf32> to vector<4x8x32xbf16>
    %81 = vector.extract_strided_slice %48 {offsets = [0, 256], sizes = [8, 128], strides = [1, 1]} : vector<8x384xf32> to vector<8x128xf32>
    %82 = vector.extract_strided_slice %81 {offsets = [0, 0], sizes = [8, 32], strides = [1, 1]} : vector<8x128xf32> to vector<8x32xf32>
    %83 = vector.shape_cast %82 : vector<8x32xf32> to vector<1x8x32xf32>
    %84 = vector.extract_strided_slice %81 {offsets = [0, 32], sizes = [8, 32], strides = [1, 1]} : vector<8x128xf32> to vector<8x32xf32>
    %85 = vector.shape_cast %84 : vector<8x32xf32> to vector<1x8x32xf32>
    %86 = vector.extract_strided_slice %81 {offsets = [0, 64], sizes = [8, 32], strides = [1, 1]} : vector<8x128xf32> to vector<8x32xf32>
    %87 = vector.shape_cast %86 : vector<8x32xf32> to vector<1x8x32xf32>
    %88 = vector.extract_strided_slice %81 {offsets = [0, 96], sizes = [8, 32], strides = [1, 1]} : vector<8x128xf32> to vector<8x32xf32>
    %89 = vector.shape_cast %88 : vector<8x32xf32> to vector<1x8x32xf32>
    %90 = vector.shape_cast %83 : vector<1x8x32xf32> to vector<1x1x8x32xf32>
    %91 = vector.shape_cast %85 : vector<1x8x32xf32> to vector<1x1x8x32xf32>
    %92 = vector.shape_cast %87 : vector<1x8x32xf32> to vector<1x1x8x32xf32>
    %93 = vector.shape_cast %89 : vector<1x8x32xf32> to vector<1x1x8x32xf32>
    %94 = tpu.concatenate %90, %91, %92, %93 in 1 : vector<1x1x8x32xf32>, vector<1x1x8x32xf32>, vector<1x1x8x32xf32>, vector<1x1x8x32xf32> -> vector<1x4x8x32xf32>
    %95 = vector.shape_cast %94 : vector<1x4x8x32xf32> to vector<4x8x32xf32>
    %96 = arith.truncf %95 : vector<4x8x32xf32> to vector<4x8x32xbf16>
    %97 = tpu.transpose %80, [0, 2, 1] : vector<4x8x32xbf16> -> vector<4x32x8xbf16>
    "tpu.trace_start"() <{level = 10 : i32, message = "bqd,bdk->bqk"}> : () -> ()
    %cst_40 = arith.constant dense<0.000000e+00> : vector<4x8x8xf32>
    %98 = tpu.matmul %64, %97, %cst_40 {dimension_numbers = #tpu.dot_dimension_numbers<[2], [1], [1], [2], [0, 0, 0, 1, 1, 2], [0], [0]>} : vector<4x8x32xbf16>, vector<4x32x8xbf16>, vector<4x8x8xf32> -> vector<4x8x8xf32>
    "tpu.trace_stop"() : () -> ()
    %99 = arith.addf %98, %5 : vector<4x8x8xf32>
    %cst_41 = arith.constant dense<0xFF800000> : vector<4x8xf32>
    %100 = vector.multi_reduction <maximumf>, %99, %cst_41 [2] : vector<4x8x8xf32> to vector<4x8xf32>
    %101 = vector.shape_cast %100 : vector<4x8xf32> to vector<4x8x1xf32>
    %102 = vector.broadcast %101 : vector<4x8x1xf32> to vector<4x8x8xf32>
    %103 = arith.subf %99, %102 : vector<4x8x8xf32>
    %104 = math.exp %103 : vector<4x8x8xf32>
    %cst_42 = arith.constant dense<0.000000e+00> : vector<4x8xf32>
    %105 = vector.multi_reduction <add>, %104, %cst_42 [2] : vector<4x8x8xf32> to vector<4x8xf32>
    %106 = vector.shape_cast %105 : vector<4x8xf32> to vector<4x8x1xf32>
    %107 = tpu.reciprocal %106 {approx = true} : vector<4x8x1xf32> -> vector<4x8x1xf32>
    %108 = vector.broadcast %107 : vector<4x8x1xf32> to vector<4x8x8xf32>
    %109 = arith.mulf %104, %108 : vector<4x8x8xf32>
    %110 = arith.truncf %109 : vector<4x8x8xf32> to vector<4x8x8xbf16>
    "tpu.trace_start"() <{level = 10 : i32, message = "bqk,bkd->bqd"}> : () -> ()
    %cst_43 = arith.constant dense<0.000000e+00> : vector<4x8x32xf32>
    %111 = tpu.matmul %110, %96, %cst_43 {dimension_numbers = #tpu.dot_dimension_numbers<[2], [1], [1], [2], [0, 0, 0, 1, 1, 2], [0], [0]>} : vector<4x8x8xbf16>, vector<4x8x32xbf16>, vector<4x8x32xf32> -> vector<4x8x32xf32>
    "tpu.trace_stop"() : () -> ()
    %112 = vector.shape_cast %111 : vector<4x8x32xf32> to vector<1x4x8x32xf32>
    %113 = vector.extract_strided_slice %112 {offsets = [0, 0, 0, 0], sizes = [1, 1, 8, 32], strides = [1, 1, 1, 1]} : vector<1x4x8x32xf32> to vector<1x1x8x32xf32>
    %114 = vector.shape_cast %113 : vector<1x1x8x32xf32> to vector<1x8x32xf32>
    %115 = vector.shape_cast %114 : vector<1x8x32xf32> to vector<8x32xf32>
    %116 = vector.extract_strided_slice %112 {offsets = [0, 1, 0, 0], sizes = [1, 1, 8, 32], strides = [1, 1, 1, 1]} : vector<1x4x8x32xf32> to vector<1x1x8x32xf32>
    %117 = vector.shape_cast %116 : vector<1x1x8x32xf32> to vector<1x8x32xf32>
    %118 = vector.shape_cast %117 : vector<1x8x32xf32> to vector<8x32xf32>
    %119 = vector.extract_strided_slice %112 {offsets = [0, 2, 0, 0], sizes = [1, 1, 8, 32], strides = [1, 1, 1, 1]} : vector<1x4x8x32xf32> to vector<1x1x8x32xf32>
    %120 = vector.shape_cast %119 : vector<1x1x8x32xf32> to vector<1x8x32xf32>
    %121 = vector.shape_cast %120 : vector<1x8x32xf32> to vector<8x32xf32>
    %122 = vector.extract_strided_slice %112 {offsets = [0, 3, 0, 0], sizes = [1, 1, 8, 32], strides = [1, 1, 1, 1]} : vector<1x4x8x32xf32> to vector<1x1x8x32xf32>
    %123 = vector.shape_cast %122 : vector<1x1x8x32xf32> to vector<1x8x32xf32>
    %124 = vector.shape_cast %123 : vector<1x8x32xf32> to vector<8x32xf32>
    %125 = tpu.concatenate %115, %118, %121, %124 in 1 : vector<8x32xf32>, vector<8x32xf32>, vector<8x32xf32>, vector<8x32xf32> -> vector<8x128xf32>
    %126 = arith.truncf %125 : vector<8x128xf32> to vector<8x128xbf16>
    %cst_44 = arith.constant dense<0.000000e+00> : vector<8x128xf32>
    %127 = tpu.matmul %126, %9, %cst_44 {dimension_numbers = #tpu.dot_dimension_numbers<[1], [0], [0], [1], [0, 0, 1, 1], [], []>} : vector<8x128xbf16>, vector<128x128xbf16>, vector<8x128xf32> -> vector<8x128xf32>
    %128 = arith.addf %127, %21 : vector<8x128xf32>
    %129 = arith.addf %0, %128 : vector<8x128xf32>
    %cst_45 = arith.constant dense<0.000000e+00> : vector<8xf32>
    %130 = vector.multi_reduction <add>, %129, %cst_45 [1] : vector<8x128xf32> to vector<8xf32>
    %131 = vector.shape_cast %130 : vector<8xf32> to vector<8x1xf32>
    %cst_46 = arith.constant 1.280000e+02 : f32
    %132 = vector.broadcast %cst_46 : f32 to vector<8x1xf32>
    %133 = arith.divf %131, %132 : vector<8x1xf32>
    %134 = vector.broadcast %133 : vector<8x1xf32> to vector<8x128xf32>
    %135 = arith.subf %129, %134 : vector<8x128xf32>
    %136 = arith.mulf %135, %135 : vector<8x128xf32>
    %cst_47 = arith.constant dense<0.000000e+00> : vector<8xf32>
    %137 = vector.multi_reduction <add>, %136, %cst_47 [1] : vector<8x128xf32> to vector<8xf32>
    %138 = vector.shape_cast %137 : vector<8xf32> to vector<8x1xf32>
    %cst_48 = arith.constant 1.280000e+02 : f32
    %139 = vector.broadcast %cst_48 : f32 to vector<8x1xf32>
    %140 = arith.divf %138, %139 : vector<8x1xf32>
    %141 = vector.broadcast %133 : vector<8x1xf32> to vector<8x128xf32>
    %142 = arith.subf %129, %141 : vector<8x128xf32>
    %cst_49 = arith.constant 9.99999996E-13 : f32
    %143 = vector.broadcast %cst_49 : f32 to vector<8x1xf32>
    %144 = arith.addf %140, %143 : vector<8x1xf32>
    %145 = math.rsqrt %144 : vector<8x1xf32>
    %146 = vector.broadcast %145 : vector<8x1xf32> to vector<8x128xf32>
    %147 = arith.mulf %142, %146 : vector<8x128xf32>
    %148 = arith.mulf %147, %33 : vector<8x128xf32>
    %149 = arith.addf %148, %37 : vector<8x128xf32>
    %150 = arith.truncf %149 : vector<8x128xf32> to vector<8x128xbf16>
    %cst_50 = arith.constant dense<0.000000e+00> : vector<8x512xf32>
    %151 = tpu.matmul %150, %11, %cst_50 {dimension_numbers = #tpu.dot_dimension_numbers<[1], [0], [0], [1], [0, 0, 1, 1], [], []>} : vector<8x128xbf16>, vector<128x512xbf16>, vector<8x512xf32> -> vector<8x512xf32>
    %152 = arith.addf %151, %25 : vector<8x512xf32>
    %153 = arith.mulf %152, %152 : vector<8x512xf32>
    %154 = arith.mulf %152, %153 : vector<8x512xf32>
    %cst_51 = arith.constant 4.471500e-02 : f32
    %155 = vector.broadcast %cst_51 : f32 to vector<8x512xf32>
    %156 = arith.mulf %155, %154 : vector<8x512xf32>
    %157 = arith.addf %152, %156 : vector<8x512xf32>
    %cst_52 = arith.constant 0.797884583 : f32
    %158 = vector.broadcast %cst_52 : f32 to vector<8x512xf32>
    %159 = arith.mulf %158, %157 : vector<8x512xf32>
    %160 = math.tanh %159 : vector<8x512xf32>
    %cst_53 = arith.constant 1.000000e+00 : f32
    %161 = vector.broadcast %cst_53 : f32 to vector<8x512xf32>
    %162 = arith.addf %161, %160 : vector<8x512xf32>
    %cst_54 = arith.constant 5.000000e-01 : f32
    %163 = vector.broadcast %cst_54 : f32 to vector<8x512xf32>
    %164 = arith.mulf %163, %162 : vector<8x512xf32>
    %165 = arith.mulf %152, %164 : vector<8x512xf32>
    %166 = arith.truncf %165 : vector<8x512xf32> to vector<8x512xbf16>
    %cst_55 = arith.constant dense<0.000000e+00> : vector<8x128xf32>
    %167 = tpu.matmul %166, %13, %cst_55 {dimension_numbers = #tpu.dot_dimension_numbers<[1], [0], [0], [1], [0, 0, 1, 1], [], []>} : vector<8x512xbf16>, vector<512x128xbf16>, vector<8x128xf32> -> vector<8x128xf32>
    %168 = arith.addf %167, %29 : vector<8x128xf32>
    %169 = arith.addf %149, %168 : vector<8x128xf32>
    %cst_56 = arith.constant dense<0.000000e+00> : vector<8xf32>
    %170 = vector.multi_reduction <add>, %169, %cst_56 [1] : vector<8x128xf32> to vector<8xf32>
    %171 = vector.shape_cast %170 : vector<8xf32> to vector<8x1xf32>
    %cst_57 = arith.constant 1.280000e+02 : f32
    %172 = vector.broadcast %cst_57 : f32 to vector<8x1xf32>
    %173 = arith.divf %171, %172 : vector<8x1xf32>
    %174 = vector.broadcast %173 : vector<8x1xf32> to vector<8x128xf32>
    %175 = arith.subf %169, %174 : vector<8x128xf32>
    %176 = arith.mulf %175, %175 : vector<8x128xf32>
    %cst_58 = arith.constant dense<0.000000e+00> : vector<8xf32>
    %177 = vector.multi_reduction <add>, %176, %cst_58 [1] : vector<8x128xf32> to vector<8xf32>
    %178 = vector.shape_cast %177 : vector<8xf32> to vector<8x1xf32>
    %cst_59 = arith.constant 1.280000e+02 : f32
    %179 = vector.broadcast %cst_59 : f32 to vector<8x1xf32>
    %180 = arith.divf %178, %179 : vector<8x1xf32>
    %181 = vector.broadcast %173 : vector<8x1xf32> to vector<8x128xf32>
    %182 = arith.subf %169, %181 : vector<8x128xf32>
    %cst_60 = arith.constant 9.99999996E-13 : f32
    %183 = vector.broadcast %cst_60 : f32 to vector<8x1xf32>
    %184 = arith.addf %180, %183 : vector<8x1xf32>
    %185 = math.rsqrt %184 : vector<8x1xf32>
    %186 = vector.broadcast %185 : vector<8x1xf32> to vector<8x128xf32>
    %187 = arith.mulf %182, %186 : vector<8x128xf32>
    %188 = arith.mulf %187, %41 : vector<8x128xf32>
    %189 = arith.addf %188, %45 : vector<8x128xf32>
    %190 = arith.truncf %189 : vector<8x128xf32> to vector<8x128xbf16>
    %cst_61 = arith.constant dense<0.000000e+00> : vector<8x384xf32>
    %191 = tpu.matmul %190, %7, %cst_61 {dimension_numbers = #tpu.dot_dimension_numbers<[1], [0], [0], [1], [0, 0, 1, 1], [], []>} : vector<8x128xbf16>, vector<128x384xbf16>, vector<8x384xf32> -> vector<8x384xf32>
    %192 = arith.addf %191, %17 : vector<8x384xf32>
    %193 = vector.extract_strided_slice %192 {offsets = [0, 0], sizes = [8, 128], strides = [1, 1]} : vector<8x384xf32> to vector<8x128xf32>
    %194 = vector.extract_strided_slice %193 {offsets = [0, 0], sizes = [8, 32], strides = [1, 1]} : vector<8x128xf32> to vector<8x32xf32>
    %195 = vector.shape_cast %194 : vector<8x32xf32> to vector<1x8x32xf32>
    %196 = vector.extract_strided_slice %193 {offsets = [0, 32], sizes = [8, 32], strides = [1, 1]} : vector<8x128xf32> to vector<8x32xf32>
    %197 = vector.shape_cast %196 : vector<8x32xf32> to vector<1x8x32xf32>
    %198 = vector.extract_strided_slice %193 {offsets = [0, 64], sizes = [8, 32], strides = [1, 1]} : vector<8x128xf32> to vector<8x32xf32>
    %199 = vector.shape_cast %198 : vector<8x32xf32> to vector<1x8x32xf32>
    %200 = vector.extract_strided_slice %193 {offsets = [0, 96], sizes = [8, 32], strides = [1, 1]} : vector<8x128xf32> to vector<8x32xf32>
    %201 = vector.shape_cast %200 : vector<8x32xf32> to vector<1x8x32xf32>
    %202 = vector.shape_cast %195 : vector<1x8x32xf32> to vector<1x1x8x32xf32>
    %203 = vector.shape_cast %197 : vector<1x8x32xf32> to vector<1x1x8x32xf32>
    %204 = vector.shape_cast %199 : vector<1x8x32xf32> to vector<1x1x8x32xf32>
    %205 = vector.shape_cast %201 : vector<1x8x32xf32> to vector<1x1x8x32xf32>
    %206 = tpu.concatenate %202, %203, %204, %205 in 1 : vector<1x1x8x32xf32>, vector<1x1x8x32xf32>, vector<1x1x8x32xf32>, vector<1x1x8x32xf32> -> vector<1x4x8x32xf32>
    %207 = vector.shape_cast %206 : vector<1x4x8x32xf32> to vector<4x8x32xf32>
    %208 = arith.truncf %207 : vector<4x8x32xf32> to vector<4x8x32xbf16>
    %209 = vector.extract_strided_slice %192 {offsets = [0, 128], sizes = [8, 128], strides = [1, 1]} : vector<8x384xf32> to vector<8x128xf32>
    %210 = vector.extract_strided_slice %209 {offsets = [0, 0], sizes = [8, 32], strides = [1, 1]} : vector<8x128xf32> to vector<8x32xf32>
    %211 = vector.shape_cast %210 : vector<8x32xf32> to vector<1x8x32xf32>
    %212 = vector.extract_strided_slice %209 {offsets = [0, 32], sizes = [8, 32], strides = [1, 1]} : vector<8x128xf32> to vector<8x32xf32>
    %213 = vector.shape_cast %212 : vector<8x32xf32> to vector<1x8x32xf32>
    %214 = vector.extract_strided_slice %209 {offsets = [0, 64], sizes = [8, 32], strides = [1, 1]} : vector<8x128xf32> to vector<8x32xf32>
    %215 = vector.shape_cast %214 : vector<8x32xf32> to vector<1x8x32xf32>
    %216 = vector.extract_strided_slice %209 {offsets = [0, 96], sizes = [8, 32], strides = [1, 1]} : vector<8x128xf32> to vector<8x32xf32>
    %217 = vector.shape_cast %216 : vector<8x32xf32> to vector<1x8x32xf32>
    %218 = vector.shape_cast %211 : vector<1x8x32xf32> to vector<1x1x8x32xf32>
    %219 = vector.shape_cast %213 : vector<1x8x32xf32> to vector<1x1x8x32xf32>
    %220 = vector.shape_cast %215 : vector<1x8x32xf32> to vector<1x1x8x32xf32>
    %221 = vector.shape_cast %217 : vector<1x8x32xf32> to vector<1x1x8x32xf32>
    %222 = tpu.concatenate %218, %219, %220, %221 in 1 : vector<1x1x8x32xf32>, vector<1x1x8x32xf32>, vector<1x1x8x32xf32>, vector<1x1x8x32xf32> -> vector<1x4x8x32xf32>
    %223 = vector.shape_cast %222 : vector<1x4x8x32xf32> to vector<4x8x32xf32>
    %224 = arith.truncf %223 : vector<4x8x32xf32> to vector<4x8x32xbf16>
    %225 = vector.extract_strided_slice %192 {offsets = [0, 256], sizes = [8, 128], strides = [1, 1]} : vector<8x384xf32> to vector<8x128xf32>
    %226 = vector.extract_strided_slice %225 {offsets = [0, 0], sizes = [8, 32], strides = [1, 1]} : vector<8x128xf32> to vector<8x32xf32>
    %227 = vector.shape_cast %226 : vector<8x32xf32> to vector<1x8x32xf32>
    %228 = vector.extract_strided_slice %225 {offsets = [0, 32], sizes = [8, 32], strides = [1, 1]} : vector<8x128xf32> to vector<8x32xf32>
    %229 = vector.shape_cast %228 : vector<8x32xf32> to vector<1x8x32xf32>
    %230 = vector.extract_strided_slice %225 {offsets = [0, 64], sizes = [8, 32], strides = [1, 1]} : vector<8x128xf32> to vector<8x32xf32>
    %231 = vector.shape_cast %230 : vector<8x32xf32> to vector<1x8x32xf32>
    %232 = vector.extract_strided_slice %225 {offsets = [0, 96], sizes = [8, 32], strides = [1, 1]} : vector<8x128xf32> to vector<8x32xf32>
    %233 = vector.shape_cast %232 : vector<8x32xf32> to vector<1x8x32xf32>
    %234 = vector.shape_cast %227 : vector<1x8x32xf32> to vector<1x1x8x32xf32>
    %235 = vector.shape_cast %229 : vector<1x8x32xf32> to vector<1x1x8x32xf32>
    %236 = vector.shape_cast %231 : vector<1x8x32xf32> to vector<1x1x8x32xf32>
    %237 = vector.shape_cast %233 : vector<1x8x32xf32> to vector<1x1x8x32xf32>
    %238 = tpu.concatenate %234, %235, %236, %237 in 1 : vector<1x1x8x32xf32>, vector<1x1x8x32xf32>, vector<1x1x8x32xf32>, vector<1x1x8x32xf32> -> vector<1x4x8x32xf32>
    %239 = vector.shape_cast %238 : vector<1x4x8x32xf32> to vector<4x8x32xf32>
    %240 = arith.truncf %239 : vector<4x8x32xf32> to vector<4x8x32xbf16>
    %241 = tpu.transpose %224, [0, 2, 1] : vector<4x8x32xbf16> -> vector<4x32x8xbf16>
    "tpu.trace_start"() <{level = 10 : i32, message = "bqd,bdk->bqk"}> : () -> ()
    %cst_62 = arith.constant dense<0.000000e+00> : vector<4x8x8xf32>
    %242 = tpu.matmul %208, %241, %cst_62 {dimension_numbers = #tpu.dot_dimension_numbers<[2], [1], [1], [2], [0, 0, 0, 1, 1, 2], [0], [0]>} : vector<4x8x32xbf16>, vector<4x32x8xbf16>, vector<4x8x8xf32> -> vector<4x8x8xf32>
    "tpu.trace_stop"() : () -> ()
    %243 = arith.addf %242, %5 : vector<4x8x8xf32>
    %cst_63 = arith.constant dense<0xFF800000> : vector<4x8xf32>
    %244 = vector.multi_reduction <maximumf>, %243, %cst_63 [2] : vector<4x8x8xf32> to vector<4x8xf32>
    %245 = vector.shape_cast %244 : vector<4x8xf32> to vector<4x8x1xf32>
    %246 = vector.broadcast %245 : vector<4x8x1xf32> to vector<4x8x8xf32>
    %247 = arith.subf %243, %246 : vector<4x8x8xf32>
    %248 = math.exp %247 : vector<4x8x8xf32>
    %cst_64 = arith.constant dense<0.000000e+00> : vector<4x8xf32>
    %249 = vector.multi_reduction <add>, %248, %cst_64 [2] : vector<4x8x8xf32> to vector<4x8xf32>
    %250 = vector.shape_cast %249 : vector<4x8xf32> to vector<4x8x1xf32>
    %251 = tpu.reciprocal %250 {approx = true} : vector<4x8x1xf32> -> vector<4x8x1xf32>
    %252 = vector.broadcast %251 : vector<4x8x1xf32> to vector<4x8x8xf32>
    %253 = arith.mulf %248, %252 : vector<4x8x8xf32>
    %254 = arith.truncf %253 : vector<4x8x8xf32> to vector<4x8x8xbf16>
    "tpu.trace_start"() <{level = 10 : i32, message = "bqk,bkd->bqd"}> : () -> ()
    %cst_65 = arith.constant dense<0.000000e+00> : vector<4x8x32xf32>
    %255 = tpu.matmul %254, %240, %cst_65 {dimension_numbers = #tpu.dot_dimension_numbers<[2], [1], [1], [2], [0, 0, 0, 1, 1, 2], [0], [0]>} : vector<4x8x8xbf16>, vector<4x8x32xbf16>, vector<4x8x32xf32> -> vector<4x8x32xf32>
    "tpu.trace_stop"() : () -> ()
    %256 = vector.shape_cast %255 : vector<4x8x32xf32> to vector<1x4x8x32xf32>
    %257 = vector.extract_strided_slice %256 {offsets = [0, 0, 0, 0], sizes = [1, 1, 8, 32], strides = [1, 1, 1, 1]} : vector<1x4x8x32xf32> to vector<1x1x8x32xf32>
    %258 = vector.shape_cast %257 : vector<1x1x8x32xf32> to vector<1x8x32xf32>
    %259 = vector.shape_cast %258 : vector<1x8x32xf32> to vector<8x32xf32>
    %260 = vector.extract_strided_slice %256 {offsets = [0, 1, 0, 0], sizes = [1, 1, 8, 32], strides = [1, 1, 1, 1]} : vector<1x4x8x32xf32> to vector<1x1x8x32xf32>
    %261 = vector.shape_cast %260 : vector<1x1x8x32xf32> to vector<1x8x32xf32>
    %262 = vector.shape_cast %261 : vector<1x8x32xf32> to vector<8x32xf32>
    %263 = vector.extract_strided_slice %256 {offsets = [0, 2, 0, 0], sizes = [1, 1, 8, 32], strides = [1, 1, 1, 1]} : vector<1x4x8x32xf32> to vector<1x1x8x32xf32>
    %264 = vector.shape_cast %263 : vector<1x1x8x32xf32> to vector<1x8x32xf32>
    %265 = vector.shape_cast %264 : vector<1x8x32xf32> to vector<8x32xf32>
    %266 = vector.extract_strided_slice %256 {offsets = [0, 3, 0, 0], sizes = [1, 1, 8, 32], strides = [1, 1, 1, 1]} : vector<1x4x8x32xf32> to vector<1x1x8x32xf32>
    %267 = vector.shape_cast %266 : vector<1x1x8x32xf32> to vector<1x8x32xf32>
    %268 = vector.shape_cast %267 : vector<1x8x32xf32> to vector<8x32xf32>
    %269 = tpu.concatenate %259, %262, %265, %268 in 1 : vector<8x32xf32>, vector<8x32xf32>, vector<8x32xf32>, vector<8x32xf32> -> vector<8x128xf32>
    %270 = arith.truncf %269 : vector<8x128xf32> to vector<8x128xbf16>
    %cst_66 = arith.constant dense<0.000000e+00> : vector<8x128xf32>
    %271 = tpu.matmul %270, %9, %cst_66 {dimension_numbers = #tpu.dot_dimension_numbers<[1], [0], [0], [1], [0, 0, 1, 1], [], []>} : vector<8x128xbf16>, vector<128x128xbf16>, vector<8x128xf32> -> vector<8x128xf32>
    %272 = arith.addf %271, %21 : vector<8x128xf32>
    %273 = arith.addf %189, %272 : vector<8x128xf32>
    %cst_67 = arith.constant dense<0.000000e+00> : vector<8xf32>
    %274 = vector.multi_reduction <add>, %273, %cst_67 [1] : vector<8x128xf32> to vector<8xf32>
    %275 = vector.shape_cast %274 : vector<8xf32> to vector<8x1xf32>
    %cst_68 = arith.constant 1.280000e+02 : f32
    %276 = vector.broadcast %cst_68 : f32 to vector<8x1xf32>
    %277 = arith.divf %275, %276 : vector<8x1xf32>
    %278 = vector.broadcast %277 : vector<8x1xf32> to vector<8x128xf32>
    %279 = arith.subf %273, %278 : vector<8x128xf32>
    %280 = arith.mulf %279, %279 : vector<8x128xf32>
    %cst_69 = arith.constant dense<0.000000e+00> : vector<8xf32>
    %281 = vector.multi_reduction <add>, %280, %cst_69 [1] : vector<8x128xf32> to vector<8xf32>
    %282 = vector.shape_cast %281 : vector<8xf32> to vector<8x1xf32>
    %cst_70 = arith.constant 1.280000e+02 : f32
    %283 = vector.broadcast %cst_70 : f32 to vector<8x1xf32>
    %284 = arith.divf %282, %283 : vector<8x1xf32>
    %285 = vector.broadcast %277 : vector<8x1xf32> to vector<8x128xf32>
    %286 = arith.subf %273, %285 : vector<8x128xf32>
    %cst_71 = arith.constant 9.99999996E-13 : f32
    %287 = vector.broadcast %cst_71 : f32 to vector<8x1xf32>
    %288 = arith.addf %284, %287 : vector<8x1xf32>
    %289 = math.rsqrt %288 : vector<8x1xf32>
    %290 = vector.broadcast %289 : vector<8x1xf32> to vector<8x128xf32>
    %291 = arith.mulf %286, %290 : vector<8x128xf32>
    %292 = arith.mulf %291, %33 : vector<8x128xf32>
    %293 = arith.addf %292, %37 : vector<8x128xf32>
    %294 = arith.truncf %293 : vector<8x128xf32> to vector<8x128xbf16>
    %cst_72 = arith.constant dense<0.000000e+00> : vector<8x512xf32>
    %295 = tpu.matmul %294, %11, %cst_72 {dimension_numbers = #tpu.dot_dimension_numbers<[1], [0], [0], [1], [0, 0, 1, 1], [], []>} : vector<8x128xbf16>, vector<128x512xbf16>, vector<8x512xf32> -> vector<8x512xf32>
    %296 = arith.addf %295, %25 : vector<8x512xf32>
    %297 = arith.mulf %296, %296 : vector<8x512xf32>
    %298 = arith.mulf %296, %297 : vector<8x512xf32>
    %cst_73 = arith.constant 4.471500e-02 : f32
    %299 = vector.broadcast %cst_73 : f32 to vector<8x512xf32>
    %300 = arith.mulf %299, %298 : vector<8x512xf32>
    %301 = arith.addf %296, %300 : vector<8x512xf32>
    %cst_74 = arith.constant 0.797884583 : f32
    %302 = vector.broadcast %cst_74 : f32 to vector<8x512xf32>
    %303 = arith.mulf %302, %301 : vector<8x512xf32>
    %304 = math.tanh %303 : vector<8x512xf32>
    %cst_75 = arith.constant 1.000000e+00 : f32
    %305 = vector.broadcast %cst_75 : f32 to vector<8x512xf32>
    %306 = arith.addf %305, %304 : vector<8x512xf32>
    %cst_76 = arith.constant 5.000000e-01 : f32
    %307 = vector.broadcast %cst_76 : f32 to vector<8x512xf32>
    %308 = arith.mulf %307, %306 : vector<8x512xf32>
    %309 = arith.mulf %296, %308 : vector<8x512xf32>
    %310 = arith.truncf %309 : vector<8x512xf32> to vector<8x512xbf16>
    %cst_77 = arith.constant dense<0.000000e+00> : vector<8x128xf32>
    %311 = tpu.matmul %310, %13, %cst_77 {dimension_numbers = #tpu.dot_dimension_numbers<[1], [0], [0], [1], [0, 0, 1, 1], [], []>} : vector<8x512xbf16>, vector<512x128xbf16>, vector<8x128xf32> -> vector<8x128xf32>
    %312 = arith.addf %311, %29 : vector<8x128xf32>
    %313 = arith.addf %293, %312 : vector<8x128xf32>
    %cst_78 = arith.constant dense<0.000000e+00> : vector<8xf32>
    %314 = vector.multi_reduction <add>, %313, %cst_78 [1] : vector<8x128xf32> to vector<8xf32>
    %315 = vector.shape_cast %314 : vector<8xf32> to vector<8x1xf32>
    %cst_79 = arith.constant 1.280000e+02 : f32
    %316 = vector.broadcast %cst_79 : f32 to vector<8x1xf32>
    %317 = arith.divf %315, %316 : vector<8x1xf32>
    %318 = vector.broadcast %317 : vector<8x1xf32> to vector<8x128xf32>
    %319 = arith.subf %313, %318 : vector<8x128xf32>
    %320 = arith.mulf %319, %319 : vector<8x128xf32>
    %cst_80 = arith.constant dense<0.000000e+00> : vector<8xf32>
    %321 = vector.multi_reduction <add>, %320, %cst_80 [1] : vector<8x128xf32> to vector<8xf32>
    %322 = vector.shape_cast %321 : vector<8xf32> to vector<8x1xf32>
    %cst_81 = arith.constant 1.280000e+02 : f32
    %323 = vector.broadcast %cst_81 : f32 to vector<8x1xf32>
    %324 = arith.divf %322, %323 : vector<8x1xf32>
    %325 = vector.broadcast %317 : vector<8x1xf32> to vector<8x128xf32>
    %326 = arith.subf %313, %325 : vector<8x128xf32>
    %cst_82 = arith.constant 9.99999996E-13 : f32
    %327 = vector.broadcast %cst_82 : f32 to vector<8x1xf32>
    %328 = arith.addf %324, %327 : vector<8x1xf32>
    %329 = math.rsqrt %328 : vector<8x1xf32>
    %330 = vector.broadcast %329 : vector<8x1xf32> to vector<8x128xf32>
    %331 = arith.mulf %326, %330 : vector<8x128xf32>
    %332 = arith.mulf %331, %41 : vector<8x128xf32>
    %333 = arith.addf %332, %45 : vector<8x128xf32>
    %334 = arith.truncf %333 : vector<8x128xf32> to vector<8x128xbf16>
    %cst_83 = arith.constant dense<0.000000e+00> : vector<8x384xf32>
    %335 = tpu.matmul %334, %7, %cst_83 {dimension_numbers = #tpu.dot_dimension_numbers<[1], [0], [0], [1], [0, 0, 1, 1], [], []>} : vector<8x128xbf16>, vector<128x384xbf16>, vector<8x384xf32> -> vector<8x384xf32>
    %336 = arith.addf %335, %17 : vector<8x384xf32>
    %337 = vector.extract_strided_slice %336 {offsets = [0, 0], sizes = [8, 128], strides = [1, 1]} : vector<8x384xf32> to vector<8x128xf32>
    %338 = vector.extract_strided_slice %337 {offsets = [0, 0], sizes = [8, 32], strides = [1, 1]} : vector<8x128xf32> to vector<8x32xf32>
    %339 = vector.shape_cast %338 : vector<8x32xf32> to vector<1x8x32xf32>
    %340 = vector.extract_strided_slice %337 {offsets = [0, 32], sizes = [8, 32], strides = [1, 1]} : vector<8x128xf32> to vector<8x32xf32>
    %341 = vector.shape_cast %340 : vector<8x32xf32> to vector<1x8x32xf32>
    %342 = vector.extract_strided_slice %337 {offsets = [0, 64], sizes = [8, 32], strides = [1, 1]} : vector<8x128xf32> to vector<8x32xf32>
    %343 = vector.shape_cast %342 : vector<8x32xf32> to vector<1x8x32xf32>
    %344 = vector.extract_strided_slice %337 {offsets = [0, 96], sizes = [8, 32], strides = [1, 1]} : vector<8x128xf32> to vector<8x32xf32>
    %345 = vector.shape_cast %344 : vector<8x32xf32> to vector<1x8x32xf32>
    %346 = vector.shape_cast %339 : vector<1x8x32xf32> to vector<1x1x8x32xf32>
    %347 = vector.shape_cast %341 : vector<1x8x32xf32> to vector<1x1x8x32xf32>
    %348 = vector.shape_cast %343 : vector<1x8x32xf32> to vector<1x1x8x32xf32>
    %349 = vector.shape_cast %345 : vector<1x8x32xf32> to vector<1x1x8x32xf32>
    %350 = tpu.concatenate %346, %347, %348, %349 in 1 : vector<1x1x8x32xf32>, vector<1x1x8x32xf32>, vector<1x1x8x32xf32>, vector<1x1x8x32xf32> -> vector<1x4x8x32xf32>
    %351 = vector.shape_cast %350 : vector<1x4x8x32xf32> to vector<4x8x32xf32>
    %352 = arith.truncf %351 : vector<4x8x32xf32> to vector<4x8x32xbf16>
    %353 = vector.extract_strided_slice %336 {offsets = [0, 128], sizes = [8, 128], strides = [1, 1]} : vector<8x384xf32> to vector<8x128xf32>
    %354 = vector.extract_strided_slice %353 {offsets = [0, 0], sizes = [8, 32], strides = [1, 1]} : vector<8x128xf32> to vector<8x32xf32>
    %355 = vector.shape_cast %354 : vector<8x32xf32> to vector<1x8x32xf32>
    %356 = vector.extract_strided_slice %353 {offsets = [0, 32], sizes = [8, 32], strides = [1, 1]} : vector<8x128xf32> to vector<8x32xf32>
    %357 = vector.shape_cast %356 : vector<8x32xf32> to vector<1x8x32xf32>
    %358 = vector.extract_strided_slice %353 {offsets = [0, 64], sizes = [8, 32], strides = [1, 1]} : vector<8x128xf32> to vector<8x32xf32>
    %359 = vector.shape_cast %358 : vector<8x32xf32> to vector<1x8x32xf32>
    %360 = vector.extract_strided_slice %353 {offsets = [0, 96], sizes = [8, 32], strides = [1, 1]} : vector<8x128xf32> to vector<8x32xf32>
    %361 = vector.shape_cast %360 : vector<8x32xf32> to vector<1x8x32xf32>
    %362 = vector.shape_cast %355 : vector<1x8x32xf32> to vector<1x1x8x32xf32>
    %363 = vector.shape_cast %357 : vector<1x8x32xf32> to vector<1x1x8x32xf32>
    %364 = vector.shape_cast %359 : vector<1x8x32xf32> to vector<1x1x8x32xf32>
    %365 = vector.shape_cast %361 : vector<1x8x32xf32> to vector<1x1x8x32xf32>
    %366 = tpu.concatenate %362, %363, %364, %365 in 1 : vector<1x1x8x32xf32>, vector<1x1x8x32xf32>, vector<1x1x8x32xf32>, vector<1x1x8x32xf32> -> vector<1x4x8x32xf32>
    %367 = vector.shape_cast %366 : vector<1x4x8x32xf32> to vector<4x8x32xf32>
    %368 = arith.truncf %367 : vector<4x8x32xf32> to vector<4x8x32xbf16>
    %369 = vector.extract_strided_slice %336 {offsets = [0, 256], sizes = [8, 128], strides = [1, 1]} : vector<8x384xf32> to vector<8x128xf32>
    %370 = vector.extract_strided_slice %369 {offsets = [0, 0], sizes = [8, 32], strides = [1, 1]} : vector<8x128xf32> to vector<8x32xf32>
    %371 = vector.shape_cast %370 : vector<8x32xf32> to vector<1x8x32xf32>
    %372 = vector.extract_strided_slice %369 {offsets = [0, 32], sizes = [8, 32], strides = [1, 1]} : vector<8x128xf32> to vector<8x32xf32>
    %373 = vector.shape_cast %372 : vector<8x32xf32> to vector<1x8x32xf32>
    %374 = vector.extract_strided_slice %369 {offsets = [0, 64], sizes = [8, 32], strides = [1, 1]} : vector<8x128xf32> to vector<8x32xf32>
    %375 = vector.shape_cast %374 : vector<8x32xf32> to vector<1x8x32xf32>
    %376 = vector.extract_strided_slice %369 {offsets = [0, 96], sizes = [8, 32], strides = [1, 1]} : vector<8x128xf32> to vector<8x32xf32>
    %377 = vector.shape_cast %376 : vector<8x32xf32> to vector<1x8x32xf32>
    %378 = vector.shape_cast %371 : vector<1x8x32xf32> to vector<1x1x8x32xf32>
    %379 = vector.shape_cast %373 : vector<1x8x32xf32> to vector<1x1x8x32xf32>
    %380 = vector.shape_cast %375 : vector<1x8x32xf32> to vector<1x1x8x32xf32>
    %381 = vector.shape_cast %377 : vector<1x8x32xf32> to vector<1x1x8x32xf32>
    %382 = tpu.concatenate %378, %379, %380, %381 in 1 : vector<1x1x8x32xf32>, vector<1x1x8x32xf32>, vector<1x1x8x32xf32>, vector<1x1x8x32xf32> -> vector<1x4x8x32xf32>
    %383 = vector.shape_cast %382 : vector<1x4x8x32xf32> to vector<4x8x32xf32>
    %384 = arith.truncf %383 : vector<4x8x32xf32> to vector<4x8x32xbf16>
    %385 = tpu.transpose %368, [0, 2, 1] : vector<4x8x32xbf16> -> vector<4x32x8xbf16>
    "tpu.trace_start"() <{level = 10 : i32, message = "bqd,bdk->bqk"}> : () -> ()
    %cst_84 = arith.constant dense<0.000000e+00> : vector<4x8x8xf32>
    %386 = tpu.matmul %352, %385, %cst_84 {dimension_numbers = #tpu.dot_dimension_numbers<[2], [1], [1], [2], [0, 0, 0, 1, 1, 2], [0], [0]>} : vector<4x8x32xbf16>, vector<4x32x8xbf16>, vector<4x8x8xf32> -> vector<4x8x8xf32>
    "tpu.trace_stop"() : () -> ()
    %387 = arith.addf %386, %5 : vector<4x8x8xf32>
    %cst_85 = arith.constant dense<0xFF800000> : vector<4x8xf32>
    %388 = vector.multi_reduction <maximumf>, %387, %cst_85 [2] : vector<4x8x8xf32> to vector<4x8xf32>
    %389 = vector.shape_cast %388 : vector<4x8xf32> to vector<4x8x1xf32>
    %390 = vector.broadcast %389 : vector<4x8x1xf32> to vector<4x8x8xf32>
    %391 = arith.subf %387, %390 : vector<4x8x8xf32>
    %392 = math.exp %391 : vector<4x8x8xf32>
    %cst_86 = arith.constant dense<0.000000e+00> : vector<4x8xf32>
    %393 = vector.multi_reduction <add>, %392, %cst_86 [2] : vector<4x8x8xf32> to vector<4x8xf32>
    %394 = vector.shape_cast %393 : vector<4x8xf32> to vector<4x8x1xf32>
    %395 = tpu.reciprocal %394 {approx = true} : vector<4x8x1xf32> -> vector<4x8x1xf32>
    %396 = vector.broadcast %395 : vector<4x8x1xf32> to vector<4x8x8xf32>
    %397 = arith.mulf %392, %396 : vector<4x8x8xf32>
    %398 = arith.truncf %397 : vector<4x8x8xf32> to vector<4x8x8xbf16>
    "tpu.trace_start"() <{level = 10 : i32, message = "bqk,bkd->bqd"}> : () -> ()
    %cst_87 = arith.constant dense<0.000000e+00> : vector<4x8x32xf32>
    %399 = tpu.matmul %398, %384, %cst_87 {dimension_numbers = #tpu.dot_dimension_numbers<[2], [1], [1], [2], [0, 0, 0, 1, 1, 2], [0], [0]>} : vector<4x8x8xbf16>, vector<4x8x32xbf16>, vector<4x8x32xf32> -> vector<4x8x32xf32>
    "tpu.trace_stop"() : () -> ()
    %400 = vector.shape_cast %399 : vector<4x8x32xf32> to vector<1x4x8x32xf32>
    %401 = vector.extract_strided_slice %400 {offsets = [0, 0, 0, 0], sizes = [1, 1, 8, 32], strides = [1, 1, 1, 1]} : vector<1x4x8x32xf32> to vector<1x1x8x32xf32>
    %402 = vector.shape_cast %401 : vector<1x1x8x32xf32> to vector<1x8x32xf32>
    %403 = vector.shape_cast %402 : vector<1x8x32xf32> to vector<8x32xf32>
    %404 = vector.extract_strided_slice %400 {offsets = [0, 1, 0, 0], sizes = [1, 1, 8, 32], strides = [1, 1, 1, 1]} : vector<1x4x8x32xf32> to vector<1x1x8x32xf32>
    %405 = vector.shape_cast %404 : vector<1x1x8x32xf32> to vector<1x8x32xf32>
    %406 = vector.shape_cast %405 : vector<1x8x32xf32> to vector<8x32xf32>
    %407 = vector.extract_strided_slice %400 {offsets = [0, 2, 0, 0], sizes = [1, 1, 8, 32], strides = [1, 1, 1, 1]} : vector<1x4x8x32xf32> to vector<1x1x8x32xf32>
    %408 = vector.shape_cast %407 : vector<1x1x8x32xf32> to vector<1x8x32xf32>
    %409 = vector.shape_cast %408 : vector<1x8x32xf32> to vector<8x32xf32>
    %410 = vector.extract_strided_slice %400 {offsets = [0, 3, 0, 0], sizes = [1, 1, 8, 32], strides = [1, 1, 1, 1]} : vector<1x4x8x32xf32> to vector<1x1x8x32xf32>
    %411 = vector.shape_cast %410 : vector<1x1x8x32xf32> to vector<1x8x32xf32>
    %412 = vector.shape_cast %411 : vector<1x8x32xf32> to vector<8x32xf32>
    %413 = tpu.concatenate %403, %406, %409, %412 in 1 : vector<8x32xf32>, vector<8x32xf32>, vector<8x32xf32>, vector<8x32xf32> -> vector<8x128xf32>
    %414 = arith.truncf %413 : vector<8x128xf32> to vector<8x128xbf16>
    %cst_88 = arith.constant dense<0.000000e+00> : vector<8x128xf32>
    %415 = tpu.matmul %414, %9, %cst_88 {dimension_numbers = #tpu.dot_dimension_numbers<[1], [0], [0], [1], [0, 0, 1, 1], [], []>} : vector<8x128xbf16>, vector<128x128xbf16>, vector<8x128xf32> -> vector<8x128xf32>
    %416 = arith.addf %415, %21 : vector<8x128xf32>
    %417 = arith.addf %333, %416 : vector<8x128xf32>
    %cst_89 = arith.constant dense<0.000000e+00> : vector<8xf32>
    %418 = vector.multi_reduction <add>, %417, %cst_89 [1] : vector<8x128xf32> to vector<8xf32>
    %419 = vector.shape_cast %418 : vector<8xf32> to vector<8x1xf32>
    %cst_90 = arith.constant 1.280000e+02 : f32
    %420 = vector.broadcast %cst_90 : f32 to vector<8x1xf32>
    %421 = arith.divf %419, %420 : vector<8x1xf32>
    %422 = vector.broadcast %421 : vector<8x1xf32> to vector<8x128xf32>
    %423 = arith.subf %417, %422 : vector<8x128xf32>
    %424 = arith.mulf %423, %423 : vector<8x128xf32>
    %cst_91 = arith.constant dense<0.000000e+00> : vector<8xf32>
    %425 = vector.multi_reduction <add>, %424, %cst_91 [1] : vector<8x128xf32> to vector<8xf32>
    %426 = vector.shape_cast %425 : vector<8xf32> to vector<8x1xf32>
    %cst_92 = arith.constant 1.280000e+02 : f32
    %427 = vector.broadcast %cst_92 : f32 to vector<8x1xf32>
    %428 = arith.divf %426, %427 : vector<8x1xf32>
    %429 = vector.broadcast %421 : vector<8x1xf32> to vector<8x128xf32>
    %430 = arith.subf %417, %429 : vector<8x128xf32>
    %cst_93 = arith.constant 9.99999996E-13 : f32
    %431 = vector.broadcast %cst_93 : f32 to vector<8x1xf32>
    %432 = arith.addf %428, %431 : vector<8x1xf32>
    %433 = math.rsqrt %432 : vector<8x1xf32>
    %434 = vector.broadcast %433 : vector<8x1xf32> to vector<8x128xf32>
    %435 = arith.mulf %430, %434 : vector<8x128xf32>
    %436 = arith.mulf %435, %33 : vector<8x128xf32>
    %437 = arith.addf %436, %37 : vector<8x128xf32>
    %438 = arith.truncf %437 : vector<8x128xf32> to vector<8x128xbf16>
    %cst_94 = arith.constant dense<0.000000e+00> : vector<8x512xf32>
    %439 = tpu.matmul %438, %11, %cst_94 {dimension_numbers = #tpu.dot_dimension_numbers<[1], [0], [0], [1], [0, 0, 1, 1], [], []>} : vector<8x128xbf16>, vector<128x512xbf16>, vector<8x512xf32> -> vector<8x512xf32>
    %440 = arith.addf %439, %25 : vector<8x512xf32>
    %441 = arith.mulf %440, %440 : vector<8x512xf32>
    %442 = arith.mulf %440, %441 : vector<8x512xf32>
    %cst_95 = arith.constant 4.471500e-02 : f32
    %443 = vector.broadcast %cst_95 : f32 to vector<8x512xf32>
    %444 = arith.mulf %443, %442 : vector<8x512xf32>
    %445 = arith.addf %440, %444 : vector<8x512xf32>
    %cst_96 = arith.constant 0.797884583 : f32
    %446 = vector.broadcast %cst_96 : f32 to vector<8x512xf32>
    %447 = arith.mulf %446, %445 : vector<8x512xf32>
    %448 = math.tanh %447 : vector<8x512xf32>
    %cst_97 = arith.constant 1.000000e+00 : f32
    %449 = vector.broadcast %cst_97 : f32 to vector<8x512xf32>
    %450 = arith.addf %449, %448 : vector<8x512xf32>
    %cst_98 = arith.constant 5.000000e-01 : f32
    %451 = vector.broadcast %cst_98 : f32 to vector<8x512xf32>
    %452 = arith.mulf %451, %450 : vector<8x512xf32>
    %453 = arith.mulf %440, %452 : vector<8x512xf32>
    %454 = arith.truncf %453 : vector<8x512xf32> to vector<8x512xbf16>
    %cst_99 = arith.constant dense<0.000000e+00> : vector<8x128xf32>
    %455 = tpu.matmul %454, %13, %cst_99 {dimension_numbers = #tpu.dot_dimension_numbers<[1], [0], [0], [1], [0, 0, 1, 1], [], []>} : vector<8x512xbf16>, vector<512x128xbf16>, vector<8x128xf32> -> vector<8x128xf32>
    %456 = arith.addf %455, %29 : vector<8x128xf32>
    %457 = arith.addf %437, %456 : vector<8x128xf32>
    %cst_100 = arith.constant dense<0.000000e+00> : vector<8xf32>
    %458 = vector.multi_reduction <add>, %457, %cst_100 [1] : vector<8x128xf32> to vector<8xf32>
    %459 = vector.shape_cast %458 : vector<8xf32> to vector<8x1xf32>
    %cst_101 = arith.constant 1.280000e+02 : f32
    %460 = vector.broadcast %cst_101 : f32 to vector<8x1xf32>
    %461 = arith.divf %459, %460 : vector<8x1xf32>
    %462 = vector.broadcast %461 : vector<8x1xf32> to vector<8x128xf32>
    %463 = arith.subf %457, %462 : vector<8x128xf32>
    %464 = arith.mulf %463, %463 : vector<8x128xf32>
    %cst_102 = arith.constant dense<0.000000e+00> : vector<8xf32>
    %465 = vector.multi_reduction <add>, %464, %cst_102 [1] : vector<8x128xf32> to vector<8xf32>
    %466 = vector.shape_cast %465 : vector<8xf32> to vector<8x1xf32>
    %cst_103 = arith.constant 1.280000e+02 : f32
    %467 = vector.broadcast %cst_103 : f32 to vector<8x1xf32>
    %468 = arith.divf %466, %467 : vector<8x1xf32>
    %469 = vector.broadcast %461 : vector<8x1xf32> to vector<8x128xf32>
    %470 = arith.subf %457, %469 : vector<8x128xf32>
    %cst_104 = arith.constant 9.99999996E-13 : f32
    %471 = vector.broadcast %cst_104 : f32 to vector<8x1xf32>
    %472 = arith.addf %468, %471 : vector<8x1xf32>
    %473 = math.rsqrt %472 : vector<8x1xf32>
    %474 = vector.broadcast %473 : vector<8x1xf32> to vector<8x128xf32>
    %475 = arith.mulf %470, %474 : vector<8x128xf32>
    %476 = arith.mulf %475, %41 : vector<8x128xf32>
    %477 = arith.addf %476, %45 : vector<8x128xf32>
    %478 = arith.truncf %477 : vector<8x128xf32> to vector<8x128xbf16>
    %cst_105 = arith.constant dense<0.000000e+00> : vector<8x384xf32>
    %479 = tpu.matmul %478, %7, %cst_105 {dimension_numbers = #tpu.dot_dimension_numbers<[1], [0], [0], [1], [0, 0, 1, 1], [], []>} : vector<8x128xbf16>, vector<128x384xbf16>, vector<8x384xf32> -> vector<8x384xf32>
    %480 = arith.addf %479, %17 : vector<8x384xf32>
    %481 = vector.extract_strided_slice %480 {offsets = [0, 0], sizes = [8, 128], strides = [1, 1]} : vector<8x384xf32> to vector<8x128xf32>
    %482 = vector.extract_strided_slice %481 {offsets = [0, 0], sizes = [8, 32], strides = [1, 1]} : vector<8x128xf32> to vector<8x32xf32>
    %483 = vector.shape_cast %482 : vector<8x32xf32> to vector<1x8x32xf32>
    %484 = vector.extract_strided_slice %481 {offsets = [0, 32], sizes = [8, 32], strides = [1, 1]} : vector<8x128xf32> to vector<8x32xf32>
    %485 = vector.shape_cast %484 : vector<8x32xf32> to vector<1x8x32xf32>
    %486 = vector.extract_strided_slice %481 {offsets = [0, 64], sizes = [8, 32], strides = [1, 1]} : vector<8x128xf32> to vector<8x32xf32>
    %487 = vector.shape_cast %486 : vector<8x32xf32> to vector<1x8x32xf32>
    %488 = vector.extract_strided_slice %481 {offsets = [0, 96], sizes = [8, 32], strides = [1, 1]} : vector<8x128xf32> to vector<8x32xf32>
    %489 = vector.shape_cast %488 : vector<8x32xf32> to vector<1x8x32xf32>
    %490 = vector.shape_cast %483 : vector<1x8x32xf32> to vector<1x1x8x32xf32>
    %491 = vector.shape_cast %485 : vector<1x8x32xf32> to vector<1x1x8x32xf32>
    %492 = vector.shape_cast %487 : vector<1x8x32xf32> to vector<1x1x8x32xf32>
    %493 = vector.shape_cast %489 : vector<1x8x32xf32> to vector<1x1x8x32xf32>
    %494 = tpu.concatenate %490, %491, %492, %493 in 1 : vector<1x1x8x32xf32>, vector<1x1x8x32xf32>, vector<1x1x8x32xf32>, vector<1x1x8x32xf32> -> vector<1x4x8x32xf32>
    %495 = vector.shape_cast %494 : vector<1x4x8x32xf32> to vector<4x8x32xf32>
    %496 = arith.truncf %495 : vector<4x8x32xf32> to vector<4x8x32xbf16>
    %497 = vector.extract_strided_slice %480 {offsets = [0, 128], sizes = [8, 128], strides = [1, 1]} : vector<8x384xf32> to vector<8x128xf32>
    %498 = vector.extract_strided_slice %497 {offsets = [0, 0], sizes = [8, 32], strides = [1, 1]} : vector<8x128xf32> to vector<8x32xf32>
    %499 = vector.shape_cast %498 : vector<8x32xf32> to vector<1x8x32xf32>
    %500 = vector.extract_strided_slice %497 {offsets = [0, 32], sizes = [8, 32], strides = [1, 1]} : vector<8x128xf32> to vector<8x32xf32>
    %501 = vector.shape_cast %500 : vector<8x32xf32> to vector<1x8x32xf32>
    %502 = vector.extract_strided_slice %497 {offsets = [0, 64], sizes = [8, 32], strides = [1, 1]} : vector<8x128xf32> to vector<8x32xf32>
    %503 = vector.shape_cast %502 : vector<8x32xf32> to vector<1x8x32xf32>
    %504 = vector.extract_strided_slice %497 {offsets = [0, 96], sizes = [8, 32], strides = [1, 1]} : vector<8x128xf32> to vector<8x32xf32>
    %505 = vector.shape_cast %504 : vector<8x32xf32> to vector<1x8x32xf32>
    %506 = vector.shape_cast %499 : vector<1x8x32xf32> to vector<1x1x8x32xf32>
    %507 = vector.shape_cast %501 : vector<1x8x32xf32> to vector<1x1x8x32xf32>
    %508 = vector.shape_cast %503 : vector<1x8x32xf32> to vector<1x1x8x32xf32>
    %509 = vector.shape_cast %505 : vector<1x8x32xf32> to vector<1x1x8x32xf32>
    %510 = tpu.concatenate %506, %507, %508, %509 in 1 : vector<1x1x8x32xf32>, vector<1x1x8x32xf32>, vector<1x1x8x32xf32>, vector<1x1x8x32xf32> -> vector<1x4x8x32xf32>
    %511 = vector.shape_cast %510 : vector<1x4x8x32xf32> to vector<4x8x32xf32>
    %512 = arith.truncf %511 : vector<4x8x32xf32> to vector<4x8x32xbf16>
    %513 = vector.extract_strided_slice %480 {offsets = [0, 256], sizes = [8, 128], strides = [1, 1]} : vector<8x384xf32> to vector<8x128xf32>
    %514 = vector.extract_strided_slice %513 {offsets = [0, 0], sizes = [8, 32], strides = [1, 1]} : vector<8x128xf32> to vector<8x32xf32>
    %515 = vector.shape_cast %514 : vector<8x32xf32> to vector<1x8x32xf32>
    %516 = vector.extract_strided_slice %513 {offsets = [0, 32], sizes = [8, 32], strides = [1, 1]} : vector<8x128xf32> to vector<8x32xf32>
    %517 = vector.shape_cast %516 : vector<8x32xf32> to vector<1x8x32xf32>
    %518 = vector.extract_strided_slice %513 {offsets = [0, 64], sizes = [8, 32], strides = [1, 1]} : vector<8x128xf32> to vector<8x32xf32>
    %519 = vector.shape_cast %518 : vector<8x32xf32> to vector<1x8x32xf32>
    %520 = vector.extract_strided_slice %513 {offsets = [0, 96], sizes = [8, 32], strides = [1, 1]} : vector<8x128xf32> to vector<8x32xf32>
    %521 = vector.shape_cast %520 : vector<8x32xf32> to vector<1x8x32xf32>
    %522 = vector.shape_cast %515 : vector<1x8x32xf32> to vector<1x1x8x32xf32>
    %523 = vector.shape_cast %517 : vector<1x8x32xf32> to vector<1x1x8x32xf32>
    %524 = vector.shape_cast %519 : vector<1x8x32xf32> to vector<1x1x8x32xf32>
    %525 = vector.shape_cast %521 : vector<1x8x32xf32> to vector<1x1x8x32xf32>
    %526 = tpu.concatenate %522, %523, %524, %525 in 1 : vector<1x1x8x32xf32>, vector<1x1x8x32xf32>, vector<1x1x8x32xf32>, vector<1x1x8x32xf32> -> vector<1x4x8x32xf32>
    %527 = vector.shape_cast %526 : vector<1x4x8x32xf32> to vector<4x8x32xf32>
    %528 = arith.truncf %527 : vector<4x8x32xf32> to vector<4x8x32xbf16>
    %529 = tpu.transpose %512, [0, 2, 1] : vector<4x8x32xbf16> -> vector<4x32x8xbf16>
    "tpu.trace_start"() <{level = 10 : i32, message = "bqd,bdk->bqk"}> : () -> ()
    %cst_106 = arith.constant dense<0.000000e+00> : vector<4x8x8xf32>
    %530 = tpu.matmul %496, %529, %cst_106 {dimension_numbers = #tpu.dot_dimension_numbers<[2], [1], [1], [2], [0, 0, 0, 1, 1, 2], [0], [0]>} : vector<4x8x32xbf16>, vector<4x32x8xbf16>, vector<4x8x8xf32> -> vector<4x8x8xf32>
    "tpu.trace_stop"() : () -> ()
    %531 = arith.addf %530, %5 : vector<4x8x8xf32>
    %cst_107 = arith.constant dense<0xFF800000> : vector<4x8xf32>
    %532 = vector.multi_reduction <maximumf>, %531, %cst_107 [2] : vector<4x8x8xf32> to vector<4x8xf32>
    %533 = vector.shape_cast %532 : vector<4x8xf32> to vector<4x8x1xf32>
    %534 = vector.broadcast %533 : vector<4x8x1xf32> to vector<4x8x8xf32>
    %535 = arith.subf %531, %534 : vector<4x8x8xf32>
    %536 = math.exp %535 : vector<4x8x8xf32>
    %cst_108 = arith.constant dense<0.000000e+00> : vector<4x8xf32>
    %537 = vector.multi_reduction <add>, %536, %cst_108 [2] : vector<4x8x8xf32> to vector<4x8xf32>
    %538 = vector.shape_cast %537 : vector<4x8xf32> to vector<4x8x1xf32>
    %539 = tpu.reciprocal %538 {approx = true} : vector<4x8x1xf32> -> vector<4x8x1xf32>
    %540 = vector.broadcast %539 : vector<4x8x1xf32> to vector<4x8x8xf32>
    %541 = arith.mulf %536, %540 : vector<4x8x8xf32>
    %542 = arith.truncf %541 : vector<4x8x8xf32> to vector<4x8x8xbf16>
    "tpu.trace_start"() <{level = 10 : i32, message = "bqk,bkd->bqd"}> : () -> ()
    %cst_109 = arith.constant dense<0.000000e+00> : vector<4x8x32xf32>
    %543 = tpu.matmul %542, %528, %cst_109 {dimension_numbers = #tpu.dot_dimension_numbers<[2], [1], [1], [2], [0, 0, 0, 1, 1, 2], [0], [0]>} : vector<4x8x8xbf16>, vector<4x8x32xbf16>, vector<4x8x32xf32> -> vector<4x8x32xf32>
    "tpu.trace_stop"() : () -> ()
    %544 = vector.shape_cast %543 : vector<4x8x32xf32> to vector<1x4x8x32xf32>
    %545 = vector.extract_strided_slice %544 {offsets = [0, 0, 0, 0], sizes = [1, 1, 8, 32], strides = [1, 1, 1, 1]} : vector<1x4x8x32xf32> to vector<1x1x8x32xf32>
    %546 = vector.shape_cast %545 : vector<1x1x8x32xf32> to vector<1x8x32xf32>
    %547 = vector.shape_cast %546 : vector<1x8x32xf32> to vector<8x32xf32>
    %548 = vector.extract_strided_slice %544 {offsets = [0, 1, 0, 0], sizes = [1, 1, 8, 32], strides = [1, 1, 1, 1]} : vector<1x4x8x32xf32> to vector<1x1x8x32xf32>
    %549 = vector.shape_cast %548 : vector<1x1x8x32xf32> to vector<1x8x32xf32>
    %550 = vector.shape_cast %549 : vector<1x8x32xf32> to vector<8x32xf32>
    %551 = vector.extract_strided_slice %544 {offsets = [0, 2, 0, 0], sizes = [1, 1, 8, 32], strides = [1, 1, 1, 1]} : vector<1x4x8x32xf32> to vector<1x1x8x32xf32>
    %552 = vector.shape_cast %551 : vector<1x1x8x32xf32> to vector<1x8x32xf32>
    %553 = vector.shape_cast %552 : vector<1x8x32xf32> to vector<8x32xf32>
    %554 = vector.extract_strided_slice %544 {offsets = [0, 3, 0, 0], sizes = [1, 1, 8, 32], strides = [1, 1, 1, 1]} : vector<1x4x8x32xf32> to vector<1x1x8x32xf32>
    %555 = vector.shape_cast %554 : vector<1x1x8x32xf32> to vector<1x8x32xf32>
    %556 = vector.shape_cast %555 : vector<1x8x32xf32> to vector<8x32xf32>
    %557 = tpu.concatenate %547, %550, %553, %556 in 1 : vector<8x32xf32>, vector<8x32xf32>, vector<8x32xf32>, vector<8x32xf32> -> vector<8x128xf32>
    %558 = arith.truncf %557 : vector<8x128xf32> to vector<8x128xbf16>
    %cst_110 = arith.constant dense<0.000000e+00> : vector<8x128xf32>
    %559 = tpu.matmul %558, %9, %cst_110 {dimension_numbers = #tpu.dot_dimension_numbers<[1], [0], [0], [1], [0, 0, 1, 1], [], []>} : vector<8x128xbf16>, vector<128x128xbf16>, vector<8x128xf32> -> vector<8x128xf32>
    %560 = arith.addf %559, %21 : vector<8x128xf32>
    %561 = arith.addf %477, %560 : vector<8x128xf32>
    %cst_111 = arith.constant dense<0.000000e+00> : vector<8xf32>
    %562 = vector.multi_reduction <add>, %561, %cst_111 [1] : vector<8x128xf32> to vector<8xf32>
    %563 = vector.shape_cast %562 : vector<8xf32> to vector<8x1xf32>
    %cst_112 = arith.constant 1.280000e+02 : f32
    %564 = vector.broadcast %cst_112 : f32 to vector<8x1xf32>
    %565 = arith.divf %563, %564 : vector<8x1xf32>
    %566 = vector.broadcast %565 : vector<8x1xf32> to vector<8x128xf32>
    %567 = arith.subf %561, %566 : vector<8x128xf32>
    %568 = arith.mulf %567, %567 : vector<8x128xf32>
    %cst_113 = arith.constant dense<0.000000e+00> : vector<8xf32>
    %569 = vector.multi_reduction <add>, %568, %cst_113 [1] : vector<8x128xf32> to vector<8xf32>
    %570 = vector.shape_cast %569 : vector<8xf32> to vector<8x1xf32>
    %cst_114 = arith.constant 1.280000e+02 : f32
    %571 = vector.broadcast %cst_114 : f32 to vector<8x1xf32>
    %572 = arith.divf %570, %571 : vector<8x1xf32>
    %573 = vector.broadcast %565 : vector<8x1xf32> to vector<8x128xf32>
    %574 = arith.subf %561, %573 : vector<8x128xf32>
    %cst_115 = arith.constant 9.99999996E-13 : f32
    %575 = vector.broadcast %cst_115 : f32 to vector<8x1xf32>
    %576 = arith.addf %572, %575 : vector<8x1xf32>
    %577 = math.rsqrt %576 : vector<8x1xf32>
    %578 = vector.broadcast %577 : vector<8x1xf32> to vector<8x128xf32>
    %579 = arith.mulf %574, %578 : vector<8x128xf32>
    %580 = arith.mulf %579, %33 : vector<8x128xf32>
    %581 = arith.addf %580, %37 : vector<8x128xf32>
    %582 = arith.truncf %581 : vector<8x128xf32> to vector<8x128xbf16>
    %cst_116 = arith.constant dense<0.000000e+00> : vector<8x512xf32>
    %583 = tpu.matmul %582, %11, %cst_116 {dimension_numbers = #tpu.dot_dimension_numbers<[1], [0], [0], [1], [0, 0, 1, 1], [], []>} : vector<8x128xbf16>, vector<128x512xbf16>, vector<8x512xf32> -> vector<8x512xf32>
    %584 = arith.addf %583, %25 : vector<8x512xf32>
    %585 = arith.mulf %584, %584 : vector<8x512xf32>
    %586 = arith.mulf %584, %585 : vector<8x512xf32>
    %cst_117 = arith.constant 4.471500e-02 : f32
    %587 = vector.broadcast %cst_117 : f32 to vector<8x512xf32>
    %588 = arith.mulf %587, %586 : vector<8x512xf32>
    %589 = arith.addf %584, %588 : vector<8x512xf32>
    %cst_118 = arith.constant 0.797884583 : f32
    %590 = vector.broadcast %cst_118 : f32 to vector<8x512xf32>
    %591 = arith.mulf %590, %589 : vector<8x512xf32>
    %592 = math.tanh %591 : vector<8x512xf32>
    %cst_119 = arith.constant 1.000000e+00 : f32
    %593 = vector.broadcast %cst_119 : f32 to vector<8x512xf32>
    %594 = arith.addf %593, %592 : vector<8x512xf32>
    %cst_120 = arith.constant 5.000000e-01 : f32
    %595 = vector.broadcast %cst_120 : f32 to vector<8x512xf32>
    %596 = arith.mulf %595, %594 : vector<8x512xf32>
    %597 = arith.mulf %584, %596 : vector<8x512xf32>
    %598 = arith.truncf %597 : vector<8x512xf32> to vector<8x512xbf16>
    %cst_121 = arith.constant dense<0.000000e+00> : vector<8x128xf32>
    %599 = tpu.matmul %598, %13, %cst_121 {dimension_numbers = #tpu.dot_dimension_numbers<[1], [0], [0], [1], [0, 0, 1, 1], [], []>} : vector<8x512xbf16>, vector<512x128xbf16>, vector<8x128xf32> -> vector<8x128xf32>
    %600 = arith.addf %599, %29 : vector<8x128xf32>
    %601 = arith.addf %581, %600 : vector<8x128xf32>
    %cst_122 = arith.constant dense<0.000000e+00> : vector<8xf32>
    %602 = vector.multi_reduction <add>, %601, %cst_122 [1] : vector<8x128xf32> to vector<8xf32>
    %603 = vector.shape_cast %602 : vector<8xf32> to vector<8x1xf32>
    %cst_123 = arith.constant 1.280000e+02 : f32
    %604 = vector.broadcast %cst_123 : f32 to vector<8x1xf32>
    %605 = arith.divf %603, %604 : vector<8x1xf32>
    %606 = vector.broadcast %605 : vector<8x1xf32> to vector<8x128xf32>
    %607 = arith.subf %601, %606 : vector<8x128xf32>
    %608 = arith.mulf %607, %607 : vector<8x128xf32>
    %cst_124 = arith.constant dense<0.000000e+00> : vector<8xf32>
    %609 = vector.multi_reduction <add>, %608, %cst_124 [1] : vector<8x128xf32> to vector<8xf32>
    %610 = vector.shape_cast %609 : vector<8xf32> to vector<8x1xf32>
    %cst_125 = arith.constant 1.280000e+02 : f32
    %611 = vector.broadcast %cst_125 : f32 to vector<8x1xf32>
    %612 = arith.divf %610, %611 : vector<8x1xf32>
    %613 = vector.broadcast %605 : vector<8x1xf32> to vector<8x128xf32>
    %614 = arith.subf %601, %613 : vector<8x128xf32>
    %cst_126 = arith.constant 9.99999996E-13 : f32
    %615 = vector.broadcast %cst_126 : f32 to vector<8x1xf32>
    %616 = arith.addf %612, %615 : vector<8x1xf32>
    %617 = math.rsqrt %616 : vector<8x1xf32>
    %618 = vector.broadcast %617 : vector<8x1xf32> to vector<8x128xf32>
    %619 = arith.mulf %614, %618 : vector<8x128xf32>
    %620 = arith.mulf %619, %41 : vector<8x128xf32>
    %621 = arith.addf %620, %45 : vector<8x128xf32>
    %c0_127 = arith.constant 0 : index
    %c0_128 = arith.constant 0 : index
    %622 = vector.load %arg15[%c0_127, %c0_128] : memref<8x128xf32, #tpu.memory_space<vmem>>, vector<8x128xf32>
    tpu.vector_store %arg15[%c0_127, %c0_128], %621 {strides = array<i32>} : memref<8x128xf32, #tpu.memory_space<vmem>>, vector<8x128xf32>,
    return
  }
  func.func @transform_0(%arg0: i32) -> (i32, i32) {
    %c0_i32 = arith.constant 0 : i32
    %c0_i32_0 = arith.constant 0 : i32
    return %arg0, %c0_i32 : i32, i32
  }
  func.func @transform_1(%arg0: i32) -> (i32, i32, i32) {
    %c0_i32 = arith.constant 0 : i32
    %c0_i32_0 = arith.constant 0 : i32
    %c0_i32_1 = arith.constant 0 : i32
    return %arg0, %c0_i32, %c0_i32_0 : i32, i32, i32
  }
  func.func @transform_2(%arg0: i32) -> (i32, i32, i32) {
    %c0_i32 = arith.constant 0 : i32
    %c0_i32_0 = arith.constant 0 : i32
    %c0_i32_1 = arith.constant 0 : i32
    %c0_i32_2 = arith.constant 0 : i32
    return %c0_i32, %c0_i32_0, %c0_i32_1 : i32, i32, i32
  }
  func.func @transform_3(%arg0: i32) -> (i32, i32, i32) {
    %c0_i32 = arith.constant 0 : i32
    %c0_i32_0 = arith.constant 0 : i32
    %c0_i32_1 = arith.constant 0 : i32
    %c0_i32_2 = arith.constant 0 : i32
    return %c0_i32, %c0_i32_0, %c0_i32_1 : i32, i32, i32
  }
  func.func @transform_4(%arg0: i32) -> (i32, i32, i32) {
    %c0_i32 = arith.constant 0 : i32
    %c0_i32_0 = arith.constant 0 : i32
    %c0_i32_1 = arith.constant 0 : i32
    %c0_i32_2 = arith.constant 0 : i32
    return %c0_i32, %c0_i32_0, %c0_i32_1 : i32, i32, i32
  }
  func.func @transform_5(%arg0: i32) -> (i32, i32, i32) {
    %c0_i32 = arith.constant 0 : i32
    %c0_i32_0 = arith.constant 0 : i32
    %c0_i32_1 = arith.constant 0 : i32
    %c0_i32_2 = arith.constant 0 : i32
    return %c0_i32, %c0_i32_0, %c0_i32_1 : i32, i32, i32
  }
  func.func @transform_6(%arg0: i32) -> (i32, i32, i32) {
    %c0_i32 = arith.constant 0 : i32
    %c0_i32_0 = arith.constant 0 : i32
    %c0_i32_1 = arith.constant 0 : i32
    %c0_i32_2 = arith.constant 0 : i32
    return %c0_i32, %c0_i32_0, %c0_i32_1 : i32, i32, i32
  }
  func.func @transform_7(%arg0: i32) -> (i32, i32, i32) {
    %c0_i32 = arith.constant 0 : i32
    %c0_i32_0 = arith.constant 0 : i32
    %c0_i32_1 = arith.constant 0 : i32
    %c0_i32_2 = arith.constant 0 : i32
    return %c0_i32, %c0_i32_0, %c0_i32_1 : i32, i32, i32
  }
  func.func @transform_8(%arg0: i32) -> (i32, i32, i32) {
    %c0_i32 = arith.constant 0 : i32
    %c0_i32_0 = arith.constant 0 : i32
    %c0_i32_1 = arith.constant 0 : i32
    %c0_i32_2 = arith.constant 0 : i32
    return %c0_i32, %c0_i32_0, %c0_i32_1 : i32, i32, i32
  }
  func.func @transform_9(%arg0: i32) -> (i32, i32, i32) {
    %c0_i32 = arith.constant 0 : i32
    %c0_i32_0 = arith.constant 0 : i32
    %c0_i32_1 = arith.constant 0 : i32
    %c0_i32_2 = arith.constant 0 : i32
    return %c0_i32, %c0_i32_0, %c0_i32_1 : i32, i32, i32
  }
  func.func @transform_10(%arg0: i32) -> (i32, i32, i32) {
    %c0_i32 = arith.constant 0 : i32
    %c0_i32_0 = arith.constant 0 : i32
    %c0_i32_1 = arith.constant 0 : i32
    %c0_i32_2 = arith.constant 0 : i32
    return %c0_i32, %c0_i32_0, %c0_i32_1 : i32, i32, i32
  }
  func.func @transform_11(%arg0: i32) -> (i32, i32, i32) {
    %c0_i32 = arith.constant 0 : i32
    %c0_i32_0 = arith.constant 0 : i32
    %c0_i32_1 = arith.constant 0 : i32
    %c0_i32_2 = arith.constant 0 : i32
    return %c0_i32, %c0_i32_0, %c0_i32_1 : i32, i32, i32
  }
  func.func @transform_12(%arg0: i32) -> (i32, i32, i32) {
    %c0_i32 = arith.constant 0 : i32
    %c0_i32_0 = arith.constant 0 : i32
    %c0_i32_1 = arith.constant 0 : i32
    %c0_i32_2 = arith.constant 0 : i32
    return %c0_i32, %c0_i32_0, %c0_i32_1 : i32, i32, i32
  }
  func.func @transform_13(%arg0: i32) -> (i32, i32, i32) {
    %c0_i32 = arith.constant 0 : i32
    %c0_i32_0 = arith.constant 0 : i32
    %c0_i32_1 = arith.constant 0 : i32
    %c0_i32_2 = arith.constant 0 : i32
    return %c0_i32, %c0_i32_0, %c0_i32_1 : i32, i32, i32
  }
  func.func @transform_14(%arg0: i32) -> (i32, i32) {
    %c0_i32 = arith.constant 0 : i32
    %c0_i32_0 = arith.constant 0 : i32
    return %arg0, %c0_i32 : i32, i32
  }
}

</mosaic_0001>

<bundles_post_ra>
// kernel: tpu_custom_call.1
= control target key start
LH: loop header
LB: loop body
LE: loop exit
PB: predicated region body
PF: predicated region fallthrough
CT: control target
= control target key end

     0   :  { %s7935_s0 = inlined_call_operand.hbm [shape: f32[16,128], index: 0, kind: input, shape index: {}]   ;;  %s7936_s1 = inlined_call_operand.hbm [shape: f32[2,1,8], index: 1, kind: input, shape index: {}]   ;;  %s7937_s2 = inlined_call_operand.hbm [shape: bf16[1,128,384], index: 2, kind: input, shape index: {}]   ;;  %s7938_s3 = inlined_call_operand.vmem [shape: f32[1,1,384], index: 3, kind: input, shape index: {}]   ;;  %s7939_s4 = inlined_call_operand.hbm [shape: bf16[1,128,128], index: 4, kind: input, shape index: {}]   ;;  %s7940_s5 = inlined_call_operand.vmem [shape: f32[1,1,128], index: 5, kind: input, shape index: {}]   ;;  %s7941_s6 = inlined_call_operand.vmem [shape: f32[1,1,128], index: 6, kind: input, shape index: {}]   ;;  %s7942_s7 = inlined_call_operand.vmem [shape: f32[1,1,128], index: 7, kind: input, shape index: {}]   ;;  %s7943_s8 = inlined_call_operand.hbm [shape: bf16[1,128,512], index: 8, kind: input, shape index: {}]   ;;  %s7944_s9 = inlined_call_operand.vmem [shape: f32[1,1,512], index: 9, kind: input, shape index: {}]   ;;  %s7945_s10 = inlined_call_operand.hbm [shape: bf16[1,512,128], index: 10, kind: input, shape index: {}]   ;;  %s7946_s11 = inlined_call_operand.vmem [shape: f32[1,1,128], index: 11, kind: input, shape index: {}]   ;;  %s7947_s12 = inlined_call_operand.vmem [shape: f32[1,1,128], index: 12, kind: input, shape index: {}]   ;;  %s7948_s13 = inlined_call_operand.vmem [shape: f32[1,1,128], index: 13, kind: input, shape index: {}]   ;;  %s7949_s14 = inlined_call_operand.hbm [shape: f32[16,128], index: 14, kind: output, shape index: {}]  }
   0x1   :  { %8086 = sst [smem:[#allocation90_spill]] %s7935_s0 }
   0x2   :  { %8087 = sst [smem:[#allocation91_spill]] %s7937_s2 }
   0x3   :  { %8088 = sst [smem:[#allocation92_spill]] %s7939_s4 }
   0x4   :  { %8089 = sst [smem:[#allocation93_spill]] %s7943_s8 }
   0x5   :  { %8090 = sst [smem:[#allocation94_spill]] %s7945_s10 }
   0x6   :  { %8091 = sst [smem:[#allocation95_spill]] %s7949_s14 }
   0x7   :  { %19 = vsyncpa [#allocation3], 0 }
   0x8   :  { %21 = vsyncpa [#allocation3 + $0x1], 0 }
   0x9   :  { %22 = vsyncpa [#allocation6], 0 }
   0xa   :  { %24 = vsyncpa [#allocation6 + $0x1], 0 }
   0xb   :  { %25 = vsyncpa [#allocation9], 0 }
   0xc   :  { %26 = vsyncpa [#allocation12], 0 }
   0xd   :  { %27 = vsyncpa [#allocation4], 0 }
   0xe   :  { %29 = vsyncpa [#allocation4 + $0x1], 0  ;;  %s6413_s29 = smov 0   ;;  %s6415_s30 = smov 0  }
   0xf   :  { %s6417_s15 = smov 0   ;;  %s6419_s16 = smov 0  }
  0x10 LB: > { %8092 = sst [smem:[#allocation20_spill]] %s6305_s29  ;;  %s6319_s17 = smov [#allocation7]   ;;  %s6317_s16 = sphi %s6419_s16, %s8354_s16   ;;  %s6313_s15 = sphi %s6417_s15, %s8356_s15   ;;  %s6309_s30 = sphi %s6415_s30, %s8358_s30   ;;  %s6305_s29 = sphi %s6413_s29, %s8357_s29  }
  0x11   : > { %8093 = sst [smem:[#allocation21_spill]] %s6313_s15  ;;  %s382_s18 = sshll.u32 %s6319_s17, 4  ;;  %s383_s18 = int_to_ptr.vmem [resolvable:$true] %s382_s18 }
  0x12   : > { %s6434_s19 = sadd.s32 4294967295, %s6317_s16   ;;  %p4795_p0 = scmp.ge.s32.totalorder %s6317_s16, 1 }
  0x13   : > { %p7955_p1 = scmp.eq.s32.totalorder %s6434_s19, 0  ;;  %p370_p2 = scmp.lt.s32.totalorder %s6317_s16, 3 }
  0x14   : > { %s6320_s21 = smov [#allocation8]   ;;  %s6321_s24 = smov [#allocation10]  }
  0x15   : > { %p6439_p3 = pnand %p4795_p0, %p370_p2  ;;  %s398_s22 = sshll.u32 %s6320_s21, 4  ;;  %s6452_s22 = int_to_ptr.vmem [resolvable:$true] %s398_s22 }
  0x16   : > { %s6454_s25 = sshll.u32 %s6321_s24, 4  ;;  %s6088_s26 = scalar_lea.vmem %s383_s18, 3072  ;;  %s421_s25 = int_to_ptr.vmem [resolvable:$true] %s6454_s25 }
  0x17   : > { %s8094_s20 = scalar_select %p6439_p3, 1, 0 }
  0x18   : > { %p5636_p5 = pneg %p6439_p3  ;;  %p6089_p8 = scmp.ne.s32.totalorder %s383_s18, %s6088_s26 }
  0x19   : > { %p6096_p11 = scmp.lt.s32.totalorder %s383_s18, %s383_s18  ;;  %p6097_p12 = scmp.lt.s32.totalorder %s6088_s26, %s6088_s26 }
  0x1a   : > { %p6448_p6 = pnand %p5636_p5, %p7955_p1 }
  0x1b   : > { %p6098_p13 = por %p6097_p12, %p6096_p11 }
  0x1c   : > { %p6079_p7 = pneg %p6448_p6 }
  0x1e   : > { %p6091_p9 = pnand %p6089_p8, %p6079_p7 }
  0x20   : > { %p6092_p10 = pneg %p6091_p9 }
  0x22   : > { %p6099_p0 = pnand %p6098_p13, %p6092_p10 }
  0x24   : > { %6102 = shalt.err (!%p6099_p0)
}
  0x25   : > { %s6322_s27 = smov 192   ;;  %s6323_s28 = smov 12  }
  0x26   : > { %s8096_s2 = sld [smem:[#allocation91_spill]]  ;;  %s6114_s24 = scalar_lea.vmem %s6452_s22, 1024 }
  0x27   : > { %p6115_p2 = scmp.ne.s32.totalorder %s6452_s22, %s6114_s24  ;;  %p6122_p9 = scmp.lt.s32.totalorder %s6452_s22, %s6452_s22 }
  0x28   : > { %p6123_p10 = scmp.lt.s32.totalorder %s6114_s24, %s6114_s24 }
  0x29   : > { %p6117_p5 = pnand %p6115_p2, %p6079_p7 }
  0x2a   : > { %p6124_p11 = por %p6123_p10, %p6122_p9 }
  0x2b   : > { %p6118_p8 = pneg %p6117_p5 }
  0x2c   : > { %5639 = dma.hbm_to_vmem [thread:$0]  (!%p6448_p6), %s8096_s2, 3072, %s383_s18, [#allocation6], %s6322_s27, %s6322_s27, %s6323_s28  }
  0x2d   : > { %p6125_p12 = pnand %p6124_p11, %p6118_p8 }
  0x2f   : > { %6128 = shalt.err (!%p6125_p12)
}
  0x30   : > { %s7951_s26 = smov 64   ;;  %s6325_s14 = smov 4  }
  0x31   : > { %s8097_s4 = sld [smem:[#allocation92_spill]]  ;;  %s6140_s28 = scalar_lea.vmem %s421_s25, 4096 }
  0x32   : > { %p6141_p13 = scmp.ne.s32.totalorder %s421_s25, %s6140_s28  ;;  %p6148_p5 = scmp.lt.s32.totalorder %s421_s25, %s421_s25 }
  0x33   : > { %p6149_p8 = scmp.lt.s32.totalorder %s6140_s28, %s6140_s28 }
  0x34   : > { %p6143_p0 = pnand %p6141_p13, %p6079_p7 }
  0x35   : > { %p6150_p9 = por %p6149_p8, %p6148_p5 }
  0x36   : > { %p6144_p2 = pneg %p6143_p0 }
  0x37   : > { %5642 = dma.hbm_to_vmem [thread:$0]  (!%p6448_p6), %s8097_s4, 1024, %s6452_s22, [#allocation9], %s7951_s26, %s7951_s26, %s6325_s14  }
  0x38   : > { %p6151_p10 = pnand %p6150_p9, %p6144_p2 }
  0x3a   : > { %6154 = shalt.err (!%p6151_p10)
}
  0x3b   : > { %s6326_s17 = smov 256   ;;  %s6327_s21 = smov 16  }
  0x3c   : > { %s8098_s8 = sld [smem:[#allocation93_spill]]  ;;  %s6328_s22 = smov [#allocation11]  }
  0x3d   : > { %s436_s27 = sshll.u32 %s6328_s22, 4  ;;  %s437_s27 = int_to_ptr.vmem [resolvable:$true] %s436_s27 }
  0x3e   : > { %s6166_s26 = scalar_lea.vmem %s437_s27, 4096  ;;  %p6174_p0 = scmp.lt.s32.totalorder %s437_s27, %s437_s27 }
  0x3f   : > { %p6167_p11 = scmp.ne.s32.totalorder %s437_s27, %s6166_s26  ;;  %p6175_p2 = scmp.lt.s32.totalorder %s6166_s26, %s6166_s26 }
  0x41   : > { %p6169_p12 = pnand %p6167_p11, %p6079_p7  ;;  %p6176_p5 = por %p6175_p2, %p6174_p0 }
  0x42   : > { %5645 = dma.hbm_to_vmem [thread:$0]  (!%p6448_p6), %s8098_s8, 4096, %s421_s25, [#allocation9], %s6326_s17, %s6326_s17, %s6327_s21  }
  0x43   : > { %p6170_p13 = pneg %p6169_p12 }
  0x45   : > { %p6177_p8 = pnand %p6176_p5, %p6170_p13 }
  0x47   : > { %6180 = shalt.err (!%p6177_p8)
}
  0x48   : > { %s8099_s28 = smov 64   ;;  %s8100_s10 = sld [smem:[#allocation94_spill]] }
  0x49   : > { %s4794_s23 = sadd.s32 4294967294, %s6317_s16   ;;  %s6504_s26 = sadd.s32 1, %s6317_s16  }
  0x4a   : > { %8101 = sst [smem:[#allocation22_spill]] %s6504_s26  ;;  %s39_s21 = ssub.s32 %s6317_s16, %s6504_s26 }
  0x4b   : > { %s42_s24 = sadd.s32 1, %s6313_s15  ;;  %p40_p7 = scmp.eq.s32.totalorder %s39_s21, 0 }
  0x4c   : > { %p49_p9 = scmp.ne.s32.totalorder %s6313_s15, %s6309_s30  ;;  %p50_p10 = scmp.eq.s32.totalorder %s6317_s16, 0 }
  0x4d   : > { %p55_p11 = scmp.ne.s32.totalorder %s6309_s30, %s6305_s29  ;;  %p357_p13 = scmp.eq.s32.totalorder %s6434_s19, 1 }
  0x4e   : > { %5648 = dma.hbm_to_vmem [thread:$0]  (!%p6448_p6), %s8100_s10, 4096, %s437_s27, [#allocation12], %s8099_s28, %s8099_s28, %s6325_s14  }
  0x4f   : > { %s6515_s18 = scalar_select %p40_p7, %s6313_s15, %s42_s24  }
  0x50   : > { %p6517_p12 = por %p50_p10, %p49_p9  ;;  %p6523_p6 = por %p7955_p1, %p55_p11 }
  0x51   : > { %8102 = sst [smem:[#allocation23_spill]] %s6515_s18  ;;  %p363_p0 = scmp.eq.s32.totalorder %s4794_s23, 1 }
  0x52   : > { %s8104_s14 = scalar_select %p6523_p6, 1, 0 }
  0x53   : > { %p5664_p2 = scmp.lt.s32.totalorder %s6317_s16, 2  ;;  %s6530_s27 = sand.u32 1, %s6313_s15  }
  0x54   : > { %p6532_p5 = por %p357_p13, %p49_p9  ;;  %p6536_p8 = por %p363_p0, %p55_p11 }
  0x55   : > { %s4801_s17 = sshll.u32 %s6530_s27, 3  ;;  %s4802_s21 = sshll.u32 %s6317_s16, 7 }
  0x56   : > { %s8105_s28 = scalar_select %p6532_p5, 1, 0 }
  0x57   : > { %s8106_s25 = scalar_select %p6536_p8, 1, 0 }
  0x58   : > { %s8108_s0 = sld [smem:[#allocation90_spill]]  ;;  %s463_s23 = scalar_lea.vmem [#allocation2], %s4801_s17 }
  0x59   : > { %8107 = sst [smem:[#allocation24_spill]] %s8106_s25  ;;  %s470_s8 = sshll.u32 %s463_s23, 4  ;;  %s6547_s8 = int_to_ptr.vmem [resolvable:$true] %s470_s8 }
  0x5a   : > { %p6551_p7 = pnand %p5664_p2, %p6517_p12  ;;  %s460_s15 = scalar_lea.sflag [#allocation3], %s6530_s27 }
  0x5c   : > { %p6183_p10 = pneg %p6551_p7 }
  0x5e   : > { %s6545_s4 = scalar_lea.hbm %s8108_s0, %s4802_s21  ;;  %s6186_s22 = scalar_lea.hbm %s8108_s0, 256 }
  0x5f   : > { %s6181_s26 = scalar_lea.hbm %s6545_s4, 128  ;;  %p6187_p12 = scmp.lt.s32.totalorder %s6545_s4, %s8108_s0 }
  0x60   : > { %p6182_p9 = scmp.ne.s32.totalorder %s6545_s4, %s6181_s26  ;;  %p6188_p0 = scmp.lt.s32.totalorder %s6186_s22, %s6181_s26 }
  0x62   : > { %p6184_p11 = pnand %p6183_p10, %p6182_p9  ;;  %p6189_p2 = por %p6188_p0, %p6187_p12 }
  0x64   : > { %p6185_p13 = pneg %p6184_p11 }
  0x66   : > { %p6190_p4 = pnand %p6189_p2, %p6185_p13 }
  0x68   : > { %6193 = shalt.err (!%p6190_p4)
}
  0x69   : > { %s6194_s23 = scalar_lea.vmem %s6547_s8, 128  ;;  %s6329_s2 = smov [#allocation2]  }
  0x6a   : > { %p6195_p1 = scmp.ne.s32.totalorder %s6547_s8, %s6194_s23  ;;  %s6199_s17 = sshll.u32 %s6329_s2, 4  ;;  %s6200_s17 = int_to_ptr.vmem [resolvable:$false] %s6199_s17 }
  0x6b   : > { %s6201_s18 = scalar_lea.vmem %s6200_s17, 256  ;;  %p6202_p8 = scmp.lt.s32.totalorder %s6547_s8, %s6200_s17 }
  0x6c   : > { %p6197_p9 = pnand %p6195_p1, %p6183_p10  ;;  %p6203_p5 = scmp.lt.s32.totalorder %s6201_s18, %s6194_s23 }
  0x6e   : > { %p6198_p11 = pneg %p6197_p9  ;;  %p6204_p6 = por %p6203_p5, %p6202_p8 }
  0x70   : > { %p6205_p12 = pnand %p6204_p6, %p6198_p11 }
  0x72   : > { %6208 = shalt.err (!%p6205_p12)
}
  0x73   : > { %5652 = dma.hbm_to_vmem [thread:$0]  (!%p6551_p7), %s6545_s4, 128, %s6547_s8, %s460_s15  }
  0x74   : > { %s4803_s26 = sshll.u32 %s6317_s16, 4  ;;  %s480_s22 = scalar_lea.vmem [#allocation5], %s6530_s27 }
  0x75   : > { %s487_s21 = sshll.u32 %s480_s22, 4  ;;  %s485_s17 = scalar_lea.hbm %s7936_s1, %s4803_s26  ;;  %s488_s21 = int_to_ptr.vmem [resolvable:$true] %s487_s21 }
  0x76   : > { %s8110_s18 = sand.u32 1, %s6317_s16   ;;  %s6209_s0 = scalar_lea.hbm %s485_s17, 16 }
  0x77   : > { %s478_s23 = scalar_lea.sflag [#allocation6], %s8110_s18  ;;  %p6210_p1 = scmp.ne.s32.totalorder %s485_s17, %s6209_s0 }
  0x78   : > { %s6214_s4 = scalar_lea.hbm %s7936_s1, 32  ;;  %p6215_p5 = scmp.lt.s32.totalorder %s485_s17, %s7936_s1 }
  0x79   : > { %p6212_p4 = pnand %p6210_p1, %p6183_p10  ;;  %p6216_p8 = scmp.lt.s32.totalorder %s6214_s4, %s6209_s0 }
  0x7b   : > { %p6213_p6 = pneg %p6212_p4  ;;  %p6217_p13 = por %p6216_p8, %p6215_p5 }
  0x7d   : > { %p6218_p0 = pnand %p6217_p13, %p6213_p6 }
  0x7f   : > { %6221 = shalt.err (!%p6218_p0)
}
  0x80   : > { %s6222_s27 = scalar_lea.vmem %s488_s21, 16  ;;  %s6330_s26 = smov [#allocation5]  }
  0x81   : > { %p6223_p2 = scmp.ne.s32.totalorder %s488_s21, %s6222_s27  ;;  %s6227_s22 = sshll.u32 %s6330_s26, 4  ;;  %s6228_s22 = int_to_ptr.vmem [resolvable:$false] %s6227_s22 }
  0x82   : > { %s6229_s29 = scalar_lea.vmem %s6228_s22, 32  ;;  %p6230_p12 = scmp.lt.s32.totalorder %s488_s21, %s6228_s22 }
  0x83   : > { %p6225_p9 = pnand %p6223_p2, %p6183_p10  ;;  %p6231_p1 = scmp.lt.s32.totalorder %s6229_s29, %s6222_s27 }
  0x85   : > { %p6226_p11 = pneg %p6225_p9  ;;  %p6232_p4 = por %p6231_p1, %p6230_p12 }
  0x87   : > { %p6233_p3 = pnand %p6232_p4, %p6226_p11 }
  0x89   : > { %6236 = shalt.err (!%p6233_p3)
}
  0x8a   : > { %5655 = dma.hbm_to_vmem [thread:$0]  (!%p6551_p7), %s485_s17, 16, %s488_s21, %s478_s23  }
  0x8b   : > { %p8111_p6 = scmp.ne.s32.totalorder %s8094_s20, 0 }
  0x8d   : > { %496 = sbr.rel (%p8111_p6) target bundleno = 9823 (0x265f), region = 76 }
  0x92   : > { %s6605_s0 = sand.u32 1, %s6309_s30   ;;  %p8112_p10 = scmp.ne.s32.totalorder %s8104_s14, 0 }
  0x93   : > { %s4805_s25 = sshll.u32 %s6605_s0, 3  ;;  %s499_s24 = scalar_lea.sflag [#allocation3], %s6605_s0 }
  0x94   : > { %s6611_s2 = scalar_lea.vmem [#allocation2], %s4805_s25 }
  0x95   : > { %6280 = dma.done.wait (%p8112_p10), %s499_s24, 128  }
  0x96   : > { %6282 = vsyncadd (%p8112_p10), %s499_s24, 4294967168  ;;  %s507_s10 = sand.u32 1, %s6434_s19   ;;  %s6619_s21 = scalar_lea.vmem [#allocation5], %s6605_s0 }
  0x97   : > { %s508_s20 = scalar_lea.sflag [#allocation6], %s507_s10 }
  0x98   : > { %6284 = dma.done.wait (%p8112_p10), %s508_s20, 16  }
  0x99   : > { %6286 = vsyncadd (%p8112_p10), %s508_s20, 4294967280  ;;  %p8113_p3 = scmp.eq.s32.totalorder %s6434_s19, 0 }
  0x9b   : > { %6288 = dma.done.wait (%p8113_p3), [#allocation6], 3072   ;;  %p8114_p7 = pmov %p8113_p3 }
  0x9c   : > { %p8115_p5 = pmov %p8113_p3 }
  0x9d   : > { %6290 = vsyncadd (%p8114_p7), [#allocation6], 4294964224 }
  0x9e   : > { %6292 = dma.done.wait (%p8115_p5), [#allocation9], 5120   ;;  %p8116_p8 = pmov %p8113_p3 }
  0x9f   : > { %p8117_p13 = pmov %p8113_p3 }
  0xa0   : > { %6294 = vsyncadd (%p8116_p8), [#allocation9], 4294962176 }
  0xa1   : > { %6296 = dma.done.wait (%p8117_p13), [#allocation12], 4096   ;;  %p8118_p0 = pmov %p8113_p3 }
  0xa2   : > { %v7961_v0 = vmov 0   ;;  %v7966_v1 = vmov 0.0   ;;  %v5718_v2 = vld [vmem:[#allocation7 + $0xac] ss:$12 sps:$4 sm:$0xff]   ;;  %v5720_v3 = vld [vmem:[#allocation7 + $0xa8] ss:$12 sps:$4 sm:$0xff]   ;;  %v730_v28 = vlaneseq }
  0xa3   : > { %6298 = vsyncadd (%p8118_p0), [#allocation12], 4294963200  ;;  %970 = vmatprep.mubr.bf16.mxu0 %v7961_v0  ;;  %5262 = vmatprep.subr.bf16.mxu1 %v7966_v1  ;;  %v5721_v4 = vld [vmem:[#allocation7 + $0x94] ss:$12 sps:$4 sm:$0xff]   ;;  %v5723_v5 = vld [vmem:[#allocation7 + $0x90] ss:$12 sps:$4 sm:$0xff]  }
  0xa4   : > { %938 = vmatprep.subr.bf16.mxu0 %v5718_v2  ;;  %v5724_v6 = vld [vmem:[#allocation7 + $0x7c] ss:$12 sps:$4 sm:$0xff]   ;;  %v5726_v7 = vld [vmem:[#allocation7 + $0x78] ss:$12 sps:$4 sm:$0xff]   ;;  %v5729_v9 = vld [vmem:[#allocation7 + $0x60] ss:$12 sps:$4 sm:$0xff]  }
  0xa5   : > { %939 = vmatpush1.bf16.msra.mxu0 %v5720_v3  ;;  %v5727_v8 = vld [vmem:[#allocation7 + $0x64] ss:$12 sps:$4 sm:$0xff]   ;;  %v5730_v11 = vld [vmem:[#allocation7 + $0x4c] ss:$12 sps:$4 sm:$0xff]   ;;  %v5732_v13 = vld [vmem:[#allocation7 + $0x48] ss:$12 sps:$4 sm:$0xff]  }
  0xa6   : > { %940 = vmatprep.subr.bf16.mxu0 %v5721_v4  ;;  %v5742_v10 = vld [vmem:[#allocation7 + $0xb0] ss:$12 sps:$4 sm:$0xff]   ;;  %v5743_v12 = vld [vmem:[#allocation7 + $0x98] ss:$12 sps:$4 sm:$0xff]   ;;  %v5733_v14 = vld [vmem:[#allocation7 + $0x34] ss:$12 sps:$4 sm:$0xff]  }
  0xa7   : > { %5263 = vmatpush3.bf16.msra.mxu1 %v5742_v10  ;;  %v5735_v15 = vld [vmem:[#allocation7 + $0x30] ss:$12 sps:$4 sm:$0xff]   ;;  %v5744_v16 = vld [vmem:[#allocation7 + $0x80] ss:$12 sps:$4 sm:$0xff]   ;;  %v5745_v18 = vld [vmem:[#allocation7 + $0x68] ss:$12 sps:$4 sm:$0xff]  }
  0xa8   : > { %5264 = vmatprep.subr.bf16.mxu1 %v7966_v1  ;;  %v5736_v17 = vld [vmem:[#allocation7 + $0x1c] ss:$12 sps:$4 sm:$0xff]   ;;  %v5738_v19 = vld [vmem:[#allocation7 + $0x18] ss:$12 sps:$4 sm:$0xff]   ;;  %v5741_v22 = vld [vmem:[#allocation7] ss:$12 sps:$4 sm:$0xff]  }
  0xa9   : > { %941 = vmatpush1.bf16.msra.mxu0 %v5723_v5  ;;  %v5739_v20 = vld [vmem:[#allocation7 + $0x4] ss:$12 sps:$4 sm:$0xff]   ;;  %v6651_v26 = vld [vmem:[#allocation7 + $0x20] ss:$12 sps:$4 sm:$0xff]   ;;  %v6655_v27 = vld [vmem:[#allocation7 + $0x8] ss:$12 sps:$4 sm:$0xff]  }
  0xaa   : > { %942 = vmatprep.subr.bf16.mxu0 %v5724_v6  ;;  %v5746_v21 = vld [vmem:[#allocation7 + $0x50] ss:$12 sps:$4 sm:$0xff]   ;;  %v5747_v24 = vld [vmem:[#allocation7 + $0x38] ss:$12 sps:$4 sm:$0xff]   ;;  %vm6333_vm0 = vmmov 0   ;;  %v6665_v29 = vshrl.u32 %v730_v28, 7 }
  0xab   : > { %5265 = vmatpush3.bf16.msra.mxu1 %v5743_v12  ;;  %v6643_v23 = vld [vmem:[%s6611_s2] sm:$0xff]  ;;  %5278 = vmatprep.mubr.msk.bf16.mxu1 %vm6333_vm0, %v7966_v1  ;;  %vm1061_vm1 = vcmask 261120   ;;  %s6334_s18 = smov 64   ;;  %s6335_s23 = smov 96   ;;  %vm1298_vm2 = vcmask 1043456   ;;  %vm1246_vm3 = vcmask 64512  }
  0xac   : > { %5266 = vmatprep.subr.bf16.mxu1 %v7966_v1  ;;  %v809_v25 = vpack.c.bf16 %v6643_v23, %v6643_v23  ;;  %v7963_v30 = vsub.s32 1, %v6665_v29  ;;  %v728_v31 = vld [vmem:[%s7938_s3] sm:$0x7]  ;;  %v7965_v32 = vsub.s32 0, %v6665_v29  ;;  %s6336_s4 = smov 32   ;;  %v7964_v45 = vsub.s32 2, %v6665_v29 }
  0xad   : > { %943 = vmatpush1.bf16.msra.mxu0 %v5726_v7  ;;  %v6721_v6 = vld [vmem:[%s6619_s21] ss:$0 sm:$0xff]  ;;  %vm1493_vm4 = vcmask 523264   ;;  %vm1495_vm5 = vcmask 785408   ;;  %s8347_s29 = sld [smem:[#allocation95_spill]]  ;;  %s4653_s10 = scalar_lea.sflag [#allocation4], %s6605_s0 }
  0xae   : > { %944 = vmatprep.subr.bf16.mxu0 %v5727_v8  ;;  %v6674_v33 = vrot.slane %v728_v31, %v7963_v30  ;;  %v6678_v36 = vrot.slane %v728_v31, %v7965_v32  ;;  %v6696_v48 = vrot.slane %v728_v31, %v7964_v45  ;;  %v6939_v30 = vld [vmem:[#allocation11 + $0x28] sm:$0xff]   ;;  %v6947_v32 = vld [vmem:[#allocation11 + $0x60] sm:$0xff]   ;;  %p8349_p9 = scmp.ne.s32.totalorder %s8105_s28, 0 }
  0xaf   : > { %5267 = vmatpush3.bf16.msra.mxu1 %v5744_v16  ;;  %8143 = vst [vmem:[#allocation49_spill] sm:$0xff] %v6939_v30  ;;  %v6941_v45 = vld [vmem:[#allocation11 + $0xa8] sm:$0xff]   ;;  %8145 = vst [vmem:[#allocation51_spill] sm:$0xff] %v6947_v32 }
  0xb0   : > { %5268 = vmatprep.subr.bf16.mxu1 %v7966_v1  ;;  %8119 = vst [vmem:[#allocation25_spill] sm:$0xff] %v6674_v33  ;;  %8144 = vst [vmem:[#allocation50_spill] sm:$0xff] %v6941_v45 }
  0xb1   : > { %945 = vmatpush1.bf16.msra.mxu0 %v5729_v9 }
  0xb2   : > { %946 = vmatprep.subr.bf16.mxu0 %v5730_v11 }
  0xb3   : > { %5269 = vmatpush3.bf16.msra.mxu1 %v5745_v18  ;;  %s8348_s24 = smov %s8347_s29 }
  0xb4   : > { %5270 = vmatprep.subr.bf16.mxu1 %v7966_v1 }
  0xb5   : > { %947 = vmatpush1.bf16.msra.mxu0 %v5732_v13 }
  0xb6   : > { %948 = vmatprep.subr.bf16.mxu0 %v5733_v14 }
  0xb7   : > { %5271 = vmatpush3.bf16.msra.mxu1 %v5746_v21 }
  0xb8   : > { %5272 = vmatprep.subr.bf16.mxu1 %v7966_v1 }
  0xb9   : > { %949 = vmatpush1.bf16.msra.mxu0 %v5735_v15 }
  0xba   : > { %950 = vmatprep.subr.bf16.mxu0 %v5736_v17 }
  0xbb   : > { %5273 = vmatpush3.bf16.msra.mxu1 %v5747_v24 }
  0xbc   : > { %5274 = vmatprep.subr.bf16.mxu1 %v7966_v1 }
  0xbd   : > { %951 = vmatpush1.bf16.msra.mxu0 %v5738_v19 }
  0xbe   : > { %952 = vmatprep.subr.bf16.mxu0 %v5739_v20 }
  0xbf   : > { %5275 = vmatpush3.bf16.msra.mxu1 %v6651_v26 }
  0xc0   : > { %5276 = vmatprep.subr.bf16.mxu1 %v7966_v1 }
  0xc1   : > { %953 = vmatpush1.bf16.msra.mxu0 %v5741_v22 }
  0xc2   : > { %5306 = vmatprep.subr.bf16.mxu0 %v7966_v1 }
  0xc3   : > { %5277 = vmatpush3.bf16.msra.mxu1 %v6655_v27 }
  0xc4   : > { %971 = vmatmul.mubr.bf16.vlgmr.msra.gmra.mxu0 %v809_v25  ;;  %5282 = vmatprep.subr.bf16.mxu1 %v7966_v1 }
  0xc5   : > { %5308 = vmatprep.mubr.msk.bf16.mxu0 %vm6333_vm0, %v7966_v1 }
  0xc6   : > { %5279 = vmatmul.mubr.bf16.vlgmr.msra.gmra.mxu1 %v809_v25 }
  0xc7   : > { %5284 = vmatprep.mubr.msk.bf16.mxu1 %vm6333_vm0, %v7966_v1 }
 0x184   : > { %v972_v34 = vpop.f32.mrf.mxu0 }
 0x185   : > { %v973_v41 = vadd.f32 %v972_v34, %v6678_v36 }
 0x186   : > { %v974_v35 = vpop.f32.mrf.mxu0  ;;  %v1013_v44 = vpop.f32.mrf.mxu1 }
 0x187   : > { %v975_v37 = vadd.f32 %v974_v35, %v6674_v33  ;;  %v1029_v43 = vpack.c.bf16 %v973_v41, %v973_v41  ;;  %v6699_v50 = vadd.f32 %v1013_v44, %v6696_v48 }
 0x188   : > { %v976_v38 = vpop.f32.mrf.mxu0  ;;  %v5280_v46 = vpop.f32.mrf.mxu1 }
 0x189   : > { %1037 = vrot.lane.b32.xlu1 %v975_v37, %s6334_s18  ;;  %1034 = vrot.lane.b32.xlu0 %v975_v37, %s6335_s23  ;;  %v1043_v39 = vpack.c.bf16 %v975_v37, %v975_v37  ;;  %v1057_v51 = vpack.c.bf16 %v6699_v50, %v6699_v50 }
 0x18a   : > { %v977_v40 = vpop.f32.mrf.mxu0  ;;  %v1016_v47 = vpop.f32.mrf.mxu1 }
 0x18b   : > { %v1066_v42 = vsel %vm1061_vm1, %v1043_v39, 0  ;;  %v1300_v52 = vsel %vm1298_vm2, %v1057_v51, 0 }
 0x18c   : > { %5283 = vmatpush3.bf16.xpose.msra.mxu1 %v1066_v42  ;;  %v5281_v49 = vpop.f32.mrf.mxu1  ;;  %5307 = vmatpush3.bf16.msra.mxu0 %v1300_v52 }
 0x18d   : > { %1023 = vrot.lane.b32.xlu1 %v973_v41, %s6334_s18  ;;  %1020 = vrot.lane.b32.xlu0 %v973_v41, %s6335_s23 }
 0x18e   : > { %5288 = vmatprep.subr.bf16.mxu1 %v7966_v1  ;;  %5318 = vmatprep.subr.bf16.mxu0 %v7966_v1 }
 0x191   : > { %1026 = vrot.lane.b32.xlu1 %v973_v41, %s6336_s4  ;;  %1040 = vrot.lane.b32.xlu0 %v975_v37, %s6336_s4 }
 0x193   : > { %5285 = vmatmul.mubr.msk.bf16.vlgmr.msra.gmra.mxu1 %vm1061_vm1, %v1029_v43 }
 0x194   : > { %5290 = vmatprep.mubr.msk.bf16.mxu1 %vm6333_vm0, %v7966_v1 }
 0x1fb   : > { %v1035_v53 = vpop.permute.xlu0 %1034  ;;  %v1038_v56 = vpop.permute.xlu1 %1037 }
 0x1fc   : > { %v1044_v54 = vpack.c.bf16 %v1035_v53, %v1035_v53  ;;  %v1045_v58 = vpack.c.bf16 %v1038_v56, %v1038_v56 }
 0x1fe   : > { %v1112_v55 = vsel %vm1061_vm1, %v1044_v54, 0  ;;  %v1158_v60 = vsel %vm1061_vm1, %v1045_v58, 0 }
 0x1ff   : > { %5289 = vmatpush3.bf16.xpose.msra.mxu1 %v1112_v55  ;;  %v1021_v57 = vpop.permute.xlu0 %1020  ;;  %v1024_v62 = vpop.permute.xlu1 %1023 }
 0x200   : > { %5294 = vmatprep.subr.bf16.mxu1 %v7966_v1  ;;  %v1030_v59 = vpack.c.bf16 %v1021_v57, %v1021_v57  ;;  %v1031_v2 = vpack.c.bf16 %v1024_v62, %v1024_v62 }
 0x203   : > { %v1041_v61 = vpop.permute.xlu0 %1040  ;;  %v1027_v4 = vpop.permute.xlu1 %1026 }
 0x204   : > { %v1046_v63 = vpack.c.bf16 %v1041_v61, %v1041_v61  ;;  %v1032_v5 = vpack.c.bf16 %v1027_v4, %v1027_v4 }
 0x206   : > { %5291 = vmatmul.mubr.msk.bf16.vlgmr.msra.gmra.mxu1 %vm1061_vm1, %v1030_v59  ;;  %v1204_v3 = vsel %vm1061_vm1, %v1046_v63, 0 }
 0x207   : > { %5295 = vmatpush3.bf16.xpose.msra.mxu1 %v1158_v60  ;;  %5296 = vmatprep.mubr.msk.bf16.mxu1 %vm6333_vm0, %v7966_v1 }
 0x208   : > { %5300 = vmatprep.subr.bf16.mxu1 %v7966_v1 }
 0x20e   : > { %5297 = vmatmul.mubr.msk.bf16.vlgmr.msra.gmra.mxu1 %vm1061_vm1, %v1031_v2 }
 0x20f   : > { %5301 = vmatpush3.bf16.xpose.msra.mxu1 %v1204_v3  ;;  %5302 = vmatprep.mubr.msk.bf16.mxu1 %vm6333_vm0, %v7966_v1 }
 0x210   : > { %5312 = vmatprep.subr.bf16.mxu1 %v7966_v1 }
 0x216   : > { %5303 = vmatmul.mubr.msk.bf16.vlgmr.msra.gmra.mxu1 %vm1061_vm1, %v1032_v5 }
 0x217   : > { %5314 = vmatprep.mubr.msk.bf16.mxu1 %vm6333_vm0, %v7966_v1 }
 0x253   : > { %v1102_v7 = vpop.f32.mrf.mxu1 }
 0x254   : > { %v1103_v8 = vadd.f32 %v6721_v6, %v1102_v7 }
 0x255   : > { %v5286_v9 = vpop.f32.mrf.mxu1 }
 0x256   : > { %v1247_v10 = vsel %vm1246_vm3, %v1103_v8, -inf }
 0x257   : > { %1248 = vmax.xlane.f32.xlu0 %v1247_v10  ;;  %v1105_v11 = vpop.f32.mrf.mxu1 }
 0x259   : > { %v5287_v12 = vpop.f32.mrf.mxu1 }
 0x2c6   : > { %v1148_v13 = vpop.f32.mrf.mxu1 }
 0x2c7   : > { %v1149_v14 = vadd.f32 %v6721_v6, %v1148_v13 }
 0x2c8   : > { %v5292_v15 = vpop.f32.mrf.mxu1 }
 0x2c9   : > { %v1250_v16 = vsel %vm1246_vm3, %v1149_v14, -inf }
 0x2ca   : > { %1251 = vmax.xlane.f32.xlu1 %v1250_v16  ;;  %v1151_v17 = vpop.f32.mrf.mxu1 }
 0x2cc   : > { %v5293_v18 = vpop.f32.mrf.mxu1 }
 0x2ce   : > { %v1194_v19 = vpop.f32.mrf.mxu1 }
 0x2cf   : > { %v1195_v20 = vadd.f32 %v6721_v6, %v1194_v19 }
 0x2d0   : > { %v5298_v21 = vpop.f32.mrf.mxu1 }
 0x2d1   : > { %v1253_v22 = vsel %vm1246_vm3, %v1195_v20, -inf }
 0x2d2   : > { %1254 = vmax.xlane.f32.xlu0 %v1253_v22  ;;  %v1197_v24 = vpop.f32.mrf.mxu1 }
 0x2d4   : > { %v5299_v25 = vpop.f32.mrf.mxu1 }
 0x2d6   : > { %v1240_v28 = vpop.f32.mrf.mxu1 }
 0x2d7   : > { %v1241_v31 = vadd.f32 %v6721_v6, %v1240_v28  ;;  %v6757_v28 = vld [vmem:[#allocation8 + $0x38] sm:$0xff]  }
 0x2d8   : > { %v5304_v34 = vpop.f32.mrf.mxu1 }
 0x2d9   : > { %v1256_v35 = vsel %vm1246_vm3, %v1241_v31, -inf  ;;  %v6760_v34 = vld [vmem:[#allocation8 + $0x30] sm:$0xff]  }
 0x2da   : > { %1257 = vmax.xlane.f32.xlu0 %v1256_v35  ;;  %v1243_v37 = vpop.f32.mrf.mxu1 }
 0x2db   : > { %1048 = vrot.lane.b32.xlu1 %v6699_v50, %s6335_s23 }
 0x2dc   : > { %v5305_v38 = vpop.f32.mrf.mxu1 }
 0x2dd   : > { %v6764_v38 = vld [vmem:[#allocation8 + $0x28] sm:$0xff]  }
 0x2e0   : > { %v1249_v39 = vpop.xlane.xlu0 %1248 }
 0x2e1   : > { %v1259_v40 = vsub.f32 %v1103_v8, %v1249_v39 }
 0x2e3   : > { %v1263_v41 = vmul.f32 1.442695, %v1259_v40  ;;  %v6769_v40 = vld [vmem:[#allocation8 + $0x20] sm:$0xff]  }
 0x2e5   : > { %5838 = vpow2.f32 %v1263_v41  ;;  %v6772_v41 = vld [vmem:[#allocation8 + $0x18] sm:$0xff]  }
 0x2f2   : > { %v5839_v42 = vpop.eup %5838 }
 0x2f3   : > { %v1271_v43 = vsel %vm1246_vm3, %v5839_v42, 0.0 }
 0x2ff   : > { %1272 = vadd.xlane.f32.xlu1 %v1271_v43  ;;  %v6780_v43 = vld [vmem:[#allocation8 + $0x8] sm:$0xff]  }
 0x353   : > { %v1252_v44 = vpop.xlane.xlu1 %1251 }
 0x354   : > { %v1260_v46 = vsub.f32 %v1149_v14, %v1252_v44 }
 0x356   : > { %v1265_v47 = vmul.f32 1.442695, %v1260_v46 }
 0x357   : > { %v1049_v49 = vpop.permute.xlu1 %1048 }
 0x358   : > { %5840 = vpow2.f32 %v1265_v47  ;;  %v1058_v51 = vpack.c.bf16 %v1049_v49, %v1049_v49  ;;  %v6786_v47 = vld [vmem:[#allocation8] sm:$0xff]  }
 0x35a   : > { %v1346_v52 = vsel %vm1298_vm2, %v1058_v51, 0 }
 0x35b   : > { %5313 = vmatpush3.bf16.msra.mxu1 %v1346_v52  ;;  %v1255_v53 = vpop.xlane.xlu0 %1254 }
 0x35c   : > { %v1261_v54 = vsub.f32 %v1195_v20, %v1255_v53  ;;  %5324 = vmatprep.subr.bf16.mxu1 %v7966_v1 }
 0x35e   : > { %v1267_v55 = vmul.f32 1.442695, %v1261_v54 }
 0x360   : > { %5842 = vpow2.f32 %v1267_v55 }
 0x363   : > { %v1258_v56 = vpop.xlane.xlu0 %1257 }
 0x364   : > { %v1262_v57 = vsub.f32 %v1241_v31, %v1258_v56 }
 0x365   : > { %v5841_v58 = vpop.eup %5840 }
 0x366   : > { %v1269_v59 = vmul.f32 1.442695, %v1262_v57  ;;  %v1274_v60 = vsel %vm1246_vm3, %v5841_v58, 0.0 }
 0x367   : > { %1275 = vadd.xlane.f32.xlu0 %v1274_v60 }
 0x368   : > { %5844 = vpow2.f32 %v1269_v59 }
 0x36d   : > { %v5843_v61 = vpop.eup %5842 }
 0x36e   : > { %v1277_v62 = vsel %vm1246_vm3, %v5843_v61, 0.0 }
 0x36f   : > { %1278 = vadd.xlane.f32.xlu1 %v1277_v62 }
 0x375   : > { %v5845_v63 = vpop.eup %5844 }
 0x376   : > { %v1280_v2 = vsel %vm1246_vm3, %v5845_v63, 0.0 }
 0x377   : > { %1281 = vadd.xlane.f32.xlu0 %v1280_v2 }
 0x380   : > { %1054 = vrot.lane.b32.xlu1 %v6699_v50, %s6336_s4 }
 0x388   : > { %v1273_v3 = vpop.xlane.xlu1 %1272 }
 0x389   : > { %5846 = vrcp.f32 %v1273_v3 }
 0x38d   : > { %1051 = vrot.lane.b32.xlu0 %v6699_v50, %s6334_s18 }
 0x396   : > { %v5847_v4 = vpop.eup %5846 }
 0x397   : > { %v1287_v5 = vmul.f32 %v5847_v4, %v5839_v42  ;;  %v6777_v42 = vld [vmem:[#allocation8 + $0x10] sm:$0xff]  }
 0x399   : > { %v1291_v7 = vpack.c.bf16 %v1287_v5, %v1287_v5  ;;  %v4812_v5 = vld [vmem:[%s7940_s5] ss:$0 sm:$0xff] }
 0x39b   : > { %5309 = vmatmul.mubr.msk.bf16.vlgmr.msra.gmra.mxu0 %vm1246_vm3, %v1291_v7 }
 0x39c   : > { %5320 = vmatprep.mubr.msk.bf16.mxu0 %vm6333_vm0, %v7966_v1 }
 0x3f0   : > { %v1276_v8 = vpop.xlane.xlu0 %1275 }
 0x3f1   : > { %5848 = vrcp.f32 %v1276_v8 }
 0x3f8   : > { %v1279_v9 = vpop.xlane.xlu1 %1278 }
 0x3f9   : > { %5850 = vrcp.f32 %v1279_v9 }
 0x3fc   : > { %v1055_v10 = vpop.permute.xlu1 %1054 }
 0x3fd   : > { %v1060_v12 = vpack.c.bf16 %v1055_v10, %v1055_v10 }
 0x3fe   : > { %v5849_v11 = vpop.eup %5848 }
 0x3ff   : > { %v1288_v13 = vmul.f32 %v5849_v11, %v5841_v58  ;;  %v1438_v50 = vsel %vm1298_vm2, %v1060_v12, 0 }
 0x400   : > { %v1282_v14 = vpop.xlane.xlu0 %1281 }
 0x401   : > { %5852 = vrcp.f32 %v1282_v14  ;;  %v1292_v15 = vpack.c.bf16 %v1288_v13, %v1288_v13  ;;  %v6799_v13 = vld [vmem:[#allocation10 + $0xe4] ss:$16 sps:$4 sm:$0xff]   ;;  %v6801_v14 = vld [vmem:[#allocation10 + $0xec] ss:$16 sps:$4 sm:$0xff]  }
 0x403   : > { %5315 = vmatmul.mubr.msk.bf16.vlgmr.msra.gmra.mxu1 %vm1246_vm3, %v1292_v15  ;;  %v6803_v15 = vld [vmem:[#allocation10 + $0xe0] ss:$16 sps:$4 sm:$0xff]  }
 0x404   : > { %5325 = vmatpush3.bf16.msra.mxu1 %v1438_v50  ;;  %v1052_v16 = vpop.permute.xlu0 %1051  ;;  %5326 = vmatprep.mubr.msk.bf16.mxu1 %vm6333_vm0, %v7966_v1  ;;  %v6805_v50 = vld [vmem:[#allocation10 + $0xe8] ss:$16 sps:$4 sm:$0xff]  }
 0x405   : > { %v1059_v17 = vpack.c.bf16 %v1052_v16, %v1052_v16  ;;  %v6807_v16 = vld [vmem:[#allocation10 + $0xc4] ss:$16 sps:$4 sm:$0xff]   ;;  %1762 = vmatprep.subr.bf16.mxu1 %v6799_v13 }
 0x406   : > { %v5851_v18 = vpop.eup %5850 }
 0x407   : > { %v1392_v19 = vsel %vm1298_vm2, %v1059_v17, 0  ;;  %v1289_v20 = vmul.f32 %v5851_v18, %v5843_v61  ;;  %v6809_v17 = vld [vmem:[#allocation10 + $0xcc] ss:$16 sps:$4 sm:$0xff]   ;;  %v6817_v18 = vld [vmem:[#allocation10 + $0xc8] ss:$16 sps:$4 sm:$0xff]  }
 0x408   : > { %5319 = vmatpush3.bf16.msra.mxu0 %v1392_v19 }
 0x409   : > { %v1293_v21 = vpack.c.bf16 %v1289_v20, %v1289_v20  ;;  %5330 = vmatprep.subr.bf16.mxu0 %v7966_v1 }
 0x40b   : > { %5321 = vmatmul.mubr.msk.bf16.vlgmr.msra.gmra.mxu0 %vm1246_vm3, %v1293_v21 }
 0x40c   : > { %5346 = vmatprep.mubr.msk.bf16.mxu0 %vm6333_vm0, %v7966_v1  ;;  %5331 = vmatpush3.bf16.msra.mxu0 %v6757_v28 }
 0x40d   : > { %5332 = vmatprep.subr.bf16.mxu0 %v7966_v1 }
 0x40e   : > { %v5853_v22 = vpop.eup %5852 }
 0x40f   : > { %v1290_v24 = vmul.f32 %v5853_v22, %v5845_v63 }
 0x410   : > { %5333 = vmatpush3.bf16.msra.mxu0 %v6760_v34 }
 0x411   : > { %v1294_v25 = vpack.c.bf16 %v1290_v24, %v1290_v24  ;;  %5334 = vmatprep.subr.bf16.mxu0 %v7966_v1  ;;  %v6823_v24 = vld [vmem:[#allocation10 + $0xa4] ss:$16 sps:$4 sm:$0xff]  }
 0x413   : > { %5327 = vmatmul.mubr.msk.bf16.vlgmr.msra.gmra.mxu1 %vm1246_vm3, %v1294_v25  ;;  %v6825_v25 = vld [vmem:[#allocation10 + $0xac] ss:$16 sps:$4 sm:$0xff]  }
 0x414   : > { %1794 = vmatprep.mubr.bf16.mxu1 %v7961_v0  ;;  %5335 = vmatpush3.bf16.msra.mxu0 %v6764_v38  ;;  %8120 = vst [vmem:[#allocation26_spill] sm:$0xff] %v6825_v25 }
 0x415   : > { %5336 = vmatprep.subr.bf16.mxu0 %v7966_v1  ;;  %1763 = vmatpush1.bf16.msra.mxu1 %v6803_v15 }
 0x416   : > { %1764 = vmatprep.subr.bf16.mxu1 %v6807_v16 }
 0x418   : > { %5337 = vmatpush3.bf16.msra.mxu0 %v6769_v40 }
 0x419   : > { %5338 = vmatprep.subr.bf16.mxu0 %v7966_v1 }
 0x41c   : > { %5339 = vmatpush3.bf16.msra.mxu0 %v6772_v41 }
 0x41d   : > { %5340 = vmatprep.subr.bf16.mxu0 %v7966_v1 }
 0x420   : > { %5341 = vmatpush3.bf16.msra.mxu0 %v6777_v42 }
 0x421   : > { %5342 = vmatprep.subr.bf16.mxu0 %v7966_v1 }
 0x424   : > { %5343 = vmatpush3.bf16.msra.mxu0 %v6780_v43 }
 0x425   : > { %5344 = vmatprep.subr.bf16.mxu0 %v7966_v1  ;;  %v6949_v1 = vld [vmem:[#allocation11 + $0xe0] sm:$0xff]  }
 0x426   : > { %8146 = vst [vmem:[#allocation52_spill] sm:$0xff] %v6949_v1 }
 0x428   : > { %5345 = vmatpush3.bf16.msra.mxu0 %v6786_v47 }
 0x429   : > { %1803 = vmatprep.subr.bf16.mxu0 %v6801_v14 }
 0x45b   : > { %v1336_v31 = vpop.f32.mrf.mxu0 }
 0x45d   : > { %v5310_v35 = vpop.f32.mrf.mxu0 }
 0x45e   : > { %v6829_v35 = vld [vmem:[#allocation10 + $0xa8] ss:$16 sps:$4 sm:$0xff]  }
 0x45f   : > { %v1339_v37 = vpop.f32.mrf.mxu0  ;;  %8121 = vst [vmem:[#allocation27_spill] sm:$0xff] %v6829_v35 }
 0x460   : > { %v6835_v37 = vld [vmem:[#allocation10 + $0x84] ss:$16 sps:$4 sm:$0xff]  }
 0x461   : > { %v5311_v39 = vpop.f32.mrf.mxu0 }
 0x462   : > { %v6837_v39 = vld [vmem:[#allocation10 + $0x8c] ss:$16 sps:$4 sm:$0xff]  }
 0x463   : > { %8122 = vst [vmem:[#allocation28_spill] sm:$0xff] %v6837_v39 }
 0x4c3   : > { %v1382_v44 = vpop.f32.mrf.mxu1 }
 0x4c4   : > { %1481 = vrot.lane.b32.xlu1 %v1382_v44, %s6336_s4  ;;  %v6839_v44 = vld [vmem:[#allocation10 + $0x80] ss:$16 sps:$4 sm:$0xff]  }
 0x4c5   : > { %v5316_v46 = vpop.f32.mrf.mxu1 }
 0x4c6   : > { %v6841_v46 = vld [vmem:[#allocation10 + $0x88] ss:$16 sps:$4 sm:$0xff]  }
 0x4c7   : > { %v1385_v49 = vpop.f32.mrf.mxu1  ;;  %8123 = vst [vmem:[#allocation29_spill] sm:$0xff] %v6841_v46 }
 0x4c8   : > { %v6843_v49 = vld [vmem:[#allocation10 + $0x64] ss:$16 sps:$4 sm:$0xff]  }
 0x4c9   : > { %v5317_v51 = vpop.f32.mrf.mxu1 }
 0x4ca   : > { %v6845_v51 = vld [vmem:[#allocation10 + $0x6c] ss:$16 sps:$4 sm:$0xff]  }
 0x4cb   : > { %v1428_v52 = vpop.f32.mrf.mxu0  ;;  %8124 = vst [vmem:[#allocation30_spill] sm:$0xff] %v6845_v51 }
 0x4cc   : > { %1485 = vrot.lane.b32.xlu0 %v1428_v52, %s6334_s18  ;;  %v6851_v52 = vld [vmem:[#allocation10 + $0x60] ss:$16 sps:$4 sm:$0xff]  }
 0x4cd   : > { %v5322_v53 = vpop.f32.mrf.mxu0 }
 0x4ce   : > { %v6853_v53 = vld [vmem:[#allocation10 + $0x68] ss:$16 sps:$4 sm:$0xff]  }
 0x4cf   : > { %v1431_v54 = vpop.f32.mrf.mxu0  ;;  %8125 = vst [vmem:[#allocation31_spill] sm:$0xff] %v6853_v53 }
 0x4d0   : > { %v6857_v54 = vld [vmem:[#allocation10 + $0x44] ss:$16 sps:$4 sm:$0xff]  }
 0x4d1   : > { %v5323_v55 = vpop.f32.mrf.mxu0 }
 0x4d2   : > { %v6859_v55 = vld [vmem:[#allocation10 + $0x4c] ss:$16 sps:$4 sm:$0xff]  }
 0x4d3   : > { %v1474_v56 = vpop.f32.mrf.mxu1  ;;  %8126 = vst [vmem:[#allocation32_spill] sm:$0xff] %v6859_v55 }
 0x4d4   : > { %1489 = vrot.lane.b32.xlu1 %v1474_v56, %s6335_s23  ;;  %v6863_v56 = vld [vmem:[#allocation10 + $0x40] ss:$16 sps:$4 sm:$0xff]  }
 0x4d5   : > { %v5328_v57 = vpop.f32.mrf.mxu1 }
 0x4d6   : > { %v6865_v57 = vld [vmem:[#allocation10 + $0x48] ss:$16 sps:$4 sm:$0xff]  }
 0x4d7   : > { %v1477_v58 = vpop.f32.mrf.mxu1  ;;  %8127 = vst [vmem:[#allocation33_spill] sm:$0xff] %v6865_v57 }
 0x4d8   : > { %v6869_v58 = vld [vmem:[#allocation10 + $0x24] ss:$16 sps:$4 sm:$0xff]  }
 0x4d9   : > { %v5329_v59 = vpop.f32.mrf.mxu1 }
 0x4da   : > { %v6871_v59 = vld [vmem:[#allocation10 + $0x2c] ss:$16 sps:$4 sm:$0xff]  }
 0x4db   : > { %8128 = vst [vmem:[#allocation34_spill] sm:$0xff] %v6871_v59 }
 0x536   : > { %v1482_v60 = vpop.permute.xlu1 %1481 }
 0x537   : > { %v1492_v62 = vsel %vm1061_vm1, %v1336_v31, %v1482_v60  ;;  %v6827_v31 = vld [vmem:[#allocation10 + $0xa0] ss:$16 sps:$4 sm:$0xff]  }
 0x538   : > { %v6875_v60 = vld [vmem:[#allocation10 + $0x20] ss:$16 sps:$4 sm:$0xff]  }
 0x53e   : > { %v1486_v61 = vpop.permute.xlu0 %1485 }
 0x53f   : > { %v1494_v63 = vsel %vm1493_vm4, %v1492_v62, %v1486_v61  ;;  %v6877_v61 = vld [vmem:[#allocation10 + $0x28] ss:$16 sps:$4 sm:$0xff]   ;;  %v6881_v62 = vld [vmem:[#allocation10 + $0x4] ss:$16 sps:$4 sm:$0xff]  }
 0x540   : > { %8129 = vst [vmem:[#allocation35_spill] sm:$0xff] %v6877_v61 }
 0x546   : > { %v1490_v2 = vpop.permute.xlu1 %1489 }
 0x547   : > { %v1496_v3 = vsel %vm1495_vm5, %v1494_v63, %v1490_v2  ;;  %v6883_v63 = vld [vmem:[#allocation10 + $0xc] ss:$16 sps:$4 sm:$0xff]   ;;  %v6887_v2 = vld [vmem:[#allocation10] ss:$16 sps:$4 sm:$0xff]  }
 0x548   : > { %v1497_v4 = vpack.c.bf16 %v1496_v3, %v1496_v3  ;;  %8130 = vst [vmem:[#allocation36_spill] sm:$0xff] %v6883_v63  ;;  %v6889_v3 = vld [vmem:[#allocation10 + $0x8] ss:$16 sps:$4 sm:$0xff]  }
 0x549   : > { %8131 = vst [vmem:[#allocation37_spill] sm:$0xff] %v6889_v3 }
 0x54a   : > { %5347 = vmatmul.mubr.bf16.vlgmr.msra.gmra.mxu0 %v1497_v4 }
 0x54b   : > { %1835 = vmatprep.mubr.bf16.mxu0 %v7961_v0  ;;  %1804 = vmatpush1.bf16.msra.mxu0 %v6805_v50  ;;  %v6937_v0 = vld [vmem:[#allocation11 + $0xe8] sm:$0xff]  }
 0x54c   : > { %1805 = vmatprep.subr.bf16.mxu0 %v6809_v17  ;;  %8142 = vst [vmem:[#allocation48_spill] sm:$0xff] %v6937_v0 }
 0x54f   : > { %1806 = vmatpush1.bf16.msra.mxu0 %v6817_v18 }
 0x550   : > { %1807 = vmatprep.subr.bf16.mxu0 %v6825_v25 }
 0x553   : > { %1808 = vmatpush1.bf16.msra.mxu0 %v6829_v35 }
 0x554   : > { %1809 = vmatprep.subr.bf16.mxu0 %v6837_v39 }
 0x557   : > { %1810 = vmatpush1.bf16.msra.mxu0 %v6841_v46 }
 0x558   : > { %1811 = vmatprep.subr.bf16.mxu0 %v6845_v51 }
 0x55b   : > { %1812 = vmatpush1.bf16.msra.mxu0 %v6853_v53 }
 0x55c   : > { %1813 = vmatprep.subr.bf16.mxu0 %v6859_v55 }
 0x55f   : > { %1814 = vmatpush1.bf16.msra.mxu0 %v6865_v57 }
 0x560   : > { %1815 = vmatprep.subr.bf16.mxu0 %v6871_v59 }
 0x563   : > { %1816 = vmatpush1.bf16.msra.mxu0 %v6877_v61 }
 0x564   : > { %1817 = vmatprep.subr.bf16.mxu0 %v6883_v63 }
 0x567   : > { %1818 = vmatpush1.bf16.msra.mxu0 %v6889_v3 }
 0x60a   : > { %v1580_v7 = vpop.f32.mrf.mxu0 }
 0x60b   : > { %v1581_v8 = vadd.f32 %v4812_v5, %v1580_v7 }
 0x60c   : > { %v5348_v9 = vpop.f32.mrf.mxu0 }
 0x60d   : > { %v1586_v10 = vadd.f32 %v1581_v8, %v6643_v23  ;;  %v6815_v23 = vld [vmem:[#allocation10 + $0xc0] ss:$16 sps:$4 sm:$0xff]   ;;  %v6898_v9 = vld [vmem:[%s7941_s6] ss:$0 sm:$0xff] }
 0x60e   : > { %v1583_v11 = vpop.f32.mrf.mxu0  ;;  %1765 = vmatpush1.bf16.msra.mxu1 %v6815_v23  ;;  %8132 = vst [vmem:[#allocation38_spill] sm:$0xff] %v6898_v9 }
 0x60f   : > { %1587 = vadd.xlane.f32.xlu0 %v1586_v10  ;;  %1766 = vmatprep.subr.bf16.mxu1 %v6823_v24  ;;  %v6903_v11 = vld [vmem:[%s7942_s7] ss:$0 sm:$0xff] }
 0x610   : > { %v5349_v12 = vpop.f32.mrf.mxu0  ;;  %8133 = vst [vmem:[#allocation39_spill] sm:$0xff] %v6903_v11 }
 0x612   : > { %1767 = vmatpush1.bf16.msra.mxu1 %v6827_v31 }
 0x613   : > { %1768 = vmatprep.subr.bf16.mxu1 %v6835_v37 }
 0x616   : > { %1769 = vmatpush1.bf16.msra.mxu1 %v6839_v44 }
 0x617   : > { %1770 = vmatprep.subr.bf16.mxu1 %v6843_v49 }
 0x61a   : > { %1771 = vmatpush1.bf16.msra.mxu1 %v6851_v52 }
 0x61b   : > { %1772 = vmatprep.subr.bf16.mxu1 %v6857_v54 }
 0x61e   : > { %1773 = vmatpush1.bf16.msra.mxu1 %v6863_v56 }
 0x61f   : > { %1774 = vmatprep.subr.bf16.mxu1 %v6869_v58 }
 0x622   : > { %1775 = vmatpush1.bf16.msra.mxu1 %v6875_v60 }
 0x623   : > { %1776 = vmatprep.subr.bf16.mxu1 %v6881_v62 }
 0x626   : > { %1777 = vmatpush1.bf16.msra.mxu1 %v6887_v2 }
 0x698   : > { %v1588_v19 = vpop.xlane.xlu0 %1587 }
 0x699   : > { %v1590_v20 = vmul.f32 0.0078125, %v1588_v19 }
 0x69b   : > { %v1591_v21 = vsub.f32 %v1586_v10, %v1590_v20 }
 0x69d   : > { %v1592_v22 = vmul.f32 %v1591_v21, %v1591_v21 }
 0x69f   : > { %1593 = vadd.xlane.f32.xlu1 %v1592_v22  ;;  %v6911_v22 = vld [vmem:[#allocation11 + $0x78] sm:$0xff]  }
 0x6a0   : > { %4984 = vmatprep.subr.bf16.mxu1 %v6911_v22 }
 0x728   : > { %v1594_v4 = vpop.xlane.xlu1 %1593 }
 0x729   : > { %v1595_v5 = vmul.f32 0.0078125, %v1594_v4  ;;  %v6913_v4 = vld [vmem:[#allocation11 + $0xf8] sm:$0xff]  }
 0x72a   : > { %8134 = vst [vmem:[#allocation40_spill] sm:$0xff] %v6913_v4  ;;  %5006 = vmatprep.subr.bf16.mxu0 %v6913_v4 }
 0x72b   : > { %v1596_v7 = vadd.f32 1e-12, %v1595_v5  ;;  %v6917_v5 = vld [vmem:[#allocation11 + $0xb8] sm:$0xff]  }
 0x72c   : > { %8136 = vst [vmem:[#allocation42_spill] sm:$0xff] %v6917_v5 }
 0x72d   : > { %5854 = vrsqrt.f32 %v1596_v7  ;;  %v6923_v7 = vld [vmem:[#allocation11 + $0x70] sm:$0xff]  }
 0x72e   : > { %8137 = vst [vmem:[#allocation43_spill] sm:$0xff] %v6923_v7 }
 0x73a   : > { %v5855_v8 = vpop.eup %5854 }
 0x73b   : > { %v1598_v10 = vmul.f32 %v5855_v8, %v1591_v21  ;;  %v6915_v21 = vld [vmem:[#allocation11 + $0x38] sm:$0xff]   ;;  %v6925_v8 = vld [vmem:[#allocation11 + $0xf0] sm:$0xff]  }
 0x73c   : > { %8135 = vst [vmem:[#allocation41_spill] sm:$0xff] %v6915_v21  ;;  %8138 = vst [vmem:[#allocation44_spill] sm:$0xff] %v6925_v8 }
 0x73d   : > { %v1599_v12 = vmul.f32 %v6898_v9, %v1598_v10  ;;  %v6927_v10 = vld [vmem:[#allocation11 + $0x30] sm:$0xff]  }
 0x73e   : > { %8139 = vst [vmem:[#allocation45_spill] sm:$0xff] %v6927_v10 }
 0x73f   : > { %v6907_v19 = vadd.f32 %v6903_v11, %v1599_v12  ;;  %v6929_v12 = vld [vmem:[#allocation11 + $0xb0] sm:$0xff]  }
 0x740   : > { %8140 = vst [vmem:[#allocation46_spill] sm:$0xff] %v6929_v12 }
 0x741   : > { %v1601_v20 = vpack.c.bf16 %v6907_v19, %v6907_v19 }
 0x743   : > { %1795 = vmatmul.mubr.bf16.vlgmr.msra.gmra.mxu1 %v1601_v20  ;;  %1836 = vmatmul.mubr.bf16.vlgmr.msra.gmra.mxu0 %v1601_v20  ;;  %v6935_v20 = vld [vmem:[#allocation11 + $0x68] sm:$0xff]  }
 0x744   : > { %4985 = vmatpush3.bf16.msra.mxu1 %v6915_v21  ;;  %5007 = vmatpush3.bf16.msra.mxu0 %v6917_v5  ;;  %8141 = vst [vmem:[#allocation47_spill] sm:$0xff] %v6935_v20 }
 0x745   : > { %4986 = vmatprep.subr.bf16.mxu1 %v6923_v7  ;;  %5008 = vmatprep.subr.bf16.mxu0 %v6925_v8  ;;  %v6955_v8 = vld [vmem:[#allocation11 + $0x58] sm:$0xff]  }
 0x746   : > { %8149 = vst [vmem:[#allocation55_spill] sm:$0xff] %v6955_v8  ;;  %v6957_v7 = vld [vmem:[#allocation11 + $0xd8] sm:$0xff]  }
 0x747   : > { %8150 = vst [vmem:[#allocation56_spill] sm:$0xff] %v6957_v7 }
 0x748   : > { %4987 = vmatpush3.bf16.msra.mxu1 %v6927_v10  ;;  %5009 = vmatpush3.bf16.msra.mxu0 %v6929_v12  ;;  %v6951_v12 = vld [vmem:[#allocation11 + $0x20] sm:$0xff]  }
 0x749   : > { %4988 = vmatprep.subr.bf16.mxu1 %v6935_v20  ;;  %5010 = vmatprep.subr.bf16.mxu0 %v6937_v0  ;;  %8147 = vst [vmem:[#allocation53_spill] sm:$0xff] %v6951_v12  ;;  %v6953_v10 = vld [vmem:[#allocation11 + $0xa0] sm:$0xff]   ;;  %v6969_v0 = vld [vmem:[#allocation11 + $0x50] sm:$0xff]  }
 0x74a   : > { %8148 = vst [vmem:[#allocation54_spill] sm:$0xff] %v6953_v10  ;;  %8153 = vst [vmem:[#allocation59_spill] sm:$0xff] %v6969_v0  ;;  %v6971_v20 = vld [vmem:[#allocation11 + $0xd0] sm:$0xff]  }
 0x74b   : > { %8154 = vst [vmem:[#allocation60_spill] sm:$0xff] %v6971_v20 }
 0x74c   : > { %4989 = vmatpush3.bf16.msra.mxu1 %v6939_v30  ;;  %5011 = vmatpush3.bf16.msra.mxu0 %v6941_v45  ;;  %v6963_v45 = vld [vmem:[#allocation11 + $0x18] sm:$0xff]  }
 0x74d   : > { %4990 = vmatprep.subr.bf16.mxu1 %v6947_v32  ;;  %5012 = vmatprep.subr.bf16.mxu0 %v6949_v1  ;;  %8151 = vst [vmem:[#allocation57_spill] sm:$0xff] %v6963_v45  ;;  %v6965_v30 = vld [vmem:[#allocation11 + $0x98] sm:$0xff]   ;;  %v6975_v1 = vld [vmem:[#allocation11 + $0x10] sm:$0xff]  }
 0x74e   : > { %8152 = vst [vmem:[#allocation58_spill] sm:$0xff] %v6965_v30  ;;  %8155 = vst [vmem:[#allocation61_spill] sm:$0xff] %v6975_v1 }
 0x750   : > { %4991 = vmatpush3.bf16.msra.mxu1 %v6951_v12  ;;  %5013 = vmatpush3.bf16.msra.mxu0 %v6953_v10  ;;  %v6977_v12 = vld [vmem:[#allocation11 + $0x90] sm:$0xff]   ;;  %v6981_v10 = vld [vmem:[#allocation11 + $0x48] sm:$0xff]  }
 0x751   : > { %4992 = vmatprep.subr.bf16.mxu1 %v6955_v8  ;;  %5014 = vmatprep.subr.bf16.mxu0 %v6957_v7  ;;  %8156 = vst [vmem:[#allocation62_spill] sm:$0xff] %v6977_v12  ;;  %8157 = vst [vmem:[#allocation63_spill] sm:$0xff] %v6981_v10  ;;  %v6983_v8 = vld [vmem:[#allocation11 + $0xc8] sm:$0xff]  }
 0x752   : > { %8158 = vst [vmem:[#allocation64_spill] sm:$0xff] %v6983_v8  ;;  %v6987_v7 = vld [vmem:[#allocation11 + $0x8] sm:$0xff]  }
 0x753   : > { %8159 = vst [vmem:[#allocation65_spill] sm:$0xff] %v6987_v7 }
 0x754   : > { %4993 = vmatpush3.bf16.msra.mxu1 %v6963_v45  ;;  %5015 = vmatpush3.bf16.msra.mxu0 %v6965_v30  ;;  %v6989_v45 = vld [vmem:[#allocation11 + $0x88] sm:$0xff]   ;;  %v6993_v30 = vld [vmem:[#allocation11 + $0x40] sm:$0xff]  }
 0x755   : > { %4994 = vmatprep.subr.bf16.mxu1 %v6969_v0  ;;  %5016 = vmatprep.subr.bf16.mxu0 %v6971_v20  ;;  %8160 = vst [vmem:[#allocation66_spill] sm:$0xff] %v6989_v45  ;;  %8161 = vst [vmem:[#allocation67_spill] sm:$0xff] %v6993_v30  ;;  %v6995_v0 = vld [vmem:[#allocation11 + $0xc0] sm:$0xff]  }
 0x756   : > { %8162 = vst [vmem:[#allocation68_spill] sm:$0xff] %v6995_v0  ;;  %v6999_v20 = vld [vmem:[#allocation11] sm:$0xff]  }
 0x757   : > { %8163 = vst [vmem:[#allocation69_spill] sm:$0xff] %v6999_v20 }
 0x758   : > { %4995 = vmatpush3.bf16.msra.mxu1 %v6975_v1  ;;  %5017 = vmatpush3.bf16.msra.mxu0 %v6977_v12  ;;  %v7001_v1 = vld [vmem:[#allocation11 + $0x80] sm:$0xff]  }
 0x759   : > { %4996 = vmatprep.subr.bf16.mxu1 %v6981_v10  ;;  %5018 = vmatprep.subr.bf16.mxu0 %v6983_v8  ;;  %8164 = vst [vmem:[#allocation70_spill] sm:$0xff] %v7001_v1  ;;  %v7007_v8 = vld [vmem:[#allocation7 + $0xac] ss:$12 sps:$4 sm:$0xff]   ;;  %v8166_v10 = vmov 0.0  }
 0x75a   : > { %8165 = vst [vmem:[#allocation71_spill] sm:$0xff] %v7007_v8 }
 0x75c   : > { %4997 = vmatpush3.bf16.msra.mxu1 %v6987_v7  ;;  %5019 = vmatpush3.bf16.msra.mxu0 %v6989_v45  ;;  %v752_v45 = vld [vmem:[%s7944_s9] sm:$0xf]  ;;  %v768_v7 = vsub.s32 3, %v6665_v29 }
 0x75d   : > { %4998 = vmatprep.subr.bf16.mxu1 %v6993_v30  ;;  %5020 = vmatprep.subr.bf16.mxu0 %v6995_v0  ;;  %v8167_v30 = vsub.s32 0, %v6665_v29 }
 0x75f   : > { %v7017_v12 = vrot.slane %v752_v45, %v8167_v30 }
 0x760   : > { %4999 = vmatpush3.bf16.msra.mxu1 %v6999_v20  ;;  %5021 = vmatpush3.bf16.msra.mxu0 %v7001_v1  ;;  %v8169_v20 = vsub.s32 2, %v6665_v29  ;;  %v8171_v1 = vsub.s32 1, %v6665_v29 }
 0x761   : > { %2171 = vmatprep.subr.bf16.mxu1 %v7007_v8  ;;  %5350 = vmatprep.subr.bf16.mxu0 %v8166_v10  ;;  %8168 = vst [vmem:[#allocation72_spill] sm:$0xff] %v7017_v12  ;;  %v7027_v8 = vrot.slane %v752_v45, %v768_v7 }
 0x762   : > { %v7021_v0 = vrot.slane %v752_v45, %v8169_v20  ;;  %v7025_v32 = vrot.slane %v752_v45, %v8171_v1 }
 0x764   : > { %8170 = vst [vmem:[#allocation73_spill] sm:$0xff] %v7021_v0  ;;  %8172 = vst [vmem:[#allocation74_spill] sm:$0xff] %v7025_v32 }
 0x803   : > { %v1796_v5 = vpop.f32.mrf.mxu1  ;;  %v1837_v21 = vpop.f32.mrf.mxu0 }
 0x804   : > { %v1797_v11 = vadd.f32 %v1796_v5, %v7017_v12  ;;  %v1838_v9 = vadd.f32 %v1837_v21, %v7021_v0 }
 0x805   : > { %v1798_v4 = vpop.f32.mrf.mxu1  ;;  %v1839_v3 = vpop.f32.mrf.mxu0 }
 0x806   : > { %v1844_v30 = vmul.f32 %v1797_v11, %v1797_v11  ;;  %v1846_v63 = vmul.f32 %v1838_v9, %v1838_v9  ;;  %v1799_v61 = vadd.f32 %v1798_v4, %v7025_v32  ;;  %v1840_v20 = vadd.f32 %v1839_v3, %v7027_v8 }
 0x807   : > { %v1800_v59 = vpop.f32.mrf.mxu1  ;;  %v1841_v29 = vpop.f32.mrf.mxu0 }
 0x808   : > { %v1848_v1 = vmul.f32 %v1844_v30, %v1797_v11  ;;  %v1850_v57 = vmul.f32 %v1846_v63, %v1838_v9  ;;  %v1845_v45 = vmul.f32 %v1799_v61, %v1799_v61  ;;  %v1847_v7 = vmul.f32 %v1840_v20, %v1840_v20 }
 0x809   : > { %v1801_v55 = vpop.f32.mrf.mxu1  ;;  %v1842_v53 = vpop.f32.mrf.mxu0 }
 0x80a   : > { %v1852_v51 = vmul.f32 0.044715, %v1848_v1  ;;  %v1854_v5 = vmul.f32 0.044715, %v1850_v57  ;;  %v1849_v12 = vmul.f32 %v1845_v45, %v1799_v61  ;;  %v1851_v21 = vmul.f32 %v1847_v7, %v1840_v20 }
 0x80c   : > { %v1856_v0 = vadd.f32 %v1852_v51, %v1797_v11  ;;  %v1858_v46 = vadd.f32 %v1854_v5, %v1838_v9  ;;  %v1853_v39 = vmul.f32 0.044715, %v1849_v12  ;;  %v1855_v35 = vmul.f32 0.044715, %v1851_v21 }
 0x80e   : > { %v1860_v25 = vmul.f32 0.7978846, %v1856_v0  ;;  %v1862_v4 = vmul.f32 0.7978846, %v1858_v46  ;;  %v1857_v32 = vadd.f32 %v1853_v39, %v1799_v61  ;;  %v1859_v3 = vadd.f32 %v1855_v35, %v1840_v20 }
 0x810   : > { %5856 = vtanh.f32 %v1860_v25  ;;  %v1861_v59 = vmul.f32 0.7978846, %v1857_v32  ;;  %v1863_v30 = vmul.f32 0.7978846, %v1859_v3 }
 0x811   : > { %5858 = vtanh.f32 %v1862_v4 }
 0x812   : > { %5860 = vtanh.f32 %v1861_v59  ;;  %v7033_v59 = vld [vmem:[#allocation7 + $0xa8] ss:$12 sps:$4 sm:$0xff]  }
 0x813   : > { %5862 = vtanh.f32 %v1863_v30  ;;  %v7036_v30 = vld [vmem:[#allocation7 + $0xb0] ss:$12 sps:$4 sm:$0xff]  }
 0x81d   : > { %v5857_v55 = vpop.eup %5856 }
 0x81e   : > { %v5859_v53 = vpop.eup %5858  ;;  %v1868_v63 = vadd.f32 1.0, %v5857_v55  ;;  %v7052_v55 = vld [vmem:[#allocation7 + $0x7c] ss:$12 sps:$4 sm:$0xff]  }
 0x81f   : > { %v5861_v57 = vpop.eup %5860  ;;  %v1870_v29 = vadd.f32 1.0, %v5859_v53  ;;  %v7056_v53 = vld [vmem:[#allocation7 + $0x78] ss:$12 sps:$4 sm:$0xff]  }
 0x820   : > { %v5863_v1 = vpop.eup %5862  ;;  %v1869_v51 = vadd.f32 1.0, %v5861_v57  ;;  %v1872_v45 = vmul.f32 0.5, %v1868_v63  ;;  %v7059_v63 = vld [vmem:[#allocation7 + $0x80] ss:$12 sps:$4 sm:$0xff]   ;;  %v7062_v57 = vld [vmem:[#allocation7 + $0x64] ss:$12 sps:$4 sm:$0xff]  }
 0x821   : > { %v1871_v12 = vadd.f32 1.0, %v5863_v1  ;;  %v1874_v7 = vmul.f32 0.5, %v1870_v29  ;;  %8174 = vst [vmem:[#allocation75_spill] sm:$0xff] %v7059_v63  ;;  %8175 = vst [vmem:[#allocation76_spill] sm:$0xff] %v7062_v57  ;;  %v7066_v29 = vld [vmem:[#allocation7 + $0x60] ss:$12 sps:$4 sm:$0xff]  }
 0x822   : > { %v1873_v0 = vmul.f32 0.5, %v1869_v51  ;;  %v1876_v39 = vmul.f32 %v1872_v45, %v1797_v11  ;;  %v7039_v11 = vld [vmem:[#allocation7 + $0x94] ss:$12 sps:$4 sm:$0xff]   ;;  %8176 = vst [vmem:[#allocation77_spill] sm:$0xff] %v7066_v29  ;;  %v7072_v51 = vld [vmem:[#allocation7 + $0x4c] ss:$12 sps:$4 sm:$0xff]  }
 0x823   : > { %v1875_v46 = vmul.f32 0.5, %v1871_v12  ;;  %v1878_v25 = vmul.f32 %v1874_v7, %v1838_v9  ;;  %v7046_v9 = vld [vmem:[#allocation7 + $0x90] ss:$12 sps:$4 sm:$0xff]   ;;  %v7069_v1 = vld [vmem:[#allocation7 + $0x68] ss:$12 sps:$4 sm:$0xff]   ;;  %8178 = vst [vmem:[#allocation79_spill] sm:$0xff] %v7072_v51 }
 0x824   : > { %v1877_v35 = vmul.f32 %v1873_v0, %v1799_v61  ;;  %v1880_v4 = vpack.c.bf16 %v1876_v39, %v1876_v39  ;;  %v8173_v61 = vmov 0   ;;  %8177 = vst [vmem:[#allocation78_spill] sm:$0xff] %v7069_v1  ;;  %v7076_v45 = vld [vmem:[#allocation7 + $0x48] ss:$12 sps:$4 sm:$0xff]   ;;  %v7079_v12 = vld [vmem:[#allocation7 + $0x50] ss:$12 sps:$4 sm:$0xff]  }
 0x825   : > { %v1879_v32 = vmul.f32 %v1875_v46, %v1840_v20  ;;  %v1882_v3 = vpack.c.bf16 %v1878_v25, %v1878_v25  ;;  %v7049_v20 = vld [vmem:[#allocation7 + $0x98] ss:$12 sps:$4 sm:$0xff]   ;;  %8179 = vst [vmem:[#allocation80_spill] sm:$0xff] %v7076_v45  ;;  %8180 = vst [vmem:[#allocation81_spill] sm:$0xff] %v7079_v12  ;;  %v7082_v7 = vld [vmem:[#allocation7 + $0x34] ss:$12 sps:$4 sm:$0xff]  }
 0x826   : > { %v1881_v5 = vpack.c.bf16 %v1877_v35, %v1877_v35  ;;  %8181 = vst [vmem:[#allocation82_spill] sm:$0xff] %v7082_v7  ;;  %v7086_v0 = vld [vmem:[#allocation7 + $0x30] ss:$12 sps:$4 sm:$0xff]   ;;  %v7089_v46 = vld [vmem:[#allocation7 + $0x38] ss:$12 sps:$4 sm:$0xff]  }
 0x827   : > { %v1883_v21 = vpack.c.bf16 %v1879_v32, %v1879_v32  ;;  %8182 = vst [vmem:[#allocation83_spill] sm:$0xff] %v7086_v0  ;;  %8183 = vst [vmem:[#allocation84_spill] sm:$0xff] %v7089_v46  ;;  %v7092_v39 = vld [vmem:[#allocation7 + $0x1c] ss:$12 sps:$4 sm:$0xff]   ;;  %v7096_v35 = vld [vmem:[#allocation7 + $0x18] ss:$12 sps:$4 sm:$0xff]  }
 0x828   : > { %2108 = vmatprep.mubr.bf16.mxu1 %v1881_v5  ;;  %8184 = vst [vmem:[#allocation85_spill] sm:$0xff] %v7092_v39  ;;  %8185 = vst [vmem:[#allocation86_spill] sm:$0xff] %v7096_v35  ;;  %v7100_v25 = vld [vmem:[#allocation7 + $0x4] ss:$12 sps:$4 sm:$0xff]   ;;  %v7104_v32 = vld [vmem:[#allocation7] ss:$12 sps:$4 sm:$0xff]  }
 0x829   : > { %2148 = vmatprep.mubr.bf16.mxu0 %v1883_v21  ;;  %2109 = vmatmul.mubr.bf16.vlgmr.msra.gmra.mxu1 %v1880_v4  ;;  %8186 = vst [vmem:[#allocation87_spill] sm:$0xff] %v7100_v25  ;;  %8187 = vst [vmem:[#allocation88_spill] sm:$0xff] %v7104_v32 }
 0x82a   : > { %2149 = vmatmul.mubr.bf16.vlgmr.msra.gmra.mxu0 %v1882_v3  ;;  %2172 = vmatpush1.bf16.msra.mxu1 %v7033_v59 }
 0x82b   : > { %5351 = vmatpush3.bf16.msra.mxu0 %v7036_v30  ;;  %2173 = vmatprep.subr.bf16.mxu1 %v7039_v11 }
 0x82c   : > { %5352 = vmatprep.subr.bf16.mxu0 %v8166_v10  ;;  %2203 = vmatprep.mubr.bf16.mxu1 %v8173_v61 }
 0x82d   : > { %5366 = vmatprep.mubr.msk.bf16.mxu0 %vm6333_vm0, %v8166_v10 }
 0x82e   : > { %2174 = vmatpush1.bf16.msra.mxu1 %v7046_v9 }
 0x82f   : > { %5353 = vmatpush3.bf16.msra.mxu0 %v7049_v20  ;;  %2175 = vmatprep.subr.bf16.mxu1 %v7052_v55 }
 0x830   : > { %5354 = vmatprep.subr.bf16.mxu0 %v8166_v10 }
 0x832   : > { %2176 = vmatpush1.bf16.msra.mxu1 %v7056_v53 }
 0x833   : > { %5355 = vmatpush3.bf16.msra.mxu0 %v7059_v63  ;;  %2177 = vmatprep.subr.bf16.mxu1 %v7062_v57 }
 0x834   : > { %5356 = vmatprep.subr.bf16.mxu0 %v8166_v10 }
 0x836   : > { %2178 = vmatpush1.bf16.msra.mxu1 %v7066_v29 }
 0x837   : > { %5357 = vmatpush3.bf16.msra.mxu0 %v7069_v1  ;;  %2179 = vmatprep.subr.bf16.mxu1 %v7072_v51 }
 0x838   : > { %5358 = vmatprep.subr.bf16.mxu0 %v8166_v10 }
 0x83a   : > { %2180 = vmatpush1.bf16.msra.mxu1 %v7076_v45 }
 0x83b   : > { %5359 = vmatpush3.bf16.msra.mxu0 %v7079_v12  ;;  %2181 = vmatprep.subr.bf16.mxu1 %v7082_v7 }
 0x83c   : > { %5360 = vmatprep.subr.bf16.mxu0 %v8166_v10 }
 0x83e   : > { %2182 = vmatpush1.bf16.msra.mxu1 %v7086_v0 }
 0x83f   : > { %5361 = vmatpush3.bf16.msra.mxu0 %v7089_v46  ;;  %2183 = vmatprep.subr.bf16.mxu1 %v7092_v39 }
 0x840   : > { %5362 = vmatprep.subr.bf16.mxu0 %v8166_v10 }
 0x842   : > { %2184 = vmatpush1.bf16.msra.mxu1 %v7096_v35 }
 0x843   : > { %5363 = vmatpush3.bf16.msra.mxu0 %v6651_v26  ;;  %2185 = vmatprep.subr.bf16.mxu1 %v7100_v25  ;;  %v7113_v26 = vld [vmem:[%s7946_s11] ss:$0 sm:$0xff] }
 0x844   : > { %5364 = vmatprep.subr.bf16.mxu0 %v8166_v10 }
 0x846   : > { %2186 = vmatpush1.bf16.msra.mxu1 %v7104_v32 }
 0x847   : > { %5365 = vmatpush3.bf16.msra.mxu0 %v6655_v27  ;;  %5370 = vmatprep.subr.bf16.mxu1 %v8166_v10 }
 0x848   : > { %5394 = vmatprep.subr.bf16.mxu0 %v8166_v10 }
 0x8e9   : > { %v5000_v5 = vpop.f32.mrf.mxu1 }
 0x8ea   : > { %v5022_v21 = vpop.f32.mrf.mxu0 }
 0x8eb   : > { %v5001_v4 = vpop.f32.mrf.mxu1 }
 0x8ec   : > { %v5002_v3 = vadd.f32 %v5001_v4, %v5000_v5  ;;  %v5023_v25 = vpop.f32.mrf.mxu0 }
 0x8ed   : > { %v5003_v35 = vpop.f32.mrf.mxu1  ;;  %v5024_v32 = vadd.f32 %v5023_v25, %v5022_v21 }
 0x8ee   : > { %v2111_v39 = vadd.f32 %v5002_v3, %v7113_v26  ;;  %v5025_v46 = vpop.f32.mrf.mxu0 }
 0x8ef   : > { %v5004_v27 = vpop.f32.mrf.mxu1  ;;  %v7120_v46 = vld [vmem:[%s7947_s12] ss:$0 sm:$0xff] }
 0x8f0   : > { %v2151_v0 = vadd.f32 %v5024_v32, %v2111_v39  ;;  %v5026_v7 = vpop.f32.mrf.mxu0 }
 0x8f2   : > { %v2156_v12 = vadd.f32 %v2151_v0, %v6907_v19  ;;  %v7125_v19 = vld [vmem:[%s7948_s13] ss:$0 sm:$0xff] }
 0x8f4   : > { %2157 = vadd.xlane.f32.xlu0 %v2156_v12 }
 0x97d   : > { %v2158_v45 = vpop.xlane.xlu0 %2157 }
 0x97e   : > { %v2159_v51 = vmul.f32 0.0078125, %v2158_v45 }
 0x980   : > { %v2160_v1 = vsub.f32 %v2156_v12, %v2159_v51 }
 0x982   : > { %v2161_v29 = vmul.f32 %v2160_v1, %v2160_v1 }
 0x984   : > { %2162 = vadd.xlane.f32.xlu0 %v2161_v29 }
 0xa0d   : > { %v2163_v57 = vpop.xlane.xlu0 %2162 }
 0xa0e   : > { %v2164_v63 = vmul.f32 0.0078125, %v2163_v57 }
 0xa10   : > { %v2165_v5 = vadd.f32 1e-12, %v2164_v63 }
 0xa12   : > { %5864 = vrsqrt.f32 %v2165_v5 }
 0xa1f   : > { %v5865_v35 = vpop.eup %5864 }
 0xa20   : > { %v2167_v39 = vmul.f32 %v5865_v35, %v2160_v1 }
 0xa22   : > { %v2168_v51 = vmul.f32 %v7120_v46, %v2167_v39 }
 0xa24   : > { %v7129_v29 = vadd.f32 %v7125_v19, %v2168_v51 }
 0xa26   : > { %v2170_v63 = vpack.c.bf16 %v7129_v29, %v7129_v29 }
 0xa28   : > { %2204 = vmatmul.mubr.bf16.vlgmr.msra.gmra.mxu1 %v2170_v63  ;;  %5367 = vmatmul.mubr.bf16.vlgmr.msra.gmra.mxu0 %v2170_v63 }
 0xa29   : > { %5372 = vmatprep.mubr.msk.bf16.mxu1 %vm6333_vm0, %v8166_v10  ;;  %5396 = vmatprep.mubr.msk.bf16.mxu0 %vm6333_vm0, %v8166_v10 }
 0xae8   : > { %v2205_v57 = vpop.f32.mrf.mxu1  ;;  %v2246_v1 = vpop.f32.mrf.mxu0 }
 0xae9   : > { %v2206_v45 = vadd.f32 %v2205_v57, %v6678_v36  ;;  %v7139_v12 = vadd.f32 %v2246_v1, %v6696_v48 }
 0xaea   : > { %v2207_v7 = vpop.f32.mrf.mxu1  ;;  %v5368_v0 = vpop.f32.mrf.mxu0 }
 0xaeb   : > { %v2208_v25 = vadd.f32 %v2207_v7, %v6674_v33  ;;  %2253 = vrot.lane.b32.xlu0 %v2206_v45, %s6335_s23  ;;  %v2290_v32 = vpack.c.bf16 %v7139_v12, %v7139_v12  ;;  %v2262_v51 = vpack.c.bf16 %v2206_v45, %v2206_v45 }
 0xaec   : > { %v2209_v21 = vpop.f32.mrf.mxu1  ;;  %v2249_v4 = vpop.f32.mrf.mxu0 }
 0xaed   : > { %2267 = vrot.lane.b32.xlu1 %v2208_v25, %s6335_s23  ;;  %v2530_v3 = vsel %vm1298_vm2, %v2290_v32, 0  ;;  %v2276_v27 = vpack.c.bf16 %v2208_v25, %v2208_v25 }
 0xaee   : > { %v2210_v5 = vpop.f32.mrf.mxu1  ;;  %v5369_v35 = vpop.f32.mrf.mxu0  ;;  %5395 = vmatpush3.bf16.msra.mxu0 %v2530_v3 }
 0xaef   : > { %2273 = vrot.lane.b32.xlu0 %v2208_v25, %s6336_s4  ;;  %v2298_v39 = vsel %vm1061_vm1, %v2276_v27, 0  ;;  %5406 = vmatprep.subr.bf16.mxu0 %v8166_v10 }
 0xaf0   : > { %5371 = vmatpush3.bf16.xpose.msra.mxu1 %v2298_v39 }
 0xaf1   : > { %2270 = vrot.lane.b32.xlu1 %v2208_v25, %s6334_s18  ;;  %5376 = vmatprep.subr.bf16.mxu1 %v8166_v10 }
 0xaf5   : > { %2256 = vrot.lane.b32.xlu1 %v2206_v45, %s6334_s18 }
 0xaf7   : > { %5373 = vmatmul.mubr.msk.bf16.vlgmr.msra.gmra.mxu1 %vm1061_vm1, %v2262_v51 }
 0xaf8   : > { %5378 = vmatprep.mubr.msk.bf16.mxu1 %vm6333_vm0, %v8166_v10 }
 0xaf9   : > { %2259 = vrot.lane.b32.xlu1 %v2206_v45, %s6336_s4 }
 0xb5d   : > { %v2254_v0 = vpop.permute.xlu0 %2253 }
 0xb5e   : > { %v2263_v32 = vpack.c.bf16 %v2254_v0, %v2254_v0 }
 0xb5f   : > { %v2268_v63 = vpop.permute.xlu1 %2267 }
 0xb60   : > { %v2277_v57 = vpack.c.bf16 %v2268_v63, %v2268_v63 }
 0xb61   : > { %v2274_v4 = vpop.permute.xlu0 %2273 }
 0xb62   : > { %v2344_v1 = vsel %vm1061_vm1, %v2277_v57, 0  ;;  %v2279_v3 = vpack.c.bf16 %v2274_v4, %v2274_v4 }
 0xb63   : > { %v2271_v7 = vpop.permute.xlu1 %2270  ;;  %5377 = vmatpush3.bf16.xpose.msra.mxu1 %v2344_v1 }
 0xb64   : > { %5382 = vmatprep.subr.bf16.mxu1 %v8166_v10  ;;  %v2278_v25 = vpack.c.bf16 %v2271_v7, %v2271_v7  ;;  %v2436_v5 = vsel %vm1061_vm1, %v2279_v3, 0 }
 0xb66   : > { %v2390_v21 = vsel %vm1061_vm1, %v2278_v25, 0 }
 0xb67   : > { %v2257_v45 = vpop.permute.xlu1 %2256 }
 0xb68   : > { %v2264_v27 = vpack.c.bf16 %v2257_v45, %v2257_v45 }
 0xb6a   : > { %5379 = vmatmul.mubr.msk.bf16.vlgmr.msra.gmra.mxu1 %vm1061_vm1, %v2263_v32 }
 0xb6b   : > { %5383 = vmatpush3.bf16.xpose.msra.mxu1 %v2390_v21  ;;  %5384 = vmatprep.mubr.msk.bf16.mxu1 %vm6333_vm0, %v8166_v10  ;;  %v2260_v35 = vpop.permute.xlu1 %2259 }
 0xb6c   : > { %5388 = vmatprep.subr.bf16.mxu1 %v8166_v10  ;;  %v2265_v39 = vpack.c.bf16 %v2260_v35, %v2260_v35 }
 0xb72   : > { %5385 = vmatmul.mubr.msk.bf16.vlgmr.msra.gmra.mxu1 %vm1061_vm1, %v2264_v27 }
 0xb73   : > { %5389 = vmatpush3.bf16.xpose.msra.mxu1 %v2436_v5  ;;  %5390 = vmatprep.mubr.msk.bf16.mxu1 %vm6333_vm0, %v8166_v10  ;;  %v7177_v5 = vld [vmem:[%s6619_s21] ss:$0 sm:$0xff] }
 0xb74   : > { %5400 = vmatprep.subr.bf16.mxu1 %v8166_v10  ;;  %8188 = vst [vmem:[#allocation89_spill] sm:$0xff] %v7177_v5 }
 0xb7a   : > { %5391 = vmatmul.mubr.msk.bf16.vlgmr.msra.gmra.mxu1 %vm1061_vm1, %v2265_v39 }
 0xb7b   : > { %5402 = vmatprep.mubr.msk.bf16.mxu1 %vm6333_vm0, %v8166_v10 }
 0xbb7   : > { %v2334_v51 = vpop.f32.mrf.mxu1 }
 0xbb8   : > { %v2335_v63 = vadd.f32 %v6721_v6, %v2334_v51 }
 0xbb9   : > { %v5374_v57 = vpop.f32.mrf.mxu1 }
 0xbba   : > { %v2478_v1 = vsel %vm1246_vm3, %v2335_v63, -inf }
 0xbbb   : > { %2479 = vmax.xlane.f32.xlu0 %v2478_v1  ;;  %v2337_v7 = vpop.f32.mrf.mxu1 }
 0xbbd   : > { %v5375_v0 = vpop.f32.mrf.mxu1 }
 0xc2a   : > { %v2380_v25 = vpop.f32.mrf.mxu1 }
 0xc2b   : > { %v2381_v32 = vadd.f32 %v6721_v6, %v2380_v25 }
 0xc2c   : > { %v5380_v21 = vpop.f32.mrf.mxu1 }
 0xc2d   : > { %v2481_v4 = vsel %vm1246_vm3, %v2381_v32, -inf }
 0xc2e   : > { %2482 = vmax.xlane.f32.xlu1 %v2481_v4  ;;  %v2383_v45 = vpop.f32.mrf.mxu1 }
 0xc30   : > { %v5381_v3 = vpop.f32.mrf.mxu1 }
 0xc32   : > { %v2426_v27 = vpop.f32.mrf.mxu1 }
 0xc33   : > { %v2427_v35 = vadd.f32 %v7177_v5, %v2426_v27 }
 0xc34   : > { %v5386_v39 = vpop.f32.mrf.mxu1 }
 0xc35   : > { %v2484_v51 = vsel %vm1246_vm3, %v2427_v35, -inf }
 0xc36   : > { %2485 = vmax.xlane.f32.xlu0 %v2484_v51  ;;  %v2429_v57 = vpop.f32.mrf.mxu1 }
 0xc38   : > { %v5387_v1 = vpop.f32.mrf.mxu1 }
 0xc3a   : > { %v2472_v7 = vpop.f32.mrf.mxu1 }
 0xc3b   : > { %v2473_v6 = vadd.f32 %v7177_v5, %v2472_v7 }
 0xc3c   : > { %v5392_v0 = vpop.f32.mrf.mxu1 }
 0xc3d   : > { %v2487_v25 = vsel %vm1246_vm3, %v2473_v6, -inf }
 0xc3e   : > { %2488 = vmax.xlane.f32.xlu0 %v2487_v25  ;;  %v2475_v21 = vpop.f32.mrf.mxu1 }
 0xc3f   : > { %2281 = vrot.lane.b32.xlu1 %v7139_v12, %s6335_s23 }
 0xc40   : > { %v5393_v4 = vpop.f32.mrf.mxu1 }
 0xc44   : > { %v2480_v45 = vpop.xlane.xlu0 %2479 }
 0xc45   : > { %v2490_v3 = vsub.f32 %v2335_v63, %v2480_v45 }
 0xc47   : > { %v2494_v27 = vmul.f32 1.442695, %v2490_v3 }
 0xc49   : > { %5866 = vpow2.f32 %v2494_v27 }
 0xc56   : > { %v5867_v39 = vpop.eup %5866 }
 0xc57   : > { %v2502_v51 = vsel %vm1246_vm3, %v5867_v39, 0.0 }
 0xc63   : > { %2503 = vadd.xlane.f32.xlu1 %v2502_v51 }
 0xcb7   : > { %v2483_v57 = vpop.xlane.xlu1 %2482 }
 0xcb8   : > { %v2491_v1 = vsub.f32 %v2381_v32, %v2483_v57 }
 0xcba   : > { %v2496_v7 = vmul.f32 1.442695, %v2491_v1 }
 0xcbb   : > { %v2282_v0 = vpop.permute.xlu1 %2281 }
 0xcbc   : > { %5868 = vpow2.f32 %v2496_v7  ;;  %v2291_v5 = vpack.c.bf16 %v2282_v0, %v2282_v0 }
 0xcbe   : > { %v2576_v25 = vsel %vm1298_vm2, %v2291_v5, 0 }
 0xcbf   : > { %5401 = vmatpush3.bf16.msra.mxu1 %v2576_v25  ;;  %v2486_v21 = vpop.xlane.xlu0 %2485 }
 0xcc0   : > { %v2492_v33 = vsub.f32 %v2427_v35, %v2486_v21  ;;  %5412 = vmatprep.subr.bf16.mxu1 %v8166_v10 }
 0xcc2   : > { %v2498_v63 = vmul.f32 1.442695, %v2492_v33 }
 0xcc4   : > { %5870 = vpow2.f32 %v2498_v63 }
 0xcc7   : > { %v2489_v4 = vpop.xlane.xlu0 %2488 }
 0xcc8   : > { %v2493_v45 = vsub.f32 %v2473_v6, %v2489_v4 }
 0xcc9   : > { %v5869_v3 = vpop.eup %5868 }
 0xcca   : > { %v2500_v27 = vmul.f32 1.442695, %v2493_v45  ;;  %v2505_v51 = vsel %vm1246_vm3, %v5869_v3, 0.0 }
 0xccb   : > { %2506 = vadd.xlane.f32.xlu0 %v2505_v51 }
 0xccc   : > { %5872 = vpow2.f32 %v2500_v27 }
 0xcd1   : > { %v5871_v32 = vpop.eup %5870 }
 0xcd2   : > { %v2508_v57 = vsel %vm1246_vm3, %v5871_v32, 0.0 }
 0xcd3   : > { %2509 = vadd.xlane.f32.xlu1 %v2508_v57 }
 0xcd9   : > { %v5873_v5 = vpop.eup %5872 }
 0xcda   : > { %v2511_v1 = vsel %vm1246_vm3, %v5873_v5, 0.0 }
 0xcdb   : > { %2512 = vadd.xlane.f32.xlu0 %v2511_v1 }
 0xce4   : > { %2287 = vrot.lane.b32.xlu1 %v7139_v12, %s6336_s4 }
 0xcec   : > { %v2504_v33 = vpop.xlane.xlu1 %2503 }
 0xced   : > { %5874 = vrcp.f32 %v2504_v33 }
 0xcf1   : > { %2284 = vrot.lane.b32.xlu0 %v7139_v12, %s6334_s18 }
 0xcfa   : > { %v5875_v35 = vpop.eup %5874 }
 0xcfb   : > { %v2518_v6 = vmul.f32 %v5875_v35, %v5867_v39 }
 0xcfd   : > { %v2522_v7 = vpack.c.bf16 %v2518_v6, %v2518_v6 }
 0xcff   : > { %5397 = vmatmul.mubr.msk.bf16.vlgmr.msra.gmra.mxu0 %vm1246_vm3, %v2522_v7 }
 0xd00   : > { %5408 = vmatprep.mubr.msk.bf16.mxu0 %vm6333_vm0, %v8166_v10 }
 0xd54   : > { %v2507_v0 = vpop.xlane.xlu0 %2506 }
 0xd55   : > { %5876 = vrcp.f32 %v2507_v0  ;;  %v8193_v0 = vld [vmem:[#allocation30_spill] sm:$0xff] }
 0xd5c   : > { %v2510_v25 = vpop.xlane.xlu1 %2509 }
 0xd5d   : > { %5878 = vrcp.f32 %v2510_v25  ;;  %v8194_v25 = vld [vmem:[#allocation31_spill] sm:$0xff] }
 0xd60   : > { %v2288_v21 = vpop.permute.xlu1 %2287 }
 0xd61   : > { %v2293_v4 = vpack.c.bf16 %v2288_v21, %v2288_v21  ;;  %v8195_v21 = vld [vmem:[#allocation32_spill] sm:$0xff] }
 0xd62   : > { %v5877_v63 = vpop.eup %5876 }
 0xd63   : > { %v2519_v45 = vmul.f32 %v5877_v63, %v5869_v3  ;;  %v2668_v12 = vsel %vm1298_vm2, %v2293_v4, 0  ;;  %v8197_v63 = vld [vmem:[#allocation34_spill] sm:$0xff]  ;;  %v8200_v4 = vld [vmem:[#allocation37_spill] sm:$0xff] }
 0xd64   : > { %v2513_v27 = vpop.xlane.xlu0 %2512 }
 0xd65   : > { %5880 = vrcp.f32 %v2513_v27  ;;  %v2523_v51 = vpack.c.bf16 %v2519_v45, %v2519_v45  ;;  %v8201_v45 = vld [vmem:[#allocation40_spill] sm:$0xff] }
 0xd67   : > { %5403 = vmatmul.mubr.msk.bf16.vlgmr.msra.gmra.mxu1 %vm1246_vm3, %v2523_v51  ;;  %v7268_v51 = vld [vmem:[%s7940_s5] ss:$0 sm:$0xff] }
 0xd68   : > { %5413 = vmatpush3.bf16.msra.mxu1 %v2668_v12  ;;  %v2285_v39 = vpop.permute.xlu0 %2284  ;;  %5414 = vmatprep.mubr.msk.bf16.mxu1 %vm6333_vm0, %v8166_v10 }
 0xd69   : > { %v2292_v57 = vpack.c.bf16 %v2285_v39, %v2285_v39  ;;  %2781 = vmatprep.subr.bf16.mxu1 %v6799_v13 }
 0xd6a   : > { %v5879_v1 = vpop.eup %5878 }
 0xd6b   : > { %v2622_v33 = vsel %vm1298_vm2, %v2292_v57, 0  ;;  %v2520_v35 = vmul.f32 %v5879_v1, %v5871_v32  ;;  %v8191_v32 = vld [vmem:[#allocation28_spill] sm:$0xff] }
 0xd6c   : > { %5407 = vmatpush3.bf16.msra.mxu0 %v2622_v33 }
 0xd6d   : > { %v2524_v3 = vpack.c.bf16 %v2520_v35, %v2520_v35  ;;  %5418 = vmatprep.subr.bf16.mxu0 %v8166_v10 }
 0xd6f   : > { %5409 = vmatmul.mubr.msk.bf16.vlgmr.msra.gmra.mxu0 %vm1246_vm3, %v2524_v3 }
 0xd70   : > { %5419 = vmatpush3.bf16.msra.mxu0 %v6757_v28  ;;  %5434 = vmatprep.mubr.msk.bf16.mxu0 %vm6333_vm0, %v8166_v10 }
 0xd71   : > { %5420 = vmatprep.subr.bf16.mxu0 %v8166_v10 }
 0xd72   : > { %v5881_v6 = vpop.eup %5880 }
 0xd73   : > { %v2521_v7 = vmul.f32 %v5881_v6, %v5873_v5  ;;  %v8192_v5 = vld [vmem:[#allocation29_spill] sm:$0xff] }
 0xd74   : > { %5421 = vmatpush3.bf16.msra.mxu0 %v6760_v34 }
 0xd75   : > { %v2525_v13 = vpack.c.bf16 %v2521_v7, %v2521_v7  ;;  %5422 = vmatprep.subr.bf16.mxu0 %v8166_v10 }
 0xd77   : > { %5415 = vmatmul.mubr.msk.bf16.vlgmr.msra.gmra.mxu1 %vm1246_vm3, %v2525_v13 }
 0xd78   : > { %5423 = vmatpush3.bf16.msra.mxu0 %v6764_v38  ;;  %2782 = vmatpush1.bf16.msra.mxu1 %v6803_v15 }
 0xd79   : > { %5424 = vmatprep.subr.bf16.mxu0 %v8166_v10  ;;  %2783 = vmatprep.subr.bf16.mxu1 %v6807_v16 }
 0xd7a   : > { %2813 = vmatprep.mubr.bf16.mxu1 %v8173_v61 }
 0xd7c   : > { %5425 = vmatpush3.bf16.msra.mxu0 %v6769_v40  ;;  %2784 = vmatpush1.bf16.msra.mxu1 %v6815_v23 }
 0xd7d   : > { %5426 = vmatprep.subr.bf16.mxu0 %v8166_v10  ;;  %2785 = vmatprep.subr.bf16.mxu1 %v6823_v24 }
 0xd80   : > { %5427 = vmatpush3.bf16.msra.mxu0 %v6772_v41  ;;  %2786 = vmatpush1.bf16.msra.mxu1 %v6827_v31 }
 0xd81   : > { %5428 = vmatprep.subr.bf16.mxu0 %v8166_v10  ;;  %2787 = vmatprep.subr.bf16.mxu1 %v6835_v37 }
 0xd84   : > { %5429 = vmatpush3.bf16.msra.mxu0 %v6777_v42  ;;  %2788 = vmatpush1.bf16.msra.mxu1 %v6839_v44 }
 0xd85   : > { %5430 = vmatprep.subr.bf16.mxu0 %v8166_v10  ;;  %2789 = vmatprep.subr.bf16.mxu1 %v6843_v49 }
 0xd88   : > { %5431 = vmatpush3.bf16.msra.mxu0 %v6780_v43  ;;  %2790 = vmatpush1.bf16.msra.mxu1 %v6851_v52 }
 0xd89   : > { %5432 = vmatprep.subr.bf16.mxu0 %v8166_v10  ;;  %2791 = vmatprep.subr.bf16.mxu1 %v6857_v54 }
 0xd8c   : > { %5433 = vmatpush3.bf16.msra.mxu0 %v6786_v47  ;;  %2792 = vmatpush1.bf16.msra.mxu1 %v6863_v56 }
 0xd8d   : > { %2822 = vmatprep.subr.bf16.mxu0 %v6801_v14  ;;  %2793 = vmatprep.subr.bf16.mxu1 %v6869_v58 }
 0xd90   : > { %2794 = vmatpush1.bf16.msra.mxu1 %v6875_v60 }
 0xd91   : > { %2795 = vmatprep.subr.bf16.mxu1 %v6881_v62 }
 0xd94   : > { %2796 = vmatpush1.bf16.msra.mxu1 %v6887_v2  ;;  %v8189_v2 = vld [vmem:[#allocation26_spill] sm:$0xff] }
 0xd95   : > { %5062 = vmatprep.subr.bf16.mxu1 %v6911_v22  ;;  %v8190_v22 = vld [vmem:[#allocation27_spill] sm:$0xff] }
 0xdbf   : > { %v2566_v28 = vpop.f32.mrf.mxu0 }
 0xdc1   : > { %v5398_v34 = vpop.f32.mrf.mxu0 }
 0xdc3   : > { %v2569_v38 = vpop.f32.mrf.mxu0 }
 0xdc5   : > { %v5399_v40 = vpop.f32.mrf.mxu0 }
 0xe27   : > { %v2612_v41 = vpop.f32.mrf.mxu1 }
 0xe28   : > { %2711 = vrot.lane.b32.xlu1 %v2612_v41, %s6336_s4  ;;  %v8202_v41 = vld [vmem:[#allocation38_spill] sm:$0xff] }
 0xe29   : > { %v5404_v42 = vpop.f32.mrf.mxu1 }
 0xe2b   : > { %v2615_v43 = vpop.f32.mrf.mxu1 }
 0xe2c   : > { %v8203_v43 = vld [vmem:[#allocation39_spill] sm:$0xff] }
 0xe2d   : > { %v5405_v47 = vpop.f32.mrf.mxu1 }
 0xe2f   : > { %v2658_v14 = vpop.f32.mrf.mxu0 }
 0xe30   : > { %2715 = vrot.lane.b32.xlu0 %v2658_v14, %s6334_s18  ;;  %v8204_v14 = vld [vmem:[#allocation41_spill] sm:$0xff] }
 0xe31   : > { %v5410_v15 = vpop.f32.mrf.mxu0 }
 0xe32   : > { %v8205_v15 = vld [vmem:[#allocation42_spill] sm:$0xff] }
 0xe33   : > { %v2661_v16 = vpop.f32.mrf.mxu0 }
 0xe34   : > { %v8206_v16 = vld [vmem:[#allocation43_spill] sm:$0xff] }
 0xe35   : > { %v5411_v23 = vpop.f32.mrf.mxu0 }
 0xe36   : > { %v8207_v23 = vld [vmem:[#allocation44_spill] sm:$0xff] }
 0xe37   : > { %v2704_v24 = vpop.f32.mrf.mxu1 }
 0xe38   : > { %2719 = vrot.lane.b32.xlu1 %v2704_v24, %s6335_s23  ;;  %v8208_v24 = vld [vmem:[#allocation45_spill] sm:$0xff] }
 0xe39   : > { %v5416_v31 = vpop.f32.mrf.mxu1 }
 0xe3a   : > { %v8209_v31 = vld [vmem:[#allocation46_spill] sm:$0xff] }
 0xe3b   : > { %v2707_v37 = vpop.f32.mrf.mxu1 }
 0xe3c   : > { %v8210_v37 = vld [vmem:[#allocation47_spill] sm:$0xff] }
 0xe3d   : > { %v5417_v44 = vpop.f32.mrf.mxu1 }
 0xe3e   : > { %v8211_v44 = vld [vmem:[#allocation48_spill] sm:$0xff] }
 0xe9a   : > { %v2712_v49 = vpop.permute.xlu1 %2711 }
 0xe9b   : > { %v2722_v54 = vsel %vm1061_vm1, %v2566_v28, %v2712_v49  ;;  %v8212_v49 = vld [vmem:[#allocation49_spill] sm:$0xff] }
 0xea2   : > { %v2716_v52 = vpop.permute.xlu0 %2715 }
 0xea3   : > { %v2723_v56 = vsel %vm1493_vm4, %v2722_v54, %v2716_v52  ;;  %v8213_v52 = vld [vmem:[#allocation50_spill] sm:$0xff]  ;;  %v8214_v54 = vld [vmem:[#allocation51_spill] sm:$0xff] }
 0xeaa   : > { %v2720_v58 = vpop.permute.xlu1 %2719 }
 0xeab   : > { %v2724_v60 = vsel %vm1495_vm5, %v2723_v56, %v2720_v58  ;;  %v8215_v56 = vld [vmem:[#allocation52_spill] sm:$0xff]  ;;  %v8216_v58 = vld [vmem:[#allocation53_spill] sm:$0xff] }
 0xeac   : > { %v2725_v62 = vpack.c.bf16 %v2724_v60, %v2724_v60  ;;  %v8217_v60 = vld [vmem:[#allocation54_spill] sm:$0xff] }
 0xeae   : > { %5435 = vmatmul.mubr.bf16.vlgmr.msra.gmra.mxu0 %v2725_v62  ;;  %v8218_v62 = vld [vmem:[#allocation55_spill] sm:$0xff] }
 0xeaf   : > { %2823 = vmatpush1.bf16.msra.mxu0 %v6805_v50  ;;  %2854 = vmatprep.mubr.bf16.mxu0 %v8173_v61  ;;  %v8196_v50 = vld [vmem:[#allocation33_spill] sm:$0xff] }
 0xeb0   : > { %2824 = vmatprep.subr.bf16.mxu0 %v6809_v17  ;;  %v8198_v17 = vld [vmem:[#allocation35_spill] sm:$0xff] }
 0xeb3   : > { %2825 = vmatpush1.bf16.msra.mxu0 %v6817_v18  ;;  %v8199_v18 = vld [vmem:[#allocation36_spill] sm:$0xff] }
 0xeb4   : > { %2826 = vmatprep.subr.bf16.mxu0 %v8189_v2  ;;  %v8219_v2 = vld [vmem:[#allocation56_spill] sm:$0xff] }
 0xeb7   : > { %2827 = vmatpush1.bf16.msra.mxu0 %v8190_v22  ;;  %v8220_v22 = vld [vmem:[#allocation57_spill] sm:$0xff] }
 0xeb8   : > { %2828 = vmatprep.subr.bf16.mxu0 %v8191_v32  ;;  %v8221_v32 = vld [vmem:[#allocation58_spill] sm:$0xff] }
 0xebb   : > { %2829 = vmatpush1.bf16.msra.mxu0 %v8192_v5  ;;  %v8222_v5 = vld [vmem:[#allocation59_spill] sm:$0xff] }
 0xebc   : > { %2830 = vmatprep.subr.bf16.mxu0 %v8193_v0  ;;  %v8223_v0 = vld [vmem:[#allocation60_spill] sm:$0xff] }
 0xebf   : > { %2831 = vmatpush1.bf16.msra.mxu0 %v8194_v25  ;;  %v8224_v25 = vld [vmem:[#allocation61_spill] sm:$0xff] }
 0xec0   : > { %2832 = vmatprep.subr.bf16.mxu0 %v8195_v21  ;;  %v8225_v21 = vld [vmem:[#allocation62_spill] sm:$0xff] }
 0xec3   : > { %2833 = vmatpush1.bf16.msra.mxu0 %v8196_v50  ;;  %v8226_v50 = vld [vmem:[#allocation63_spill] sm:$0xff] }
 0xec4   : > { %2834 = vmatprep.subr.bf16.mxu0 %v8197_v63  ;;  %v8227_v63 = vld [vmem:[#allocation64_spill] sm:$0xff] }
 0xec7   : > { %2835 = vmatpush1.bf16.msra.mxu0 %v8198_v17  ;;  %v8228_v17 = vld [vmem:[#allocation65_spill] sm:$0xff] }
 0xec8   : > { %2836 = vmatprep.subr.bf16.mxu0 %v8199_v18  ;;  %v8229_v18 = vld [vmem:[#allocation66_spill] sm:$0xff] }
 0xecb   : > { %2837 = vmatpush1.bf16.msra.mxu0 %v8200_v4  ;;  %v8230_v4 = vld [vmem:[#allocation67_spill] sm:$0xff] }
 0xecc   : > { %5084 = vmatprep.subr.bf16.mxu0 %v8201_v45  ;;  %v8231_v45 = vld [vmem:[#allocation68_spill] sm:$0xff] }
 0xf6e   : > { %v2760_v27 = vpop.f32.mrf.mxu0 }
 0xf6f   : > { %v2761_v12 = vadd.f32 %v7268_v51, %v2760_v27  ;;  %v8232_v27 = vld [vmem:[#allocation69_spill] sm:$0xff] }
 0xf70   : > { %v5436_v39 = vpop.f32.mrf.mxu0 }
 0xf71   : > { %v2766_v57 = vadd.f32 %v2761_v12, %v7129_v29  ;;  %v8233_v12 = vld [vmem:[#allocation70_spill] sm:$0xff]  ;;  %v8234_v39 = vld [vmem:[#allocation71_spill] sm:$0xff] }
 0xf72   : > { %v2763_v1 = vpop.f32.mrf.mxu0 }
 0xf73   : > { %2767 = vadd.xlane.f32.xlu0 %v2766_v57 }
 0xf74   : > { %v5437_v33 = vpop.f32.mrf.mxu0 }
 0xf75   : > { %v8235_v33 = vld [vmem:[#allocation72_spill] sm:$0xff] }
 0xffc   : > { %v2768_v35 = vpop.xlane.xlu0 %2767 }
 0xffd   : > { %v2769_v3 = vmul.f32 0.0078125, %v2768_v35 }
 0xfff   : > { %v2770_v6 = vsub.f32 %v2766_v57, %v2769_v3  ;;  %v8236_v3 = vld [vmem:[#allocation73_spill] sm:$0xff] }
0x1001   : > { %v2771_v7 = vmul.f32 %v2770_v6, %v2770_v6 }
0x1003   : > { %2772 = vadd.xlane.f32.xlu1 %v2771_v7 }
0x108c   : > { %v2773_v13 = vpop.xlane.xlu1 %2772 }
0x108d   : > { %v2774_v28 = vmul.f32 0.0078125, %v2773_v13 }
0x108f   : > { %v2775_v34 = vadd.f32 1e-12, %v2774_v28 }
0x1091   : > { %5882 = vrsqrt.f32 %v2775_v34 }
0x109e   : > { %v5883_v38 = vpop.eup %5882 }
0x109f   : > { %v2777_v40 = vmul.f32 %v5883_v38, %v2770_v6  ;;  %v8237_v38 = vld [vmem:[#allocation74_spill] sm:$0xff] }
0x10a1   : > { %v2778_v42 = vmul.f32 %v8202_v41, %v2777_v40 }
0x10a3   : > { %v7274_v47 = vadd.f32 %v8203_v43, %v2778_v42 }
0x10a5   : > { %v2780_v29 = vpack.c.bf16 %v7274_v47, %v7274_v47 }
0x10a7   : > { %2814 = vmatmul.mubr.bf16.vlgmr.msra.gmra.mxu1 %v2780_v29  ;;  %2855 = vmatmul.mubr.bf16.vlgmr.msra.gmra.mxu0 %v2780_v29 }
0x10a8   : > { %5063 = vmatpush3.bf16.msra.mxu1 %v8204_v14  ;;  %5085 = vmatpush3.bf16.msra.mxu0 %v8205_v15 }
0x10a9   : > { %5064 = vmatprep.subr.bf16.mxu1 %v8206_v16  ;;  %5086 = vmatprep.subr.bf16.mxu0 %v8207_v23 }
0x10ac   : > { %5065 = vmatpush3.bf16.msra.mxu1 %v8208_v24  ;;  %5087 = vmatpush3.bf16.msra.mxu0 %v8209_v31 }
0x10ad   : > { %5066 = vmatprep.subr.bf16.mxu1 %v8210_v37  ;;  %5088 = vmatprep.subr.bf16.mxu0 %v8211_v44 }
0x10b0   : > { %5067 = vmatpush3.bf16.msra.mxu1 %v8212_v49  ;;  %5089 = vmatpush3.bf16.msra.mxu0 %v8213_v52 }
0x10b1   : > { %5068 = vmatprep.subr.bf16.mxu1 %v8214_v54  ;;  %5090 = vmatprep.subr.bf16.mxu0 %v8215_v56 }
0x10b4   : > { %5069 = vmatpush3.bf16.msra.mxu1 %v8216_v58  ;;  %5091 = vmatpush3.bf16.msra.mxu0 %v8217_v60 }
0x10b5   : > { %5070 = vmatprep.subr.bf16.mxu1 %v8218_v62  ;;  %5092 = vmatprep.subr.bf16.mxu0 %v8219_v2 }
0x10b8   : > { %5071 = vmatpush3.bf16.msra.mxu1 %v8220_v22  ;;  %5093 = vmatpush3.bf16.msra.mxu0 %v8221_v32 }
0x10b9   : > { %5072 = vmatprep.subr.bf16.mxu1 %v8222_v5  ;;  %5094 = vmatprep.subr.bf16.mxu0 %v8223_v0 }
0x10bc   : > { %5073 = vmatpush3.bf16.msra.mxu1 %v8224_v25  ;;  %5095 = vmatpush3.bf16.msra.mxu0 %v8225_v21 }
0x10bd   : > { %5074 = vmatprep.subr.bf16.mxu1 %v8226_v50  ;;  %5096 = vmatprep.subr.bf16.mxu0 %v8227_v63 }
0x10c0   : > { %5075 = vmatpush3.bf16.msra.mxu1 %v8228_v17  ;;  %5097 = vmatpush3.bf16.msra.mxu0 %v8229_v18 }
0x10c1   : > { %5076 = vmatprep.subr.bf16.mxu1 %v8230_v4  ;;  %5098 = vmatprep.subr.bf16.mxu0 %v8231_v45 }
0x10c4   : > { %5077 = vmatpush3.bf16.msra.mxu1 %v8232_v27  ;;  %5099 = vmatpush3.bf16.msra.mxu0 %v8233_v12 }
0x10c5   : > { %2998 = vmatprep.subr.bf16.mxu1 %v8234_v39  ;;  %5438 = vmatprep.subr.bf16.mxu0 %v8166_v10 }
0x1167   : > { %v2815_v57 = vpop.f32.mrf.mxu1  ;;  %v2856_v1 = vpop.f32.mrf.mxu0 }
0x1168   : > { %v2816_v35 = vadd.f32 %v2815_v57, %v8235_v33  ;;  %v2857_v6 = vadd.f32 %v2856_v1, %v8236_v3 }
0x1169   : > { %v2817_v7 = vpop.f32.mrf.mxu1  ;;  %v2858_v13 = vpop.f32.mrf.mxu0 }
0x116a   : > { %v2863_v28 = vmul.f32 %v2816_v35, %v2816_v35  ;;  %v2865_v34 = vmul.f32 %v2857_v6, %v2857_v6  ;;  %v2818_v40 = vadd.f32 %v2817_v7, %v8237_v38  ;;  %v2859_v41 = vadd.f32 %v2858_v13, %v7027_v8 }
0x116b   : > { %v2819_v42 = vpop.f32.mrf.mxu1  ;;  %v2860_v43 = vpop.f32.mrf.mxu0 }
0x116c   : > { %v2867_v29 = vmul.f32 %v2863_v28, %v2816_v35  ;;  %v2869_v14 = vmul.f32 %v2865_v34, %v2857_v6  ;;  %v2864_v15 = vmul.f32 %v2818_v40, %v2818_v40  ;;  %v2866_v16 = vmul.f32 %v2859_v41, %v2859_v41 }
0x116d   : > { %v2820_v23 = vpop.f32.mrf.mxu1  ;;  %v2861_v24 = vpop.f32.mrf.mxu0 }
0x116e   : > { %v2871_v31 = vmul.f32 0.044715, %v2867_v29  ;;  %v2873_v37 = vmul.f32 0.044715, %v2869_v14  ;;  %v2868_v44 = vmul.f32 %v2864_v15, %v2818_v40  ;;  %v2870_v49 = vmul.f32 %v2866_v16, %v2859_v41  ;;  %v8249_v29 = vld [vmem:[#allocation86_spill] sm:$0xff]  ;;  %v8250_v15 = vld [vmem:[#allocation87_spill] sm:$0xff] }
0x116f   : > { %v7342_v14 = vld [vmem:[#allocation7 + $0x20] ss:$12 sps:$4 sm:$0xff]   ;;  %v7348_v23 = vld [vmem:[#allocation7 + $0x8] ss:$12 sps:$4 sm:$0xff]  }
0x1170   : > { %v2875_v52 = vadd.f32 %v2871_v31, %v2816_v35  ;;  %v2877_v54 = vadd.f32 %v2873_v37, %v2857_v6  ;;  %v2872_v56 = vmul.f32 0.044715, %v2868_v44  ;;  %v2874_v58 = vmul.f32 0.044715, %v2870_v49  ;;  %v8251_v16 = vld [vmem:[#allocation88_spill] sm:$0xff] }
0x1172   : > { %v2879_v60 = vmul.f32 0.7978846, %v2875_v52  ;;  %v2881_v62 = vmul.f32 0.7978846, %v2877_v54  ;;  %v2876_v2 = vadd.f32 %v2872_v56, %v2818_v40  ;;  %v2878_v22 = vadd.f32 %v2874_v58, %v2859_v41 }
0x1174   : > { %5884 = vtanh.f32 %v2879_v60  ;;  %v2880_v32 = vmul.f32 0.7978846, %v2876_v2  ;;  %v2882_v5 = vmul.f32 0.7978846, %v2878_v22 }
0x1175   : > { %5886 = vtanh.f32 %v2881_v62 }
0x1176   : > { %5888 = vtanh.f32 %v2880_v32 }
0x1177   : > { %5890 = vtanh.f32 %v2882_v5 }
0x1181   : > { %v5885_v0 = vpop.eup %5884 }
0x1182   : > { %v5887_v25 = vpop.eup %5886  ;;  %v2887_v21 = vadd.f32 1.0, %v5885_v0 }
0x1183   : > { %v5889_v50 = vpop.eup %5888  ;;  %v2889_v63 = vadd.f32 1.0, %v5887_v25 }
0x1184   : > { %v5891_v17 = vpop.eup %5890  ;;  %v2888_v18 = vadd.f32 1.0, %v5889_v50  ;;  %v2891_v4 = vmul.f32 0.5, %v2887_v21 }
0x1185   : > { %v2890_v45 = vadd.f32 1.0, %v5891_v17  ;;  %v2893_v27 = vmul.f32 0.5, %v2889_v63 }
0x1186   : > { %v2892_v12 = vmul.f32 0.5, %v2888_v18  ;;  %v2895_v57 = vmul.f32 %v2891_v4, %v2816_v35  ;;  %v8241_v35 = vld [vmem:[#allocation78_spill] sm:$0xff] }
0x1187   : > { %v2894_v39 = vmul.f32 0.5, %v2890_v45  ;;  %v2897_v7 = vmul.f32 %v2893_v27, %v2857_v6  ;;  %v8242_v6 = vld [vmem:[#allocation79_spill] sm:$0xff] }
0x1188   : > { %v2896_v1 = vmul.f32 %v2892_v12, %v2818_v40  ;;  %v2899_v42 = vpack.c.bf16 %v2895_v57, %v2895_v57  ;;  %v8247_v40 = vld [vmem:[#allocation84_spill] sm:$0xff]  ;;  %v8252_v57 = vld [vmem:[#allocation25_spill] sm:$0xff] }
0x1189   : > { %v2898_v13 = vmul.f32 %v2894_v39, %v2859_v41  ;;  %v2901_v43 = vpack.c.bf16 %v2897_v7, %v2897_v7  ;;  %v8248_v41 = vld [vmem:[#allocation85_spill] sm:$0xff] }
0x118a   : > { %v2900_v28 = vpack.c.bf16 %v2896_v1, %v2896_v1 }
0x118b   : > { %v2902_v34 = vpack.c.bf16 %v2898_v13, %v2898_v13 }
0x118c   : > { %2935 = vmatprep.mubr.bf16.mxu1 %v2900_v28 }
0x118d   : > { %2975 = vmatprep.mubr.bf16.mxu0 %v2902_v34  ;;  %2936 = vmatmul.mubr.bf16.vlgmr.msra.gmra.mxu1 %v2899_v42 }
0x118e   : > { %2976 = vmatmul.mubr.bf16.vlgmr.msra.gmra.mxu0 %v2901_v43  ;;  %2999 = vmatpush1.bf16.msra.mxu1 %v7033_v59  ;;  %v8238_v59 = vld [vmem:[#allocation75_spill] sm:$0xff] }
0x118f   : > { %5439 = vmatpush3.bf16.msra.mxu0 %v7036_v30  ;;  %3000 = vmatprep.subr.bf16.mxu1 %v7039_v11  ;;  %v8239_v30 = vld [vmem:[#allocation76_spill] sm:$0xff]  ;;  %v8240_v11 = vld [vmem:[#allocation77_spill] sm:$0xff] }
0x1190   : > { %5440 = vmatprep.subr.bf16.mxu0 %v8166_v10  ;;  %3030 = vmatprep.mubr.bf16.mxu1 %v8173_v61 }
0x1191   : > { %5454 = vmatprep.mubr.msk.bf16.mxu0 %vm6333_vm0, %v8166_v10 }
0x1192   : > { %3001 = vmatpush1.bf16.msra.mxu1 %v7046_v9  ;;  %v8243_v9 = vld [vmem:[#allocation80_spill] sm:$0xff] }
0x1193   : > { %5441 = vmatpush3.bf16.msra.mxu0 %v7049_v20  ;;  %3002 = vmatprep.subr.bf16.mxu1 %v7052_v55  ;;  %v8244_v20 = vld [vmem:[#allocation81_spill] sm:$0xff]  ;;  %v8245_v55 = vld [vmem:[#allocation82_spill] sm:$0xff] }
0x1194   : > { %5442 = vmatprep.subr.bf16.mxu0 %v8166_v10 }
0x1196   : > { %3003 = vmatpush1.bf16.msra.mxu1 %v7056_v53  ;;  %v8246_v53 = vld [vmem:[#allocation83_spill] sm:$0xff] }
0x1197   : > { %5443 = vmatpush3.bf16.msra.mxu0 %v8238_v59  ;;  %3004 = vmatprep.subr.bf16.mxu1 %v8239_v30 }
0x1198   : > { %5444 = vmatprep.subr.bf16.mxu0 %v8166_v10 }
0x119a   : > { %3005 = vmatpush1.bf16.msra.mxu1 %v8240_v11 }
0x119b   : > { %5445 = vmatpush3.bf16.msra.mxu0 %v8241_v35  ;;  %3006 = vmatprep.subr.bf16.mxu1 %v8242_v6 }
0x119c   : > { %5446 = vmatprep.subr.bf16.mxu0 %v8166_v10 }
0x119e   : > { %3007 = vmatpush1.bf16.msra.mxu1 %v8243_v9 }
0x119f   : > { %5447 = vmatpush3.bf16.msra.mxu0 %v8244_v20  ;;  %3008 = vmatprep.subr.bf16.mxu1 %v8245_v55 }
0x11a0   : > { %5448 = vmatprep.subr.bf16.mxu0 %v8166_v10 }
0x11a2   : > { %3009 = vmatpush1.bf16.msra.mxu1 %v8246_v53 }
0x11a3   : > { %5449 = vmatpush3.bf16.msra.mxu0 %v8247_v40  ;;  %3010 = vmatprep.subr.bf16.mxu1 %v8248_v41 }
0x11a4   : > { %5450 = vmatprep.subr.bf16.mxu0 %v8166_v10 }
0x11a6   : > { %3011 = vmatpush1.bf16.msra.mxu1 %v8249_v29 }
0x11a7   : > { %5451 = vmatpush3.bf16.msra.mxu0 %v7342_v14  ;;  %3012 = vmatprep.subr.bf16.mxu1 %v8250_v15 }
0x11a8   : > { %5452 = vmatprep.subr.bf16.mxu0 %v8166_v10 }
0x11aa   : > { %3013 = vmatpush1.bf16.msra.mxu1 %v8251_v16 }
0x11ab   : > { %5453 = vmatpush3.bf16.msra.mxu0 %v7348_v23  ;;  %5458 = vmatprep.subr.bf16.mxu1 %v8166_v10 }
0x11ac   : > { %5482 = vmatprep.subr.bf16.mxu0 %v8166_v10 }
0x124d   : > { %v5078_v24 = vpop.f32.mrf.mxu1 }
0x124e   : > { %v5100_v31 = vpop.f32.mrf.mxu0 }
0x124f   : > { %v5079_v37 = vpop.f32.mrf.mxu1 }
0x1250   : > { %v5080_v44 = vadd.f32 %v5079_v37, %v5078_v24  ;;  %v5101_v49 = vpop.f32.mrf.mxu0 }
0x1251   : > { %v5081_v52 = vpop.f32.mrf.mxu1  ;;  %v5102_v56 = vadd.f32 %v5101_v49, %v5100_v31 }
0x1252   : > { %v2938_v54 = vadd.f32 %v5080_v44, %v7113_v26  ;;  %v5103_v58 = vpop.f32.mrf.mxu0  ;;  %v8253_v52 = vld [vmem:[#allocation89_spill] sm:$0xff] }
0x1253   : > { %v5082_v60 = vpop.f32.mrf.mxu1 }
0x1254   : > { %v2978_v62 = vadd.f32 %v5102_v56, %v2938_v54  ;;  %v5104_v2 = vpop.f32.mrf.mxu0 }
0x1256   : > { %v2983_v22 = vadd.f32 %v2978_v62, %v7274_v47 }
0x1258   : > { %2984 = vadd.xlane.f32.xlu0 %v2983_v22 }
0x12e1   : > { %v2985_v32 = vpop.xlane.xlu0 %2984 }
0x12e2   : > { %v2986_v5 = vmul.f32 0.0078125, %v2985_v32 }
0x12e4   : > { %v2987_v0 = vsub.f32 %v2983_v22, %v2986_v5 }
0x12e6   : > { %v2988_v25 = vmul.f32 %v2987_v0, %v2987_v0 }
0x12e8   : > { %2989 = vadd.xlane.f32.xlu0 %v2988_v25 }
0x1371   : > { %v2990_v21 = vpop.xlane.xlu0 %2989 }
0x1372   : > { %v2991_v50 = vmul.f32 0.0078125, %v2990_v21 }
0x1374   : > { %v2992_v63 = vadd.f32 1e-12, %v2991_v50 }
0x1376   : > { %5892 = vrsqrt.f32 %v2992_v63 }
0x1383   : > { %v5893_v17 = vpop.eup %5892 }
0x1384   : > { %v2994_v18 = vmul.f32 %v5893_v17, %v2987_v0 }
0x1386   : > { %v2995_v26 = vmul.f32 %v7120_v46, %v2994_v18 }
0x1388   : > { %v7357_v4 = vadd.f32 %v7125_v19, %v2995_v26 }
0x138a   : > { %v2997_v47 = vpack.c.bf16 %v7357_v4, %v7357_v4 }
0x138c   : > { %3031 = vmatmul.mubr.bf16.vlgmr.msra.gmra.mxu1 %v2997_v47  ;;  %5455 = vmatmul.mubr.bf16.vlgmr.msra.gmra.mxu0 %v2997_v47 }
0x138d   : > { %5460 = vmatprep.mubr.msk.bf16.mxu1 %vm6333_vm0, %v8166_v10  ;;  %5484 = vmatprep.mubr.msk.bf16.mxu0 %vm6333_vm0, %v8166_v10 }
0x144c   : > { %v3032_v45 = vpop.f32.mrf.mxu1  ;;  %v3073_v27 = vpop.f32.mrf.mxu0 }
0x144d   : > { %v3033_v12 = vadd.f32 %v3032_v45, %v6678_v36  ;;  %v7367_v46 = vadd.f32 %v3073_v27, %v6696_v48 }
0x144e   : > { %v3034_v19 = vpop.f32.mrf.mxu1  ;;  %v5456_v39 = vpop.f32.mrf.mxu0 }
0x144f   : > { %v3035_v1 = vadd.f32 %v3034_v19, %v8252_v57  ;;  %3080 = vrot.lane.b32.xlu0 %v3033_v12, %s6335_s23  ;;  %v3117_v7 = vpack.c.bf16 %v7367_v46, %v7367_v46  ;;  %v3089_v11 = vpack.c.bf16 %v3033_v12, %v3033_v12 }
0x1450   : > { %v3036_v13 = vpop.f32.mrf.mxu1  ;;  %v3076_v28 = vpop.f32.mrf.mxu0 }
0x1451   : > { %3094 = vrot.lane.b32.xlu1 %v3035_v1, %s6335_s23  ;;  %v3357_v34 = vsel %vm1298_vm2, %v3117_v7, 0  ;;  %v3103_v42 = vpack.c.bf16 %v3035_v1, %v3035_v1 }
0x1452   : > { %v3037_v43 = vpop.f32.mrf.mxu1  ;;  %v5457_v59 = vpop.f32.mrf.mxu0  ;;  %5483 = vmatpush3.bf16.msra.mxu0 %v3357_v34 }
0x1453   : > { %3100 = vrot.lane.b32.xlu0 %v3035_v1, %s6336_s4  ;;  %v3125_v30 = vsel %vm1061_vm1, %v3103_v42, 0  ;;  %5494 = vmatprep.subr.bf16.mxu0 %v8166_v10 }
0x1454   : > { %5459 = vmatpush3.bf16.xpose.msra.mxu1 %v3125_v30 }
0x1455   : > { %3097 = vrot.lane.b32.xlu1 %v3035_v1, %s6334_s18  ;;  %5464 = vmatprep.subr.bf16.mxu1 %v8166_v10 }
0x1459   : > { %3083 = vrot.lane.b32.xlu1 %v3033_v12, %s6334_s18 }
0x145b   : > { %5461 = vmatmul.mubr.msk.bf16.vlgmr.msra.gmra.mxu1 %vm1061_vm1, %v3089_v11 }
0x145c   : > { %5466 = vmatprep.mubr.msk.bf16.mxu1 %vm6333_vm0, %v8166_v10 }
0x145d   : > { %3086 = vrot.lane.b32.xlu1 %v3033_v12, %s6336_s4 }
0x14c1   : > { %v3081_v55 = vpop.permute.xlu0 %3080 }
0x14c2   : > { %v3090_v40 = vpack.c.bf16 %v3081_v55, %v3081_v55 }
0x14c3   : > { %v3095_v35 = vpop.permute.xlu1 %3094 }
0x14c4   : > { %v3104_v6 = vpack.c.bf16 %v3095_v35, %v3095_v35 }
0x14c5   : > { %v3101_v29 = vpop.permute.xlu0 %3100 }
0x14c6   : > { %v3171_v9 = vsel %vm1061_vm1, %v3104_v6, 0  ;;  %v3106_v16 = vpack.c.bf16 %v3101_v29, %v3101_v29 }
0x14c7   : > { %v3098_v20 = vpop.permute.xlu1 %3097  ;;  %5465 = vmatpush3.bf16.xpose.msra.mxu1 %v3171_v9 }
0x14c8   : > { %5470 = vmatprep.subr.bf16.mxu1 %v8166_v10  ;;  %v3105_v53 = vpack.c.bf16 %v3098_v20, %v3098_v20  ;;  %v3263_v31 = vsel %vm1061_vm1, %v3106_v16, 0 }
0x14ca   : > { %v3217_v41 = vsel %vm1061_vm1, %v3105_v53, 0 }
0x14cb   : > { %v3084_v15 = vpop.permute.xlu1 %3083 }
0x14cc   : > { %v3091_v24 = vpack.c.bf16 %v3084_v15, %v3084_v15 }
0x14ce   : > { %5467 = vmatmul.mubr.msk.bf16.vlgmr.msra.gmra.mxu1 %vm1061_vm1, %v3090_v40 }
0x14cf   : > { %5471 = vmatpush3.bf16.xpose.msra.mxu1 %v3217_v41  ;;  %5472 = vmatprep.mubr.msk.bf16.mxu1 %vm6333_vm0, %v8166_v10  ;;  %v3087_v37 = vpop.permute.xlu1 %3086 }
0x14d0   : > { %5476 = vmatprep.subr.bf16.mxu1 %v8166_v10  ;;  %v3092_v44 = vpack.c.bf16 %v3087_v37, %v3087_v37 }
0x14d6   : > { %5473 = vmatmul.mubr.msk.bf16.vlgmr.msra.gmra.mxu1 %vm1061_vm1, %v3091_v24 }
0x14d7   : > { %5477 = vmatpush3.bf16.xpose.msra.mxu1 %v3263_v31  ;;  %5478 = vmatprep.mubr.msk.bf16.mxu1 %vm6333_vm0, %v8166_v10 }
0x14d8   : > { %5488 = vmatprep.subr.bf16.mxu1 %v8166_v10 }
0x14de   : > { %5479 = vmatmul.mubr.msk.bf16.vlgmr.msra.gmra.mxu1 %vm1061_vm1, %v3092_v44 }
0x14df   : > { %5490 = vmatprep.mubr.msk.bf16.mxu1 %vm6333_vm0, %v8166_v10 }
0x151b   : > { %v3161_v49 = vpop.f32.mrf.mxu1 }
0x151c   : > { %v3162_v54 = vadd.f32 %v8253_v52, %v3161_v49 }
0x151d   : > { %v5462_v56 = vpop.f32.mrf.mxu1 }
0x151e   : > { %v3305_v58 = vsel %vm1246_vm3, %v3162_v54, -inf }
0x151f   : > { %3306 = vmax.xlane.f32.xlu0 %v3305_v58  ;;  %v3164_v60 = vpop.f32.mrf.mxu1 }
0x1521   : > { %v5463_v62 = vpop.f32.mrf.mxu1 }
0x158e   : > { %v3207_v2 = vpop.f32.mrf.mxu1 }
0x158f   : > { %v3208_v22 = vadd.f32 %v8253_v52, %v3207_v2 }
0x1590   : > { %v5468_v32 = vpop.f32.mrf.mxu1 }
0x1591   : > { %v3308_v5 = vsel %vm1246_vm3, %v3208_v22, -inf }
0x1592   : > { %3309 = vmax.xlane.f32.xlu1 %v3308_v5  ;;  %v3210_v0 = vpop.f32.mrf.mxu1 }
0x1594   : > { %v5469_v25 = vpop.f32.mrf.mxu1 }
0x1595   : > { %v7427_v25 = vld [vmem:[#allocation10 + $0xe4] ss:$16 sps:$4 sm:$0xff]  }
0x1596   : > { %v3253_v21 = vpop.f32.mrf.mxu1 }
0x1597   : > { %v3254_v50 = vadd.f32 %v8253_v52, %v3253_v21 }
0x1598   : > { %v5474_v63 = vpop.f32.mrf.mxu1 }
0x1599   : > { %v3311_v17 = vsel %vm1246_vm3, %v3254_v50, -inf }
0x159a   : > { %3312 = vmax.xlane.f32.xlu0 %v3311_v17  ;;  %v3256_v18 = vpop.f32.mrf.mxu1 }
0x159b   : > { %v7433_v18 = vld [vmem:[#allocation8 + $0x38] sm:$0xff]  }
0x159c   : > { %v5475_v26 = vpop.f32.mrf.mxu1 }
0x159e   : > { %v3299_v47 = vpop.f32.mrf.mxu1 }
0x159f   : > { %v3300_v45 = vadd.f32 %v8253_v52, %v3299_v47 }
0x15a0   : > { %v5480_v27 = vpop.f32.mrf.mxu1 }
0x15a1   : > { %v3314_v12 = vsel %vm1246_vm3, %v3300_v45, -inf }
0x15a2   : > { %3315 = vmax.xlane.f32.xlu0 %v3314_v12  ;;  %v3302_v19 = vpop.f32.mrf.mxu1  ;;  %v7444_v12 = vld [vmem:[#allocation8 + $0x28] sm:$0xff]  }
0x15a3   : > { %3108 = vrot.lane.b32.xlu1 %v7367_v46, %s6335_s23  ;;  %v7447_v19 = vld [vmem:[#allocation10 + $0xe0] ss:$16 sps:$4 sm:$0xff]  }
0x15a4   : > { %v5481_v39 = vpop.f32.mrf.mxu1 }
0x15a5   : > { %v7451_v39 = vld [vmem:[#allocation10 + $0xc4] ss:$16 sps:$4 sm:$0xff]  }
0x15a8   : > { %v3307_v1 = vpop.xlane.xlu0 %3306 }
0x15a9   : > { %v3317_v7 = vsub.f32 %v3162_v54, %v3307_v1  ;;  %v7455_v1 = vld [vmem:[#allocation8 + $0x20] sm:$0xff]  }
0x15ab   : > { %v3321_v13 = vmul.f32 1.442695, %v3317_v7  ;;  %v7458_v7 = vld [vmem:[#allocation10 + $0xc0] ss:$16 sps:$4 sm:$0xff]  }
0x15ad   : > { %5894 = vpow2.f32 %v3321_v13  ;;  %v7462_v13 = vld [vmem:[#allocation10 + $0xa4] ss:$16 sps:$4 sm:$0xff]  }
0x15ba   : > { %v5895_v28 = vpop.eup %5894 }
0x15bb   : > { %v3329_v34 = vsel %vm1246_vm3, %v5895_v28, 0.0 }
0x15c7   : > { %3330 = vadd.xlane.f32.xlu1 %v3329_v34  ;;  %v7468_v34 = vld [vmem:[#allocation10 + $0xa0] ss:$16 sps:$4 sm:$0xff]  }
0x161b   : > { %v3310_v42 = vpop.xlane.xlu1 %3309 }
0x161c   : > { %v3318_v43 = vsub.f32 %v3208_v22, %v3310_v42  ;;  %v7472_v42 = vld [vmem:[#allocation10 + $0x84] ss:$16 sps:$4 sm:$0xff]  }
0x161e   : > { %v3323_v59 = vmul.f32 1.442695, %v3318_v43  ;;  %v7475_v43 = vld [vmem:[#allocation8 + $0x10] sm:$0xff]  }
0x161f   : > { %v3109_v30 = vpop.permute.xlu1 %3108 }
0x1620   : > { %5896 = vpow2.f32 %v3323_v59  ;;  %v3118_v11 = vpack.c.bf16 %v3109_v30, %v3109_v30  ;;  %v7478_v59 = vld [vmem:[#allocation10 + $0x80] ss:$16 sps:$4 sm:$0xff]   ;;  %v7482_v30 = vld [vmem:[#allocation10 + $0x64] ss:$16 sps:$4 sm:$0xff]  }
0x1622   : > { %v3403_v35 = vsel %vm1298_vm2, %v3118_v11, 0  ;;  %v7485_v11 = vld [vmem:[#allocation8 + $0x8] sm:$0xff]  }
0x1623   : > { %5489 = vmatpush3.bf16.msra.mxu1 %v3403_v35  ;;  %v3313_v6 = vpop.xlane.xlu0 %3312  ;;  %v7488_v35 = vld [vmem:[#allocation10 + $0x60] ss:$16 sps:$4 sm:$0xff]  }
0x1624   : > { %v3319_v9 = vsub.f32 %v3254_v50, %v3313_v6  ;;  %5500 = vmatprep.subr.bf16.mxu1 %v8166_v10  ;;  %v7492_v6 = vld [vmem:[#allocation10 + $0x44] ss:$16 sps:$4 sm:$0xff]  }
0x1626   : > { %v3325_v20 = vmul.f32 1.442695, %v3319_v9  ;;  %v7495_v9 = vld [vmem:[#allocation8] sm:$0xff]  }
0x1628   : > { %5898 = vpow2.f32 %v3325_v20  ;;  %v7498_v20 = vld [vmem:[#allocation10 + $0x40] ss:$16 sps:$4 sm:$0xff]  }
0x162b   : > { %v3316_v55 = vpop.xlane.xlu0 %3315 }
0x162c   : > { %v3320_v53 = vsub.f32 %v3300_v45, %v3316_v55  ;;  %v7439_v45 = vld [vmem:[#allocation8 + $0x30] sm:$0xff]   ;;  %v7501_v55 = vld [vmem:[#allocation10 + $0xec] ss:$16 sps:$4 sm:$0xff]  }
0x162d   : > { %v5897_v40 = vpop.eup %5896 }
0x162e   : > { %v3327_v41 = vmul.f32 1.442695, %v3320_v53  ;;  %v3332_v29 = vsel %vm1246_vm3, %v5897_v40, 0.0  ;;  %v7504_v53 = vld [vmem:[#allocation10 + $0x24] ss:$16 sps:$4 sm:$0xff]  }
0x162f   : > { %3333 = vadd.xlane.f32.xlu0 %v3332_v29  ;;  %v7513_v29 = vld [vmem:[#allocation10] ss:$16 sps:$4 sm:$0xff]  }
0x1630   : > { %5900 = vpow2.f32 %v3327_v41  ;;  %v7510_v41 = vld [vmem:[#allocation10 + $0x4] ss:$16 sps:$4 sm:$0xff]  }
0x1635   : > { %v5899_v15 = vpop.eup %5898 }
0x1636   : > { %v3335_v16 = vsel %vm1246_vm3, %v5899_v15, 0.0 }
0x1637   : > { %3336 = vadd.xlane.f32.xlu1 %v3335_v16 }
0x163d   : > { %v5901_v24 = vpop.eup %5900 }
0x163e   : > { %v3338_v31 = vsel %vm1246_vm3, %v5901_v24, 0.0 }
0x163f   : > { %3339 = vadd.xlane.f32.xlu0 %v3338_v31 }
0x1648   : > { %3114 = vrot.lane.b32.xlu1 %v7367_v46, %s6336_s4 }
0x1650   : > { %v3331_v37 = vpop.xlane.xlu1 %3330 }
0x1651   : > { %5902 = vrcp.f32 %v3331_v37 }
0x1655   : > { %3111 = vrot.lane.b32.xlu0 %v7367_v46, %s6334_s18 }
0x165e   : > { %v5903_v44 = vpop.eup %5902 }
0x165f   : > { %v3345_v49 = vmul.f32 %v5903_v44, %v5895_v28  ;;  %v7465_v28 = vld [vmem:[#allocation8 + $0x18] sm:$0xff]  }
0x1661   : > { %v3349_v52 = vpack.c.bf16 %v3345_v49, %v3345_v49 }
0x1663   : > { %5485 = vmatmul.mubr.msk.bf16.vlgmr.msra.gmra.mxu0 %vm1246_vm3, %v3349_v52 }
0x1664   : > { %5496 = vmatprep.mubr.msk.bf16.mxu0 %vm6333_vm0, %v8166_v10 }
0x16b8   : > { %v3334_v54 = vpop.xlane.xlu0 %3333 }
0x16b9   : > { %5904 = vrcp.f32 %v3334_v54 }
0x16c0   : > { %v3337_v56 = vpop.xlane.xlu1 %3336 }
0x16c1   : > { %5906 = vrcp.f32 %v3337_v56 }
0x16c4   : > { %v3115_v58 = vpop.permute.xlu1 %3114 }
0x16c5   : > { %v3120_v62 = vpack.c.bf16 %v3115_v58, %v3115_v58 }
0x16c6   : > { %v5905_v60 = vpop.eup %5904 }
0x16c7   : > { %v3346_v2 = vmul.f32 %v5905_v60, %v5897_v40  ;;  %v3495_v46 = vsel %vm1298_vm2, %v3120_v62, 0  ;;  %v7507_v40 = vld [vmem:[#allocation10 + $0x20] ss:$16 sps:$4 sm:$0xff]  }
0x16c8   : > { %v3340_v22 = vpop.xlane.xlu0 %3339 }
0x16c9   : > { %5908 = vrcp.f32 %v3340_v22  ;;  %v3350_v32 = vpack.c.bf16 %v3346_v2, %v3346_v2 }
0x16cb   : > { %5491 = vmatmul.mubr.msk.bf16.vlgmr.msra.gmra.mxu1 %vm1246_vm3, %v3350_v32 }
0x16cc   : > { %5501 = vmatpush3.bf16.msra.mxu1 %v3495_v46  ;;  %v3112_v5 = vpop.permute.xlu0 %3111  ;;  %5502 = vmatprep.mubr.msk.bf16.mxu1 %vm6333_vm0, %v8166_v10 }
0x16cd   : > { %v3119_v0 = vpack.c.bf16 %v3112_v5, %v3112_v5  ;;  %3608 = vmatprep.subr.bf16.mxu1 %v7427_v25 }
0x16ce   : > { %v5907_v21 = vpop.eup %5906 }
0x16cf   : > { %v3449_v50 = vsel %vm1298_vm2, %v3119_v0, 0  ;;  %v3347_v63 = vmul.f32 %v5907_v21, %v5899_v15  ;;  %v7516_v15 = vld [vmem:[#allocation11 + $0x78] sm:$0xff]  }
0x16d0   : > { %5495 = vmatpush3.bf16.msra.mxu0 %v3449_v50 }
0x16d1   : > { %v3351_v17 = vpack.c.bf16 %v3347_v63, %v3347_v63  ;;  %5506 = vmatprep.subr.bf16.mxu0 %v8166_v10 }
0x16d3   : > { %5497 = vmatmul.mubr.msk.bf16.vlgmr.msra.gmra.mxu0 %vm1246_vm3, %v3351_v17 }
0x16d4   : > { %5507 = vmatpush3.bf16.msra.mxu0 %v7433_v18  ;;  %5522 = vmatprep.mubr.msk.bf16.mxu0 %vm6333_vm0, %v8166_v10 }
0x16d5   : > { %5508 = vmatprep.subr.bf16.mxu0 %v8166_v10 }
0x16d6   : > { %v5909_v26 = vpop.eup %5908 }
0x16d7   : > { %v3348_v47 = vmul.f32 %v5909_v26, %v5901_v24 }
0x16d8   : > { %5509 = vmatpush3.bf16.msra.mxu0 %v7439_v45 }
0x16d9   : > { %v3352_v27 = vpack.c.bf16 %v3348_v47, %v3348_v47  ;;  %5510 = vmatprep.subr.bf16.mxu0 %v8166_v10  ;;  %v7525_v47 = vld [vmem:[#allocation10 + $0xe8] ss:$16 sps:$4 sm:$0xff]  }
0x16db   : > { %5503 = vmatmul.mubr.msk.bf16.vlgmr.msra.gmra.mxu1 %vm1246_vm3, %v3352_v27  ;;  %v7529_v27 = vld [vmem:[#allocation10 + $0xcc] ss:$16 sps:$4 sm:$0xff]  }
0x16dc   : > { %5511 = vmatpush3.bf16.msra.mxu0 %v7444_v12  ;;  %3609 = vmatpush1.bf16.msra.mxu1 %v7447_v19 }
0x16dd   : > { %5512 = vmatprep.subr.bf16.mxu0 %v8166_v10  ;;  %3610 = vmatprep.subr.bf16.mxu1 %v7451_v39 }
0x16de   : > { %3640 = vmatprep.mubr.bf16.mxu1 %v8173_v61 }
0x16e0   : > { %5513 = vmatpush3.bf16.msra.mxu0 %v7455_v1  ;;  %3611 = vmatpush1.bf16.msra.mxu1 %v7458_v7 }
0x16e1   : > { %5514 = vmatprep.subr.bf16.mxu0 %v8166_v10  ;;  %3612 = vmatprep.subr.bf16.mxu1 %v7462_v13 }
0x16e4   : > { %5515 = vmatpush3.bf16.msra.mxu0 %v7465_v28  ;;  %3613 = vmatpush1.bf16.msra.mxu1 %v7468_v34 }
0x16e5   : > { %5516 = vmatprep.subr.bf16.mxu0 %v8166_v10  ;;  %3614 = vmatprep.subr.bf16.mxu1 %v7472_v42 }
0x16e8   : > { %5517 = vmatpush3.bf16.msra.mxu0 %v7475_v43  ;;  %3615 = vmatpush1.bf16.msra.mxu1 %v7478_v59 }
0x16e9   : > { %5518 = vmatprep.subr.bf16.mxu0 %v8166_v10  ;;  %3616 = vmatprep.subr.bf16.mxu1 %v7482_v30 }
0x16ec   : > { %5519 = vmatpush3.bf16.msra.mxu0 %v7485_v11  ;;  %3617 = vmatpush1.bf16.msra.mxu1 %v7488_v35 }
0x16ed   : > { %5520 = vmatprep.subr.bf16.mxu0 %v8166_v10  ;;  %3618 = vmatprep.subr.bf16.mxu1 %v7492_v6 }
0x16f0   : > { %5521 = vmatpush3.bf16.msra.mxu0 %v7495_v9  ;;  %3619 = vmatpush1.bf16.msra.mxu1 %v7498_v20 }
0x16f1   : > { %3649 = vmatprep.subr.bf16.mxu0 %v7501_v55  ;;  %3620 = vmatprep.subr.bf16.mxu1 %v7504_v53 }
0x16f4   : > { %3621 = vmatpush1.bf16.msra.mxu1 %v7507_v40 }
0x16f5   : > { %3622 = vmatprep.subr.bf16.mxu1 %v7510_v41 }
0x16f8   : > { %3623 = vmatpush1.bf16.msra.mxu1 %v7513_v29 }
0x16f9   : > { %5140 = vmatprep.subr.bf16.mxu1 %v7516_v15 }
0x1723   : > { %v3393_v16 = vpop.f32.mrf.mxu0 }
0x1725   : > { %v5486_v24 = vpop.f32.mrf.mxu0 }
0x1726   : > { %v7532_v24 = vld [vmem:[#allocation10 + $0xc8] ss:$16 sps:$4 sm:$0xff]  }
0x1727   : > { %v3396_v31 = vpop.f32.mrf.mxu0 }
0x1728   : > { %v7538_v31 = vld [vmem:[#allocation10 + $0xa8] ss:$16 sps:$4 sm:$0xff]  }
0x1729   : > { %v5487_v37 = vpop.f32.mrf.mxu0  ;;  %8255 = vst [vmem:[#allocation27_spill] sm:$0xff] %v7538_v31 }
0x172a   : > { %v7541_v37 = vld [vmem:[#allocation10 + $0x8c] ss:$16 sps:$4 sm:$0xff]  }
0x172b   : > { %8256 = vst [vmem:[#allocation28_spill] sm:$0xff] %v7541_v37 }
0x178b   : > { %v3439_v44 = vpop.f32.mrf.mxu1 }
0x178c   : > { %3538 = vrot.lane.b32.xlu1 %v3439_v44, %s6336_s4  ;;  %v7544_v44 = vld [vmem:[#allocation10 + $0x88] ss:$16 sps:$4 sm:$0xff]  }
0x178d   : > { %v5492_v49 = vpop.f32.mrf.mxu1  ;;  %8257 = vst [vmem:[#allocation29_spill] sm:$0xff] %v7544_v44 }
0x178e   : > { %v7547_v49 = vld [vmem:[#allocation10 + $0x6c] ss:$16 sps:$4 sm:$0xff]  }
0x178f   : > { %v3442_v52 = vpop.f32.mrf.mxu1  ;;  %8258 = vst [vmem:[#allocation30_spill] sm:$0xff] %v7547_v49 }
0x1790   : > { %v7550_v52 = vld [vmem:[#allocation10 + $0x68] ss:$16 sps:$4 sm:$0xff]  }
0x1791   : > { %v5493_v54 = vpop.f32.mrf.mxu1  ;;  %8259 = vst [vmem:[#allocation31_spill] sm:$0xff] %v7550_v52 }
0x1792   : > { %v7553_v54 = vld [vmem:[#allocation10 + $0x4c] ss:$16 sps:$4 sm:$0xff]  }
0x1793   : > { %v3485_v56 = vpop.f32.mrf.mxu0  ;;  %8260 = vst [vmem:[#allocation32_spill] sm:$0xff] %v7553_v54 }
0x1794   : > { %3542 = vrot.lane.b32.xlu0 %v3485_v56, %s6334_s18  ;;  %v7556_v56 = vld [vmem:[#allocation10 + $0x48] ss:$16 sps:$4 sm:$0xff]  }
0x1795   : > { %v5498_v58 = vpop.f32.mrf.mxu0  ;;  %8261 = vst [vmem:[#allocation33_spill] sm:$0xff] %v7556_v56 }
0x1796   : > { %v7559_v58 = vld [vmem:[#allocation10 + $0x2c] ss:$16 sps:$4 sm:$0xff]  }
0x1797   : > { %v3488_v60 = vpop.f32.mrf.mxu0  ;;  %8262 = vst [vmem:[#allocation34_spill] sm:$0xff] %v7559_v58 }
0x1798   : > { %v7562_v60 = vld [vmem:[#allocation10 + $0x28] ss:$16 sps:$4 sm:$0xff]  }
0x1799   : > { %v5499_v62 = vpop.f32.mrf.mxu0  ;;  %8263 = vst [vmem:[#allocation35_spill] sm:$0xff] %v7562_v60 }
0x179a   : > { %v7565_v62 = vld [vmem:[#allocation10 + $0xc] ss:$16 sps:$4 sm:$0xff]  }
0x179b   : > { %v3531_v2 = vpop.f32.mrf.mxu1  ;;  %8264 = vst [vmem:[#allocation36_spill] sm:$0xff] %v7565_v62 }
0x179c   : > { %3546 = vrot.lane.b32.xlu1 %v3531_v2, %s6335_s23  ;;  %v7568_v2 = vld [vmem:[#allocation10 + $0x8] ss:$16 sps:$4 sm:$0xff]  }
0x179d   : > { %v5504_v22 = vpop.f32.mrf.mxu1  ;;  %8265 = vst [vmem:[#allocation37_spill] sm:$0xff] %v7568_v2 }
0x179e   : > { %v7571_v22 = vld [vmem:[#allocation11 + $0xf8] sm:$0xff]  }
0x179f   : > { %v3534_v32 = vpop.f32.mrf.mxu1  ;;  %8266 = vst [vmem:[#allocation40_spill] sm:$0xff] %v7571_v22 }
0x17a1   : > { %v5505_v46 = vpop.f32.mrf.mxu1 }
0x17fe   : > { %v3539_v5 = vpop.permute.xlu1 %3538 }
0x17ff   : > { %v3549_v21 = vsel %vm1061_vm1, %v3393_v16, %v3539_v5  ;;  %v7535_v16 = vld [vmem:[#allocation10 + $0xac] ss:$16 sps:$4 sm:$0xff]  }
0x1800   : > { %8254 = vst [vmem:[#allocation26_spill] sm:$0xff] %v7535_v16 }
0x1806   : > { %v3543_v0 = vpop.permute.xlu0 %3542 }
0x1807   : > { %v3550_v50 = vsel %vm1493_vm4, %v3549_v21, %v3543_v0 }
0x180e   : > { %v3547_v63 = vpop.permute.xlu1 %3546 }
0x180f   : > { %v3551_v17 = vsel %vm1495_vm5, %v3550_v50, %v3547_v63 }
0x1810   : > { %v3552_v26 = vpack.c.bf16 %v3551_v17, %v3551_v17 }
0x1812   : > { %5523 = vmatmul.mubr.bf16.vlgmr.msra.gmra.mxu0 %v3552_v26 }
0x1813   : > { %3650 = vmatpush1.bf16.msra.mxu0 %v7525_v47  ;;  %3681 = vmatprep.mubr.bf16.mxu0 %v8173_v61 }
0x1814   : > { %3651 = vmatprep.subr.bf16.mxu0 %v7529_v27 }
0x1817   : > { %3652 = vmatpush1.bf16.msra.mxu0 %v7532_v24 }
0x1818   : > { %3653 = vmatprep.subr.bf16.mxu0 %v7535_v16 }
0x181b   : > { %3654 = vmatpush1.bf16.msra.mxu0 %v7538_v31 }
0x181c   : > { %3655 = vmatprep.subr.bf16.mxu0 %v7541_v37 }
0x181f   : > { %3656 = vmatpush1.bf16.msra.mxu0 %v7544_v44 }
0x1820   : > { %3657 = vmatprep.subr.bf16.mxu0 %v7547_v49 }
0x1823   : > { %3658 = vmatpush1.bf16.msra.mxu0 %v7550_v52 }
0x1824   : > { %3659 = vmatprep.subr.bf16.mxu0 %v7553_v54 }
0x1827   : > { %3660 = vmatpush1.bf16.msra.mxu0 %v7556_v56 }
0x1828   : > { %3661 = vmatprep.subr.bf16.mxu0 %v7559_v58 }
0x182b   : > { %3662 = vmatpush1.bf16.msra.mxu0 %v7562_v60 }
0x182c   : > { %3663 = vmatprep.subr.bf16.mxu0 %v7565_v62 }
0x182f   : > { %3664 = vmatpush1.bf16.msra.mxu0 %v7568_v2 }
0x1830   : > { %5162 = vmatprep.subr.bf16.mxu0 %v7571_v22 }
0x18d2   : > { %v3587_v32 = vpop.f32.mrf.mxu0 }
0x18d3   : > { %v3588_v46 = vadd.f32 %v7268_v51, %v3587_v32  ;;  %v7579_v51 = vld [vmem:[%s7941_s6] ss:$0 sm:$0xff] }
0x18d4   : > { %v5524_v5 = vpop.f32.mrf.mxu0  ;;  %8267 = vst [vmem:[#allocation38_spill] sm:$0xff] %v7579_v51  ;;  %v7585_v32 = vld [vmem:[%s7942_s7] ss:$0 sm:$0xff] }
0x18d5   : > { %v3593_v0 = vadd.f32 %v3588_v46, %v7357_v4  ;;  %8268 = vst [vmem:[#allocation39_spill] sm:$0xff] %v7585_v32  ;;  %v7604_v46 = vld [vmem:[#allocation11 + $0x30] sm:$0xff]  }
0x18d6   : > { %v3590_v21 = vpop.f32.mrf.mxu0  ;;  %8273 = vst [vmem:[#allocation45_spill] sm:$0xff] %v7604_v46  ;;  %v7607_v5 = vld [vmem:[#allocation11 + $0xb0] sm:$0xff]  }
0x18d7   : > { %3594 = vadd.xlane.f32.xlu0 %v3593_v0  ;;  %8274 = vst [vmem:[#allocation46_spill] sm:$0xff] %v7607_v5  ;;  %v7613_v21 = vld [vmem:[#allocation11 + $0xe8] sm:$0xff]  }
0x18d8   : > { %v5525_v50 = vpop.f32.mrf.mxu0  ;;  %8276 = vst [vmem:[#allocation48_spill] sm:$0xff] %v7613_v21 }
0x18d9   : > { %v7616_v50 = vld [vmem:[#allocation11 + $0x28] sm:$0xff]  }
0x18da   : > { %8277 = vst [vmem:[#allocation49_spill] sm:$0xff] %v7616_v50 }
0x1960   : > { %v3595_v63 = vpop.xlane.xlu0 %3594 }
0x1961   : > { %v3596_v17 = vmul.f32 0.0078125, %v3595_v63  ;;  %v7619_v63 = vld [vmem:[#allocation11 + $0xa8] sm:$0xff]  }
0x1962   : > { %8278 = vst [vmem:[#allocation50_spill] sm:$0xff] %v7619_v63 }
0x1963   : > { %v3597_v26 = vsub.f32 %v3593_v0, %v3596_v17  ;;  %v7610_v0 = vld [vmem:[#allocation11 + $0x68] sm:$0xff]   ;;  %v7622_v17 = vld [vmem:[#allocation11 + $0x60] sm:$0xff]  }
0x1964   : > { %8275 = vst [vmem:[#allocation47_spill] sm:$0xff] %v7610_v0  ;;  %8279 = vst [vmem:[#allocation51_spill] sm:$0xff] %v7622_v17 }
0x1965   : > { %v3598_v62 = vmul.f32 %v3597_v26, %v3597_v26 }
0x1967   : > { %3599 = vadd.xlane.f32.xlu1 %v3598_v62 }
0x19f0   : > { %v3600_v60 = vpop.xlane.xlu1 %3599 }
0x19f1   : > { %v3601_v2 = vmul.f32 0.0078125, %v3600_v60  ;;  %v7595_v60 = vld [vmem:[#allocation11 + $0xb8] sm:$0xff]  }
0x19f2   : > { %8270 = vst [vmem:[#allocation42_spill] sm:$0xff] %v7595_v60 }
0x19f3   : > { %v3602_v58 = vadd.f32 1e-12, %v3601_v2  ;;  %v7598_v2 = vld [vmem:[#allocation11 + $0x70] sm:$0xff]  }
0x19f4   : > { %8271 = vst [vmem:[#allocation43_spill] sm:$0xff] %v7598_v2 }
0x19f5   : > { %5910 = vrsqrt.f32 %v3602_v58 }
0x1a02   : > { %v5911_v56 = vpop.eup %5910 }
0x1a03   : > { %v3604_v22 = vmul.f32 %v5911_v56, %v3597_v26  ;;  %v7592_v56 = vld [vmem:[#allocation11 + $0x38] sm:$0xff]   ;;  %v7625_v26 = vld [vmem:[#allocation11 + $0xe0] sm:$0xff]  }
0x1a04   : > { %8269 = vst [vmem:[#allocation41_spill] sm:$0xff] %v7592_v56  ;;  %8280 = vst [vmem:[#allocation52_spill] sm:$0xff] %v7625_v26 }
0x1a05   : > { %v3605_v4 = vmul.f32 %v7579_v51, %v3604_v22  ;;  %v7601_v22 = vld [vmem:[#allocation11 + $0xf0] sm:$0xff]  }
0x1a06   : > { %8272 = vst [vmem:[#allocation44_spill] sm:$0xff] %v7601_v22 }
0x1a07   : > { %v7588_v62 = vadd.f32 %v7585_v32, %v3605_v4  ;;  %v7628_v4 = vld [vmem:[#allocation11 + $0x20] sm:$0xff]  }
0x1a08   : > { %8281 = vst [vmem:[#allocation53_spill] sm:$0xff] %v7628_v4 }
0x1a09   : > { %v3607_v58 = vpack.c.bf16 %v7588_v62, %v7588_v62 }
0x1a0b   : > { %3641 = vmatmul.mubr.bf16.vlgmr.msra.gmra.mxu1 %v3607_v58  ;;  %3682 = vmatmul.mubr.bf16.vlgmr.msra.gmra.mxu0 %v3607_v58  ;;  %v7631_v58 = vld [vmem:[#allocation11 + $0xa0] sm:$0xff]  }
0x1a0c   : > { %5141 = vmatpush3.bf16.msra.mxu1 %v7592_v56  ;;  %5163 = vmatpush3.bf16.msra.mxu0 %v7595_v60  ;;  %8282 = vst [vmem:[#allocation54_spill] sm:$0xff] %v7631_v58 }
0x1a0d   : > { %5142 = vmatprep.subr.bf16.mxu1 %v7598_v2  ;;  %5164 = vmatprep.subr.bf16.mxu0 %v7601_v22 }
0x1a10   : > { %5143 = vmatpush3.bf16.msra.mxu1 %v7604_v46  ;;  %5165 = vmatpush3.bf16.msra.mxu0 %v7607_v5 }
0x1a11   : > { %5144 = vmatprep.subr.bf16.mxu1 %v7610_v0  ;;  %5166 = vmatprep.subr.bf16.mxu0 %v7613_v21 }
0x1a14   : > { %5145 = vmatpush3.bf16.msra.mxu1 %v7616_v50  ;;  %5167 = vmatpush3.bf16.msra.mxu0 %v7619_v63  ;;  %v7634_v50 = vld [vmem:[#allocation11 + $0x58] sm:$0xff]  }
0x1a15   : > { %5146 = vmatprep.subr.bf16.mxu1 %v7622_v17  ;;  %5168 = vmatprep.subr.bf16.mxu0 %v7625_v26  ;;  %8283 = vst [vmem:[#allocation55_spill] sm:$0xff] %v7634_v50  ;;  %v7637_v63 = vld [vmem:[#allocation11 + $0xd8] sm:$0xff]  }
0x1a16   : > { %8284 = vst [vmem:[#allocation56_spill] sm:$0xff] %v7637_v63  ;;  %v7640_v17 = vld [vmem:[#allocation11 + $0x18] sm:$0xff]  }
0x1a17   : > { %8285 = vst [vmem:[#allocation57_spill] sm:$0xff] %v7640_v17  ;;  %v7643_v26 = vld [vmem:[#allocation11 + $0x98] sm:$0xff]  }
0x1a18   : > { %5147 = vmatpush3.bf16.msra.mxu1 %v7628_v4  ;;  %5169 = vmatpush3.bf16.msra.mxu0 %v7631_v58  ;;  %8286 = vst [vmem:[#allocation58_spill] sm:$0xff] %v7643_v26  ;;  %v7646_v4 = vld [vmem:[#allocation11 + $0x50] sm:$0xff]  }
0x1a19   : > { %5148 = vmatprep.subr.bf16.mxu1 %v7634_v50  ;;  %5170 = vmatprep.subr.bf16.mxu0 %v7637_v63  ;;  %8287 = vst [vmem:[#allocation59_spill] sm:$0xff] %v7646_v4  ;;  %v7649_v58 = vld [vmem:[#allocation11 + $0xd0] sm:$0xff]  }
0x1a1a   : > { %8288 = vst [vmem:[#allocation60_spill] sm:$0xff] %v7649_v58  ;;  %v7652_v50 = vld [vmem:[#allocation11 + $0x10] sm:$0xff]  }
0x1a1b   : > { %8289 = vst [vmem:[#allocation61_spill] sm:$0xff] %v7652_v50  ;;  %v7655_v63 = vld [vmem:[#allocation11 + $0x90] sm:$0xff]  }
0x1a1c   : > { %5149 = vmatpush3.bf16.msra.mxu1 %v7640_v17  ;;  %5171 = vmatpush3.bf16.msra.mxu0 %v7643_v26  ;;  %8290 = vst [vmem:[#allocation62_spill] sm:$0xff] %v7655_v63  ;;  %v7658_v17 = vld [vmem:[#allocation11 + $0x48] sm:$0xff]  }
0x1a1d   : > { %5150 = vmatprep.subr.bf16.mxu1 %v7646_v4  ;;  %5172 = vmatprep.subr.bf16.mxu0 %v7649_v58  ;;  %8291 = vst [vmem:[#allocation63_spill] sm:$0xff] %v7658_v17  ;;  %v7661_v26 = vld [vmem:[#allocation11 + $0xc8] sm:$0xff]  }
0x1a1e   : > { %8292 = vst [vmem:[#allocation64_spill] sm:$0xff] %v7661_v26  ;;  %v7664_v4 = vld [vmem:[#allocation11 + $0x8] sm:$0xff]  }
0x1a1f   : > { %8293 = vst [vmem:[#allocation65_spill] sm:$0xff] %v7664_v4  ;;  %v7667_v58 = vld [vmem:[#allocation11 + $0x88] sm:$0xff]  }
0x1a20   : > { %5151 = vmatpush3.bf16.msra.mxu1 %v7652_v50  ;;  %5173 = vmatpush3.bf16.msra.mxu0 %v7655_v63  ;;  %8294 = vst [vmem:[#allocation66_spill] sm:$0xff] %v7667_v58  ;;  %v7670_v50 = vld [vmem:[#allocation11 + $0x40] sm:$0xff]  }
0x1a21   : > { %5152 = vmatprep.subr.bf16.mxu1 %v7658_v17  ;;  %5174 = vmatprep.subr.bf16.mxu0 %v7661_v26  ;;  %8295 = vst [vmem:[#allocation67_spill] sm:$0xff] %v7670_v50  ;;  %v7673_v63 = vld [vmem:[#allocation11 + $0xc0] sm:$0xff]  }
0x1a22   : > { %8296 = vst [vmem:[#allocation68_spill] sm:$0xff] %v7673_v63  ;;  %v7676_v17 = vld [vmem:[#allocation11] sm:$0xff]  }
0x1a23   : > { %8297 = vst [vmem:[#allocation69_spill] sm:$0xff] %v7676_v17  ;;  %v7679_v26 = vld [vmem:[#allocation11 + $0x80] sm:$0xff]  }
0x1a24   : > { %5153 = vmatpush3.bf16.msra.mxu1 %v7664_v4  ;;  %5175 = vmatpush3.bf16.msra.mxu0 %v7667_v58  ;;  %8298 = vst [vmem:[#allocation70_spill] sm:$0xff] %v7679_v26  ;;  %v6050_v4 = vld [vmem:[#allocation7 + $0xac] ss:$12 sps:$4 sm:$0xff]  }
0x1a25   : > { %5154 = vmatprep.subr.bf16.mxu1 %v7670_v50  ;;  %5176 = vmatprep.subr.bf16.mxu0 %v7673_v63 }
0x1a28   : > { %5155 = vmatpush3.bf16.msra.mxu1 %v7676_v17  ;;  %5177 = vmatpush3.bf16.msra.mxu0 %v7679_v26 }
0x1a29   : > { %3825 = vmatprep.subr.bf16.mxu1 %v6050_v4  ;;  %5526 = vmatprep.subr.bf16.mxu0 %v8166_v10 }
0x1acb   : > { %v3642_v58 = vpop.f32.mrf.mxu1  ;;  %v3683_v21 = vpop.f32.mrf.mxu0 }
0x1acc   : > { %v3643_v50 = vadd.f32 %v3642_v58, %v8235_v33  ;;  %v3684_v0 = vadd.f32 %v3683_v21, %v8236_v3 }
0x1acd   : > { %v3644_v5 = vpop.f32.mrf.mxu1  ;;  %v3685_v63 = vpop.f32.mrf.mxu0 }
0x1ace   : > { %v3690_v46 = vmul.f32 %v3643_v50, %v3643_v50  ;;  %v3692_v22 = vmul.f32 %v3684_v0, %v3684_v0  ;;  %v3645_v17 = vadd.f32 %v3644_v5, %v8237_v38  ;;  %v3686_v2 = vadd.f32 %v3685_v63, %v7027_v8 }
0x1acf   : > { %v3646_v60 = vpop.f32.mrf.mxu1  ;;  %v3687_v26 = vpop.f32.mrf.mxu0 }
0x1ad0   : > { %v3694_v56 = vmul.f32 %v3690_v46, %v3643_v50  ;;  %v3696_v4 = vmul.f32 %v3692_v22, %v3684_v0  ;;  %v3691_v32 = vmul.f32 %v3645_v17, %v3645_v17  ;;  %v3693_v51 = vmul.f32 %v3686_v2, %v3686_v2 }
0x1ad1   : > { %v3647_v54 = vpop.f32.mrf.mxu1  ;;  %v3688_v52 = vpop.f32.mrf.mxu0 }
0x1ad2   : > { %v3698_v49 = vmul.f32 0.044715, %v3694_v56  ;;  %v3700_v58 = vmul.f32 0.044715, %v3696_v4  ;;  %v3695_v33 = vmul.f32 %v3691_v32, %v3645_v17  ;;  %v3697_v21 = vmul.f32 %v3693_v51, %v3686_v2 }
0x1ad4   : > { %v3702_v3 = vadd.f32 %v3698_v49, %v3643_v50  ;;  %v3704_v44 = vadd.f32 %v3700_v58, %v3684_v0  ;;  %v3699_v37 = vmul.f32 0.044715, %v3695_v33  ;;  %v3701_v31 = vmul.f32 0.044715, %v3697_v21 }
0x1ad6   : > { %v3706_v16 = vmul.f32 0.7978846, %v3702_v3  ;;  %v3708_v5 = vmul.f32 0.7978846, %v3704_v44  ;;  %v3703_v38 = vadd.f32 %v3699_v37, %v3645_v17  ;;  %v3705_v63 = vadd.f32 %v3701_v31, %v3686_v2 }
0x1ad8   : > { %5912 = vtanh.f32 %v3706_v16  ;;  %v3707_v60 = vmul.f32 0.7978846, %v3703_v38  ;;  %v3709_v46 = vmul.f32 0.7978846, %v3705_v63 }
0x1ad9   : > { %5914 = vtanh.f32 %v3708_v5 }
0x1ada   : > { %5916 = vtanh.f32 %v3707_v60  ;;  %v6051_v60 = vld [vmem:[#allocation7 + $0xa8] ss:$12 sps:$4 sm:$0xff]  }
0x1adb   : > { %5918 = vtanh.f32 %v3709_v46  ;;  %v6052_v46 = vld [vmem:[#allocation7 + $0xb0] ss:$12 sps:$4 sm:$0xff]  }
0x1ae5   : > { %v5913_v54 = vpop.eup %5912 }
0x1ae6   : > { %v5915_v52 = vpop.eup %5914  ;;  %v3714_v56 = vadd.f32 1.0, %v5913_v54  ;;  %v6053_v54 = vld [vmem:[#allocation7 + $0x94] ss:$12 sps:$4 sm:$0xff]  }
0x1ae7   : > { %v5917_v22 = vpop.eup %5916  ;;  %v3716_v32 = vadd.f32 1.0, %v5915_v52  ;;  %v6058_v52 = vld [vmem:[#allocation7 + $0x80] ss:$12 sps:$4 sm:$0xff]  }
0x1ae8   : > { %v5919_v51 = vpop.eup %5918  ;;  %v3715_v49 = vadd.f32 1.0, %v5917_v22  ;;  %v3718_v26 = vmul.f32 0.5, %v3714_v56  ;;  %v6059_v56 = vld [vmem:[#allocation7 + $0x64] ss:$12 sps:$4 sm:$0xff]   ;;  %v6060_v22 = vld [vmem:[#allocation7 + $0x60] ss:$12 sps:$4 sm:$0xff]  }
0x1ae9   : > { %v3717_v33 = vadd.f32 1.0, %v5919_v51  ;;  %v3720_v4 = vmul.f32 0.5, %v3716_v32  ;;  %v6061_v32 = vld [vmem:[#allocation7 + $0x68] ss:$12 sps:$4 sm:$0xff]   ;;  %v6062_v51 = vld [vmem:[#allocation7 + $0x4c] ss:$12 sps:$4 sm:$0xff]  }
0x1aea   : > { %v3719_v3 = vmul.f32 0.5, %v3715_v49  ;;  %v3722_v37 = vmul.f32 %v3718_v26, %v3643_v50  ;;  %v6056_v50 = vld [vmem:[#allocation7 + $0x7c] ss:$12 sps:$4 sm:$0xff]  }
0x1aeb   : > { %v3721_v44 = vmul.f32 0.5, %v3717_v33  ;;  %v3724_v16 = vmul.f32 %v3720_v4, %v3684_v0  ;;  %v6055_v0 = vld [vmem:[#allocation7 + $0x98] ss:$12 sps:$4 sm:$0xff]   ;;  %v6063_v49 = vld [vmem:[#allocation7 + $0x48] ss:$12 sps:$4 sm:$0xff]  }
0x1aec   : > { %v3723_v31 = vmul.f32 %v3719_v3, %v3645_v17  ;;  %v3726_v5 = vpack.c.bf16 %v3722_v37, %v3722_v37  ;;  %v6057_v17 = vld [vmem:[#allocation7 + $0x78] ss:$12 sps:$4 sm:$0xff]   ;;  %v6064_v26 = vld [vmem:[#allocation7 + $0x50] ss:$12 sps:$4 sm:$0xff]   ;;  %v6065_v33 = vld [vmem:[#allocation7 + $0x34] ss:$12 sps:$4 sm:$0xff]  }
0x1aed   : > { %v3725_v38 = vmul.f32 %v3721_v44, %v3686_v2  ;;  %v3728_v63 = vpack.c.bf16 %v3724_v16, %v3724_v16  ;;  %v6054_v2 = vld [vmem:[#allocation7 + $0x90] ss:$12 sps:$4 sm:$0xff]   ;;  %v6067_v3 = vld [vmem:[#allocation7 + $0x38] ss:$12 sps:$4 sm:$0xff]   ;;  %v6071_v16 = vld [vmem:[#allocation7] ss:$12 sps:$4 sm:$0xff]  }
0x1aee   : > { %v3727_v58 = vpack.c.bf16 %v3723_v31, %v3723_v31  ;;  %v6066_v4 = vld [vmem:[#allocation7 + $0x30] ss:$12 sps:$4 sm:$0xff]   ;;  %v6069_v37 = vld [vmem:[#allocation7 + $0x18] ss:$12 sps:$4 sm:$0xff]  }
0x1aef   : > { %v3729_v21 = vpack.c.bf16 %v3725_v38, %v3725_v38  ;;  %v6068_v44 = vld [vmem:[#allocation7 + $0x1c] ss:$12 sps:$4 sm:$0xff]   ;;  %v6070_v31 = vld [vmem:[#allocation7 + $0x4] ss:$12 sps:$4 sm:$0xff]  }
0x1af0   : > { %3762 = vmatprep.mubr.bf16.mxu1 %v3727_v58 }
0x1af1   : > { %3802 = vmatprep.mubr.bf16.mxu0 %v3729_v21  ;;  %3763 = vmatmul.mubr.bf16.vlgmr.msra.gmra.mxu1 %v3726_v5 }
0x1af2   : > { %3803 = vmatmul.mubr.bf16.vlgmr.msra.gmra.mxu0 %v3728_v63  ;;  %3826 = vmatpush1.bf16.msra.mxu1 %v6051_v60 }
0x1af3   : > { %5527 = vmatpush3.bf16.msra.mxu0 %v6052_v46  ;;  %3827 = vmatprep.subr.bf16.mxu1 %v6053_v54 }
0x1af4   : > { %5528 = vmatprep.subr.bf16.mxu0 %v8166_v10  ;;  %3857 = vmatprep.mubr.bf16.mxu1 %v8173_v61 }
0x1af5   : > { %5542 = vmatprep.mubr.msk.bf16.mxu0 %vm6333_vm0, %v8166_v10 }
0x1af6   : > { %3828 = vmatpush1.bf16.msra.mxu1 %v6054_v2 }
0x1af7   : > { %5529 = vmatpush3.bf16.msra.mxu0 %v6055_v0  ;;  %3829 = vmatprep.subr.bf16.mxu1 %v6056_v50 }
0x1af8   : > { %5530 = vmatprep.subr.bf16.mxu0 %v8166_v10 }
0x1afa   : > { %3830 = vmatpush1.bf16.msra.mxu1 %v6057_v17 }
0x1afb   : > { %5531 = vmatpush3.bf16.msra.mxu0 %v6058_v52  ;;  %3831 = vmatprep.subr.bf16.mxu1 %v6059_v56 }
0x1afc   : > { %5532 = vmatprep.subr.bf16.mxu0 %v8166_v10 }
0x1afe   : > { %3832 = vmatpush1.bf16.msra.mxu1 %v6060_v22 }
0x1aff   : > { %5533 = vmatpush3.bf16.msra.mxu0 %v6061_v32  ;;  %3833 = vmatprep.subr.bf16.mxu1 %v6062_v51 }
0x1b00   : > { %5534 = vmatprep.subr.bf16.mxu0 %v8166_v10 }
0x1b02   : > { %3834 = vmatpush1.bf16.msra.mxu1 %v6063_v49 }
0x1b03   : > { %5535 = vmatpush3.bf16.msra.mxu0 %v6064_v26  ;;  %3835 = vmatprep.subr.bf16.mxu1 %v6065_v33 }
0x1b04   : > { %5536 = vmatprep.subr.bf16.mxu0 %v8166_v10 }
0x1b06   : > { %3836 = vmatpush1.bf16.msra.mxu1 %v6066_v4 }
0x1b07   : > { %5537 = vmatpush3.bf16.msra.mxu0 %v6067_v3  ;;  %3837 = vmatprep.subr.bf16.mxu1 %v6068_v44  ;;  %v7711_v3 = vld [vmem:[%s7947_s12] ss:$0 sm:$0xff] }
0x1b08   : > { %5538 = vmatprep.subr.bf16.mxu0 %v8166_v10 }
0x1b0a   : > { %3838 = vmatpush1.bf16.msra.mxu1 %v6069_v37 }
0x1b0b   : > { %5539 = vmatpush3.bf16.msra.mxu0 %v7342_v14  ;;  %3839 = vmatprep.subr.bf16.mxu1 %v6070_v31  ;;  %v7704_v14 = vld [vmem:[%s7946_s11] ss:$0 sm:$0xff] }
0x1b0c   : > { %5540 = vmatprep.subr.bf16.mxu0 %v8166_v10 }
0x1b0e   : > { %3840 = vmatpush1.bf16.msra.mxu1 %v6071_v16 }
0x1b0f   : > { %5541 = vmatpush3.bf16.msra.mxu0 %v7348_v23  ;;  %5546 = vmatprep.subr.bf16.mxu1 %v8166_v10 }
0x1b10   : > { %5570 = vmatprep.subr.bf16.mxu0 %v8166_v10 }
0x1bb1   : > { %v5156_v38 = vpop.f32.mrf.mxu1 }
0x1bb2   : > { %v5178_v58 = vpop.f32.mrf.mxu0 }
0x1bb3   : > { %v5157_v21 = vpop.f32.mrf.mxu1 }
0x1bb4   : > { %v5158_v5 = vadd.f32 %v5157_v21, %v5156_v38  ;;  %v5179_v63 = vpop.f32.mrf.mxu0 }
0x1bb5   : > { %v5159_v60 = vpop.f32.mrf.mxu1  ;;  %v5180_v54 = vadd.f32 %v5179_v63, %v5178_v58 }
0x1bb6   : > { %v3765_v46 = vadd.f32 %v7704_v14, %v5158_v5  ;;  %v5181_v2 = vpop.f32.mrf.mxu0 }
0x1bb7   : > { %v5160_v23 = vpop.f32.mrf.mxu1 }
0x1bb8   : > { %v3805_v0 = vadd.f32 %v5180_v54, %v3765_v46  ;;  %v5182_v50 = vpop.f32.mrf.mxu0 }
0x1bba   : > { %v3810_v17 = vadd.f32 %v3805_v0, %v7588_v62  ;;  %v7717_v62 = vld [vmem:[%s7948_s13] ss:$0 sm:$0xff] }
0x1bbc   : > { %3811 = vadd.xlane.f32.xlu0 %v3810_v17 }
0x1c45   : > { %v3812_v52 = vpop.xlane.xlu0 %3811 }
0x1c46   : > { %v3813_v56 = vmul.f32 0.0078125, %v3812_v52 }
0x1c48   : > { %v3814_v22 = vsub.f32 %v3810_v17, %v3813_v56 }
0x1c4a   : > { %v3815_v32 = vmul.f32 %v3814_v22, %v3814_v22 }
0x1c4c   : > { %3816 = vadd.xlane.f32.xlu0 %v3815_v32 }
0x1cd5   : > { %v3817_v51 = vpop.xlane.xlu0 %3816 }
0x1cd6   : > { %v3818_v49 = vmul.f32 0.0078125, %v3817_v51 }
0x1cd8   : > { %v3819_v26 = vadd.f32 1e-12, %v3818_v49 }
0x1cda   : > { %5920 = vrsqrt.f32 %v3819_v26 }
0x1ce7   : > { %v5921_v33 = vpop.eup %5920 }
0x1ce8   : > { %v3821_v4 = vmul.f32 %v5921_v33, %v3814_v22 }
0x1cea   : > { %v3822_v44 = vmul.f32 %v7711_v3, %v3821_v4 }
0x1cec   : > { %v7720_v37 = vadd.f32 %v7717_v62, %v3822_v44 }
0x1cee   : > { %v3824_v31 = vpack.c.bf16 %v7720_v37, %v7720_v37 }
0x1cf0   : > { %3858 = vmatmul.mubr.bf16.vlgmr.msra.gmra.mxu1 %v3824_v31  ;;  %5543 = vmatmul.mubr.bf16.vlgmr.msra.gmra.mxu0 %v3824_v31 }
0x1cf1   : > { %5548 = vmatprep.mubr.msk.bf16.mxu1 %vm6333_vm0, %v8166_v10  ;;  %5572 = vmatprep.mubr.msk.bf16.mxu0 %vm6333_vm0, %v8166_v10 }
0x1db0   : > { %v3859_v16 = vpop.f32.mrf.mxu1  ;;  %v3900_v38 = vpop.f32.mrf.mxu0 }
0x1db1   : > { %v3860_v58 = vadd.f32 %v3859_v16, %v6678_v36  ;;  %v7730_v21 = vadd.f32 %v3900_v38, %v6696_v48 }
0x1db2   : > { %v3861_v5 = vpop.f32.mrf.mxu1  ;;  %v5544_v63 = vpop.f32.mrf.mxu0 }
0x1db3   : > { %v3862_v60 = vadd.f32 %v3861_v5, %v8252_v57  ;;  %3907 = vrot.lane.b32.xlu0 %v3860_v58, %s6335_s23  ;;  %v3944_v46 = vpack.c.bf16 %v7730_v21, %v7730_v21  ;;  %v3916_v57 = vpack.c.bf16 %v3860_v58, %v3860_v58  ;;  %v6075_v63 = vld [vmem:[%s6619_s21] ss:$0 sm:$0xff] }
0x1db4   : > { %v3863_v54 = vpop.f32.mrf.mxu1  ;;  %v3903_v2 = vpop.f32.mrf.mxu0 }
0x1db5   : > { %3921 = vrot.lane.b32.xlu1 %v3862_v60, %s6335_s23  ;;  %v4184_v23 = vsel %vm1298_vm2, %v3944_v46, 0  ;;  %v3930_v0 = vpack.c.bf16 %v3862_v60, %v3862_v60 }
0x1db6   : > { %v3864_v36 = vpop.f32.mrf.mxu1  ;;  %v5545_v50 = vpop.f32.mrf.mxu0  ;;  %5571 = vmatpush3.bf16.msra.mxu0 %v4184_v23 }
0x1db7   : > { %3927 = vrot.lane.b32.xlu0 %v3862_v60, %s6336_s4  ;;  %v3952_v48 = vsel %vm1061_vm1, %v3930_v0, 0  ;;  %5582 = vmatprep.subr.bf16.mxu0 %v8166_v10 }
0x1db8   : > { %5547 = vmatpush3.bf16.xpose.msra.mxu1 %v3952_v48 }
0x1db9   : > { %3924 = vrot.lane.b32.xlu1 %v3862_v60, %s6334_s18  ;;  %5552 = vmatprep.subr.bf16.mxu1 %v8166_v10 }
0x1dbd   : > { %3910 = vrot.lane.b32.xlu1 %v3860_v58, %s6334_s18 }
0x1dbf   : > { %5549 = vmatmul.mubr.msk.bf16.vlgmr.msra.gmra.mxu1 %vm1061_vm1, %v3916_v57 }
0x1dc0   : > { %5554 = vmatprep.mubr.msk.bf16.mxu1 %vm6333_vm0, %v8166_v10 }
0x1dc1   : > { %3913 = vrot.lane.b32.xlu1 %v3860_v58, %s6336_s4 }
0x1e25   : > { %v3908_v32 = vpop.permute.xlu0 %3907 }
0x1e26   : > { %v3917_v49 = vpack.c.bf16 %v3908_v32, %v3908_v32 }
0x1e27   : > { %v3922_v17 = vpop.permute.xlu1 %3921 }
0x1e28   : > { %v3931_v52 = vpack.c.bf16 %v3922_v17, %v3922_v17 }
0x1e29   : > { %v3928_v33 = vpop.permute.xlu0 %3927 }
0x1e2a   : > { %v3998_v56 = vsel %vm1061_vm1, %v3931_v52, 0  ;;  %v3933_v44 = vpack.c.bf16 %v3928_v33, %v3928_v33 }
0x1e2b   : > { %v3925_v22 = vpop.permute.xlu1 %3924  ;;  %5553 = vmatpush3.bf16.xpose.msra.mxu1 %v3998_v56 }
0x1e2c   : > { %5558 = vmatprep.subr.bf16.mxu1 %v8166_v10  ;;  %v3932_v51 = vpack.c.bf16 %v3925_v22, %v3925_v22  ;;  %v4090_v16 = vsel %vm1061_vm1, %v3933_v44, 0 }
0x1e2e   : > { %v4044_v26 = vsel %vm1061_vm1, %v3932_v51, 0 }
0x1e2f   : > { %v3911_v4 = vpop.permute.xlu1 %3910 }
0x1e30   : > { %v3918_v31 = vpack.c.bf16 %v3911_v4, %v3911_v4 }
0x1e32   : > { %5555 = vmatmul.mubr.msk.bf16.vlgmr.msra.gmra.mxu1 %vm1061_vm1, %v3917_v49 }
0x1e33   : > { %5559 = vmatpush3.bf16.xpose.msra.mxu1 %v4044_v26  ;;  %5560 = vmatprep.mubr.msk.bf16.mxu1 %vm6333_vm0, %v8166_v10  ;;  %v3914_v38 = vpop.permute.xlu1 %3913 }
0x1e34   : > { %5564 = vmatprep.subr.bf16.mxu1 %v8166_v10  ;;  %v3919_v58 = vpack.c.bf16 %v3914_v38, %v3914_v38 }
0x1e3a   : > { %5561 = vmatmul.mubr.msk.bf16.vlgmr.msra.gmra.mxu1 %vm1061_vm1, %v3918_v31 }
0x1e3b   : > { %5565 = vmatpush3.bf16.xpose.msra.mxu1 %v4090_v16  ;;  %5566 = vmatprep.mubr.msk.bf16.mxu1 %vm6333_vm0, %v8166_v10 }
0x1e3c   : > { %5576 = vmatprep.subr.bf16.mxu1 %v8166_v10 }
0x1e42   : > { %5567 = vmatmul.mubr.msk.bf16.vlgmr.msra.gmra.mxu1 %vm1061_vm1, %v3919_v58 }
0x1e43   : > { %5578 = vmatprep.mubr.msk.bf16.mxu1 %vm6333_vm0, %v8166_v10 }
0x1e7f   : > { %v3988_v5 = vpop.f32.mrf.mxu1 }
0x1e80   : > { %v3989_v60 = vadd.f32 %v6075_v63, %v3988_v5 }
0x1e81   : > { %v5550_v46 = vpop.f32.mrf.mxu1 }
0x1e82   : > { %v4132_v54 = vsel %vm1246_vm3, %v3989_v60, -inf }
0x1e83   : > { %4133 = vmax.xlane.f32.xlu0 %v4132_v54  ;;  %v3991_v2 = vpop.f32.mrf.mxu1 }
0x1e85   : > { %v5551_v23 = vpop.f32.mrf.mxu1 }
0x1ef2   : > { %v4034_v0 = vpop.f32.mrf.mxu1 }
0x1ef3   : > { %v4035_v36 = vadd.f32 %v6075_v63, %v4034_v0 }
0x1ef4   : > { %v5556_v50 = vpop.f32.mrf.mxu1 }
0x1ef5   : > { %v4135_v48 = vsel %vm1246_vm3, %v4035_v36, -inf }
0x1ef6   : > { %4136 = vmax.xlane.f32.xlu1 %v4135_v48  ;;  %v4037_v57 = vpop.f32.mrf.mxu1 }
0x1ef8   : > { %v5557_v17 = vpop.f32.mrf.mxu1 }
0x1efa   : > { %v4080_v52 = vpop.f32.mrf.mxu1 }
0x1efb   : > { %v4081_v56 = vadd.f32 %v6075_v63, %v4080_v52 }
0x1efc   : > { %v5562_v22 = vpop.f32.mrf.mxu1 }
0x1efd   : > { %v4138_v32 = vsel %vm1246_vm3, %v4081_v56, -inf }
0x1efe   : > { %4139 = vmax.xlane.f32.xlu0 %v4138_v32  ;;  %v4083_v51 = vpop.f32.mrf.mxu1 }
0x1f00   : > { %v5563_v49 = vpop.f32.mrf.mxu1 }
0x1f02   : > { %v4126_v26 = vpop.f32.mrf.mxu1 }
0x1f03   : > { %v4127_v33 = vadd.f32 %v6075_v63, %v4126_v26 }
0x1f04   : > { %v5568_v4 = vpop.f32.mrf.mxu1 }
0x1f05   : > { %v4141_v44 = vsel %vm1246_vm3, %v4127_v33, -inf }
0x1f06   : > { %4142 = vmax.xlane.f32.xlu0 %v4141_v44  ;;  %v4129_v31 = vpop.f32.mrf.mxu1 }
0x1f07   : > { %3935 = vrot.lane.b32.xlu1 %v7730_v21, %s6335_s23 }
0x1f08   : > { %v5569_v16 = vpop.f32.mrf.mxu1 }
0x1f0c   : > { %v4134_v38 = vpop.xlane.xlu0 %4133 }
0x1f0d   : > { %v4144_v58 = vsub.f32 %v3989_v60, %v4134_v38 }
0x1f0f   : > { %v4148_v5 = vmul.f32 1.442695, %v4144_v58 }
0x1f11   : > { %5922 = vpow2.f32 %v4148_v5 }
0x1f1e   : > { %v5923_v46 = vpop.eup %5922 }
0x1f1f   : > { %v4156_v54 = vsel %vm1246_vm3, %v5923_v46, 0.0 }
0x1f2b   : > { %4157 = vadd.xlane.f32.xlu1 %v4156_v54 }
0x1f7f   : > { %v4137_v2 = vpop.xlane.xlu1 %4136 }
0x1f80   : > { %v4145_v23 = vsub.f32 %v4035_v36, %v4137_v2 }
0x1f82   : > { %v4150_v63 = vmul.f32 1.442695, %v4145_v23 }
0x1f83   : > { %v3936_v0 = vpop.permute.xlu1 %3935 }
0x1f84   : > { %5924 = vpow2.f32 %v4150_v63  ;;  %v3945_v50 = vpack.c.bf16 %v3936_v0, %v3936_v0 }
0x1f86   : > { %v4230_v48 = vsel %vm1298_vm2, %v3945_v50, 0 }
0x1f87   : > { %5577 = vmatpush3.bf16.msra.mxu1 %v4230_v48  ;;  %v4140_v57 = vpop.xlane.xlu0 %4139 }
0x1f88   : > { %v4146_v17 = vsub.f32 %v4081_v56, %v4140_v57  ;;  %5588 = vmatprep.subr.bf16.mxu1 %v8166_v10 }
0x1f8a   : > { %v4152_v60 = vmul.f32 1.442695, %v4146_v17 }
0x1f8c   : > { %5926 = vpow2.f32 %v4152_v60 }
0x1f8f   : > { %v4143_v52 = vpop.xlane.xlu0 %4142 }
0x1f90   : > { %v4147_v22 = vsub.f32 %v4127_v33, %v4143_v52 }
0x1f91   : > { %v5925_v32 = vpop.eup %5924 }
0x1f92   : > { %v4154_v51 = vmul.f32 1.442695, %v4147_v22  ;;  %v4159_v49 = vsel %vm1246_vm3, %v5925_v32, 0.0 }
0x1f93   : > { %4160 = vadd.xlane.f32.xlu0 %v4159_v49  ;;  %v8304_v49 = vld [vmem:[#allocation31_spill] sm:$0xff] }
0x1f94   : > { %5928 = vpow2.f32 %v4154_v51  ;;  %v8303_v51 = vld [vmem:[#allocation30_spill] sm:$0xff] }
0x1f99   : > { %v5927_v36 = vpop.eup %5926 }
0x1f9a   : > { %v4162_v26 = vsel %vm1246_vm3, %v5927_v36, 0.0 }
0x1f9b   : > { %4163 = vadd.xlane.f32.xlu1 %v4162_v26  ;;  %v8310_v26 = vld [vmem:[#allocation37_spill] sm:$0xff] }
0x1fa1   : > { %v5929_v4 = vpop.eup %5928 }
0x1fa2   : > { %v4165_v44 = vsel %vm1246_vm3, %v5929_v4, 0.0 }
0x1fa3   : > { %4166 = vadd.xlane.f32.xlu0 %v4165_v44 }
0x1fac   : > { %3941 = vrot.lane.b32.xlu1 %v7730_v21, %s6336_s4 }
0x1fb4   : > { %v4158_v56 = vpop.xlane.xlu1 %4157 }
0x1fb5   : > { %5930 = vrcp.f32 %v4158_v56  ;;  %v6076_v56 = vld [vmem:[%s7940_s5] ss:$0 sm:$0xff] }
0x1fb9   : > { %3938 = vrot.lane.b32.xlu0 %v7730_v21, %s6334_s18 }
0x1fc2   : > { %v5931_v33 = vpop.eup %5930 }
0x1fc3   : > { %v4172_v31 = vmul.f32 %v5931_v33, %v5923_v46 }
0x1fc5   : > { %v4176_v16 = vpack.c.bf16 %v4172_v31, %v4172_v31 }
0x1fc7   : > { %5573 = vmatmul.mubr.msk.bf16.vlgmr.msra.gmra.mxu0 %vm1246_vm3, %v4176_v16 }
0x1fc8   : > { %5584 = vmatprep.mubr.msk.bf16.mxu0 %vm6333_vm0, %v8166_v10 }
0x201c   : > { %v4161_v38 = vpop.xlane.xlu0 %4160 }
0x201d   : > { %5932 = vrcp.f32 %v4161_v38 }
0x2024   : > { %v4164_v58 = vpop.xlane.xlu1 %4163 }
0x2025   : > { %5934 = vrcp.f32 %v4164_v58 }
0x2028   : > { %v3942_v5 = vpop.permute.xlu1 %3941 }
0x2029   : > { %v3947_v23 = vpack.c.bf16 %v3942_v5, %v3942_v5 }
0x202a   : > { %v5933_v54 = vpop.eup %5932 }
0x202b   : > { %v4173_v2 = vmul.f32 %v5933_v54, %v5925_v32  ;;  %v4322_v21 = vsel %vm1298_vm2, %v3947_v23, 0  ;;  %v8302_v32 = vld [vmem:[#allocation29_spill] sm:$0xff] }
0x202c   : > { %v4167_v63 = vpop.xlane.xlu0 %4166 }
0x202d   : > { %v4177_v0 = vpack.c.bf16 %v4173_v2, %v4173_v2  ;;  %5936 = vrcp.f32 %v4167_v63 }
0x202f   : > { %5579 = vmatmul.mubr.msk.bf16.vlgmr.msra.gmra.mxu1 %vm1246_vm3, %v4177_v0 }
0x2030   : > { %5589 = vmatpush3.bf16.msra.mxu1 %v4322_v21  ;;  %v3939_v46 = vpop.permute.xlu0 %3938  ;;  %5590 = vmatprep.mubr.msk.bf16.mxu1 %vm6333_vm0, %v8166_v10 }
0x2031   : > { %v3946_v50 = vpack.c.bf16 %v3939_v46, %v3939_v46  ;;  %4435 = vmatprep.subr.bf16.mxu1 %v7427_v25 }
0x2032   : > { %v5935_v48 = vpop.eup %5934 }
0x2033   : > { %v4276_v57 = vsel %vm1298_vm2, %v3946_v50, 0  ;;  %v4174_v17 = vmul.f32 %v5935_v48, %v5927_v36  ;;  %v8305_v36 = vld [vmem:[#allocation32_spill] sm:$0xff]  ;;  %v8312_v48 = vld [vmem:[#allocation38_spill] sm:$0xff] }
0x2034   : > { %5583 = vmatpush3.bf16.msra.mxu0 %v4276_v57 }
0x2035   : > { %v4178_v60 = vpack.c.bf16 %v4174_v17, %v4174_v17  ;;  %5594 = vmatprep.subr.bf16.mxu0 %v8166_v10  ;;  %v8313_v17 = vld [vmem:[#allocation39_spill] sm:$0xff] }
0x2037   : > { %5585 = vmatmul.mubr.msk.bf16.vlgmr.msra.gmra.mxu0 %vm1246_vm3, %v4178_v60 }
0x2038   : > { %5595 = vmatpush3.bf16.msra.mxu0 %v7433_v18  ;;  %5610 = vmatprep.mubr.msk.bf16.mxu0 %vm6333_vm0, %v8166_v10 }
0x2039   : > { %5596 = vmatprep.subr.bf16.mxu0 %v8166_v10 }
0x203a   : > { %v5937_v52 = vpop.eup %5936 }
0x203b   : > { %v4175_v22 = vmul.f32 %v5937_v52, %v5929_v4  ;;  %v8311_v4 = vld [vmem:[#allocation40_spill] sm:$0xff]  ;;  %v8314_v52 = vld [vmem:[#allocation41_spill] sm:$0xff] }
0x203c   : > { %5597 = vmatpush3.bf16.msra.mxu0 %v7439_v45 }
0x203d   : > { %v4179_v25 = vpack.c.bf16 %v4175_v22, %v4175_v22  ;;  %5598 = vmatprep.subr.bf16.mxu0 %v8166_v10  ;;  %v8315_v22 = vld [vmem:[#allocation42_spill] sm:$0xff] }
0x203f   : > { %5591 = vmatmul.mubr.msk.bf16.vlgmr.msra.gmra.mxu1 %vm1246_vm3, %v4179_v25  ;;  %v8316_v25 = vld [vmem:[#allocation43_spill] sm:$0xff] }
0x2040   : > { %5599 = vmatpush3.bf16.msra.mxu0 %v7444_v12  ;;  %4436 = vmatpush1.bf16.msra.mxu1 %v7447_v19 }
0x2041   : > { %5600 = vmatprep.subr.bf16.mxu0 %v8166_v10  ;;  %4437 = vmatprep.subr.bf16.mxu1 %v7451_v39 }
0x2042   : > { %4467 = vmatprep.mubr.bf16.mxu1 %v8173_v61 }
0x2044   : > { %5601 = vmatpush3.bf16.msra.mxu0 %v7455_v1  ;;  %4438 = vmatpush1.bf16.msra.mxu1 %v7458_v7 }
0x2045   : > { %5602 = vmatprep.subr.bf16.mxu0 %v8166_v10  ;;  %4439 = vmatprep.subr.bf16.mxu1 %v7462_v13 }
0x2048   : > { %5603 = vmatpush3.bf16.msra.mxu0 %v7465_v28  ;;  %4440 = vmatpush1.bf16.msra.mxu1 %v7468_v34 }
0x2049   : > { %5604 = vmatprep.subr.bf16.mxu0 %v8166_v10  ;;  %4441 = vmatprep.subr.bf16.mxu1 %v7472_v42 }
0x204c   : > { %5605 = vmatpush3.bf16.msra.mxu0 %v7475_v43  ;;  %4442 = vmatpush1.bf16.msra.mxu1 %v7478_v59 }
0x204d   : > { %5606 = vmatprep.subr.bf16.mxu0 %v8166_v10  ;;  %4443 = vmatprep.subr.bf16.mxu1 %v7482_v30 }
0x2050   : > { %5607 = vmatpush3.bf16.msra.mxu0 %v7485_v11  ;;  %4444 = vmatpush1.bf16.msra.mxu1 %v7488_v35 }
0x2051   : > { %5608 = vmatprep.subr.bf16.mxu0 %v8166_v10  ;;  %4445 = vmatprep.subr.bf16.mxu1 %v7492_v6 }
0x2054   : > { %5609 = vmatpush3.bf16.msra.mxu0 %v7495_v9  ;;  %4446 = vmatpush1.bf16.msra.mxu1 %v7498_v20 }
0x2055   : > { %4476 = vmatprep.subr.bf16.mxu0 %v7501_v55  ;;  %4447 = vmatprep.subr.bf16.mxu1 %v7504_v53 }
0x2058   : > { %4448 = vmatpush1.bf16.msra.mxu1 %v7507_v40 }
0x2059   : > { %4449 = vmatprep.subr.bf16.mxu1 %v7510_v41  ;;  %v8299_v41 = vld [vmem:[#allocation26_spill] sm:$0xff] }
0x205c   : > { %4450 = vmatpush1.bf16.msra.mxu1 %v7513_v29  ;;  %v8300_v29 = vld [vmem:[#allocation27_spill] sm:$0xff] }
0x205d   : > { %5218 = vmatprep.subr.bf16.mxu1 %v7516_v15  ;;  %v8301_v15 = vld [vmem:[#allocation28_spill] sm:$0xff] }
0x2087   : > { %v4220_v18 = vpop.f32.mrf.mxu0 }
0x2089   : > { %v5574_v10 = vpop.f32.mrf.mxu0 }
0x208a   : > { %v8318_v10 = vld [vmem:[#allocation45_spill] sm:$0xff] }
0x208b   : > { %v4223_v45 = vpop.f32.mrf.mxu0 }
0x208c   : > { %v8319_v45 = vld [vmem:[#allocation46_spill] sm:$0xff] }
0x208d   : > { %v5575_v12 = vpop.f32.mrf.mxu0 }
0x208e   : > { %v8320_v12 = vld [vmem:[#allocation47_spill] sm:$0xff] }
0x20ef   : > { %v4266_v19 = vpop.f32.mrf.mxu1 }
0x20f0   : > { %4365 = vrot.lane.b32.xlu1 %v4266_v19, %s6336_s4  ;;  %v8321_v19 = vld [vmem:[#allocation48_spill] sm:$0xff]  ;;  %s574_s4 = scalar_lea.vmem [#allocation13], %s4805_s25 }
0x20f1   : > { %v5580_v39 = vpop.f32.mrf.mxu1  ;;  %s4666_s27 = sshll.u32 %s574_s4, 4  ;;  %s4667_s27 = int_to_ptr.vmem [resolvable:$true] %s4666_s27 }
0x20f2   : > { %v8322_v39 = vld [vmem:[#allocation49_spill] sm:$0xff]  ;;  %s6237_s20 = scalar_lea.vmem %s4667_s27, 128 }
0x20f3   : > { %v4269_v1 = vpop.f32.mrf.mxu1  ;;  %p6238_p2 = scmp.ne.s32.totalorder %s4667_s27, %s6237_s20 }
0x20f4   : > { %v8323_v1 = vld [vmem:[#allocation50_spill] sm:$0xff] }
0x20f5   : > { %v5581_v7 = vpop.f32.mrf.mxu1  ;;  %p6239_p11 = pnand %p6238_p2, %p8349_p9 }
0x20f6   : > { %v8324_v7 = vld [vmem:[#allocation51_spill] sm:$0xff] }
0x20f7   : > { %v4312_v13 = vpop.f32.mrf.mxu0  ;;  %p6240_p12 = pneg %p6239_p11 }
0x20f8   : > { %4369 = vrot.lane.b32.xlu0 %v4312_v13, %s6334_s18  ;;  %v8325_v13 = vld [vmem:[#allocation52_spill] sm:$0xff] }
0x20f9   : > { %v5586_v28 = vpop.f32.mrf.mxu0 }
0x20fa   : > { %v8326_v28 = vld [vmem:[#allocation53_spill] sm:$0xff] }
0x20fb   : > { %v4315_v34 = vpop.f32.mrf.mxu0 }
0x20fc   : > { %v8327_v34 = vld [vmem:[#allocation54_spill] sm:$0xff] }
0x20fd   : > { %v5587_v42 = vpop.f32.mrf.mxu0 }
0x20fe   : > { %v8328_v42 = vld [vmem:[#allocation55_spill] sm:$0xff] }
0x20ff   : > { %v4358_v43 = vpop.f32.mrf.mxu1 }
0x2100   : > { %4373 = vrot.lane.b32.xlu1 %v4358_v43, %s6335_s23  ;;  %v8329_v43 = vld [vmem:[#allocation56_spill] sm:$0xff]  ;;  %s4947_s23 = sshll.u32 %s6434_s19, 7  ;;  %s6337_s19 = smov [#allocation13]  }
0x2101   : > { %v5592_v59 = vpop.f32.mrf.mxu1  ;;  %s4664_s2 = scalar_lea.hbm %s8347_s29, %s4947_s23  ;;  %s6241_s14 = sshll.u32 %s6337_s19, 4  ;;  %s6242_s14 = int_to_ptr.vmem [resolvable:$false] %s6241_s14 }
0x2102   : > { %v8330_v59 = vld [vmem:[#allocation57_spill] sm:$0xff]  ;;  %s6243_s25 = scalar_lea.vmem %s6242_s14, 256  ;;  %p6244_p1 = scmp.lt.s32.totalorder %s4667_s27, %s6242_s14 }
0x2103   : > { %v4361_v30 = vpop.f32.mrf.mxu1  ;;  %p6245_p4 = scmp.lt.s32.totalorder %s6243_s25, %s6237_s20 }
0x2104   : > { %v8331_v30 = vld [vmem:[#allocation58_spill] sm:$0xff] }
0x2105   : > { %v5593_v11 = vpop.f32.mrf.mxu1  ;;  %p6246_p6 = por %p6245_p4, %p6244_p1 }
0x2106   : > { %v8332_v11 = vld [vmem:[#allocation59_spill] sm:$0xff] }
0x2107   : > { %p6247_p10 = pnand %p6246_p6, %p6240_p12 }
0x2162   : > { %v4366_v35 = vpop.permute.xlu1 %4365 }
0x2163   : > { %v4376_v9 = vsel %vm1061_vm1, %v4220_v18, %v4366_v35  ;;  %v8317_v18 = vld [vmem:[#allocation44_spill] sm:$0xff] }
0x2164   : > { %v8333_v35 = vld [vmem:[#allocation60_spill] sm:$0xff] }
0x216a   : > { %v4370_v6 = vpop.permute.xlu0 %4369 }
0x216b   : > { %v4377_v20 = vsel %vm1493_vm4, %v4376_v9, %v4370_v6  ;;  %v8334_v6 = vld [vmem:[#allocation61_spill] sm:$0xff]  ;;  %v8335_v9 = vld [vmem:[#allocation62_spill] sm:$0xff] }
0x2172   : > { %v4374_v55 = vpop.permute.xlu1 %4373 }
0x2173   : > { %v4378_v53 = vsel %vm1495_vm5, %v4377_v20, %v4374_v55  ;;  %v8336_v20 = vld [vmem:[#allocation63_spill] sm:$0xff]  ;;  %v8337_v55 = vld [vmem:[#allocation64_spill] sm:$0xff] }
0x2174   : > { %v4379_v40 = vpack.c.bf16 %v4378_v53, %v4378_v53  ;;  %v8338_v53 = vld [vmem:[#allocation65_spill] sm:$0xff] }
0x2176   : > { %5611 = vmatmul.mubr.bf16.vlgmr.msra.gmra.mxu0 %v4379_v40  ;;  %v8339_v40 = vld [vmem:[#allocation66_spill] sm:$0xff] }
0x2177   : > { %4477 = vmatpush1.bf16.msra.mxu0 %v7525_v47  ;;  %4508 = vmatprep.mubr.bf16.mxu0 %v8173_v61  ;;  %v8306_v47 = vld [vmem:[#allocation33_spill] sm:$0xff]  ;;  %v8307_v61 = vld [vmem:[#allocation34_spill] sm:$0xff] }
0x2178   : > { %4478 = vmatprep.subr.bf16.mxu0 %v7529_v27  ;;  %v8308_v27 = vld [vmem:[#allocation35_spill] sm:$0xff] }
0x217b   : > { %4479 = vmatpush1.bf16.msra.mxu0 %v7532_v24  ;;  %v8309_v24 = vld [vmem:[#allocation36_spill] sm:$0xff] }
0x217c   : > { %4480 = vmatprep.subr.bf16.mxu0 %v8299_v41  ;;  %v8340_v41 = vld [vmem:[#allocation67_spill] sm:$0xff] }
0x217f   : > { %4481 = vmatpush1.bf16.msra.mxu0 %v8300_v29  ;;  %v8341_v29 = vld [vmem:[#allocation68_spill] sm:$0xff] }
0x2180   : > { %4482 = vmatprep.subr.bf16.mxu0 %v8301_v15  ;;  %v8342_v15 = vld [vmem:[#allocation69_spill] sm:$0xff] }
0x2183   : > { %4483 = vmatpush1.bf16.msra.mxu0 %v8302_v32  ;;  %v8343_v32 = vld [vmem:[#allocation70_spill] sm:$0xff] }
0x2184   : > { %4484 = vmatprep.subr.bf16.mxu0 %v8303_v51 }
0x2187   : > { %4485 = vmatpush1.bf16.msra.mxu0 %v8304_v49 }
0x2188   : > { %4486 = vmatprep.subr.bf16.mxu0 %v8305_v36  ;;  %v8344_v36 = vld [vmem:[#allocation72_spill] sm:$0xff] }
0x218b   : > { %4487 = vmatpush1.bf16.msra.mxu0 %v8306_v47 }
0x218c   : > { %4488 = vmatprep.subr.bf16.mxu0 %v8307_v61  ;;  %v8345_v61 = vld [vmem:[#allocation73_spill] sm:$0xff] }
0x218f   : > { %4489 = vmatpush1.bf16.msra.mxu0 %v8308_v27 }
0x2190   : > { %4490 = vmatprep.subr.bf16.mxu0 %v8309_v24 }
0x2193   : > { %4491 = vmatpush1.bf16.msra.mxu0 %v8310_v26 }
0x2194   : > { %5240 = vmatprep.subr.bf16.mxu0 %v8311_v4 }
0x2236   : > { %v4414_v44 = vpop.f32.mrf.mxu0 }
0x2237   : > { %v4415_v33 = vadd.f32 %v6076_v56, %v4414_v44  ;;  %v8346_v56 = vld [vmem:[#allocation74_spill] sm:$0xff] }
0x2238   : > { %v5612_v31 = vpop.f32.mrf.mxu0 }
0x2239   : > { %v4420_v16 = vadd.f32 %v4415_v33, %v7720_v37 }
0x223a   : > { %v4417_v38 = vpop.f32.mrf.mxu0 }
0x223b   : > { %4421 = vadd.xlane.f32.xlu0 %v4420_v16 }
0x223c   : > { %v5613_v58 = vpop.f32.mrf.mxu0 }
0x22c4   : > { %v4422_v5 = vpop.xlane.xlu0 %4421 }
0x22c5   : > { %v4423_v54 = vmul.f32 0.0078125, %v4422_v5 }
0x22c7   : > { %v4424_v2 = vsub.f32 %v4420_v16, %v4423_v54 }
0x22c9   : > { %v4425_v23 = vmul.f32 %v4424_v2, %v4424_v2 }
0x22cb   : > { %4426 = vadd.xlane.f32.xlu1 %v4425_v23 }
0x2354   : > { %v4427_v63 = vpop.xlane.xlu1 %4426 }
0x2355   : > { %v4428_v0 = vmul.f32 0.0078125, %v4427_v63 }
0x2357   : > { %v4429_v21 = vadd.f32 1e-12, %v4428_v0 }
0x2359   : > { %5938 = vrsqrt.f32 %v4429_v21 }
0x2366   : > { %v5939_v46 = vpop.eup %5938 }
0x2367   : > { %v4431_v50 = vmul.f32 %v5939_v46, %v4424_v2 }
0x2369   : > { %v4432_v57 = vmul.f32 %v8312_v48, %v4431_v50 }
0x236b   : > { %v7856_v60 = vadd.f32 %v8313_v17, %v4432_v57 }
0x236d   : > { %v4434_v37 = vpack.c.bf16 %v7856_v60, %v7856_v60 }
0x236f   : > { %4468 = vmatmul.mubr.bf16.vlgmr.msra.gmra.mxu1 %v4434_v37  ;;  %4509 = vmatmul.mubr.bf16.vlgmr.msra.gmra.mxu0 %v4434_v37 }
0x2370   : > { %5219 = vmatpush3.bf16.msra.mxu1 %v8314_v52  ;;  %5241 = vmatpush3.bf16.msra.mxu0 %v8315_v22 }
0x2371   : > { %5220 = vmatprep.subr.bf16.mxu1 %v8316_v25  ;;  %5242 = vmatprep.subr.bf16.mxu0 %v8317_v18 }
0x2374   : > { %5221 = vmatpush3.bf16.msra.mxu1 %v8318_v10  ;;  %5243 = vmatpush3.bf16.msra.mxu0 %v8319_v45 }
0x2375   : > { %5222 = vmatprep.subr.bf16.mxu1 %v8320_v12  ;;  %5244 = vmatprep.subr.bf16.mxu0 %v8321_v19 }
0x2378   : > { %5223 = vmatpush3.bf16.msra.mxu1 %v8322_v39  ;;  %5245 = vmatpush3.bf16.msra.mxu0 %v8323_v1 }
0x2379   : > { %5224 = vmatprep.subr.bf16.mxu1 %v8324_v7  ;;  %5246 = vmatprep.subr.bf16.mxu0 %v8325_v13 }
0x237c   : > { %5225 = vmatpush3.bf16.msra.mxu1 %v8326_v28  ;;  %5247 = vmatpush3.bf16.msra.mxu0 %v8327_v34 }
0x237d   : > { %5226 = vmatprep.subr.bf16.mxu1 %v8328_v42  ;;  %5248 = vmatprep.subr.bf16.mxu0 %v8329_v43 }
0x2380   : > { %5227 = vmatpush3.bf16.msra.mxu1 %v8330_v59  ;;  %5249 = vmatpush3.bf16.msra.mxu0 %v8331_v30 }
0x2381   : > { %5228 = vmatprep.subr.bf16.mxu1 %v8332_v11  ;;  %5250 = vmatprep.subr.bf16.mxu0 %v8333_v35 }
0x2384   : > { %5229 = vmatpush3.bf16.msra.mxu1 %v8334_v6  ;;  %5251 = vmatpush3.bf16.msra.mxu0 %v8335_v9 }
0x2385   : > { %5230 = vmatprep.subr.bf16.mxu1 %v8336_v20  ;;  %5252 = vmatprep.subr.bf16.mxu0 %v8337_v55 }
0x2388   : > { %5231 = vmatpush3.bf16.msra.mxu1 %v8338_v53  ;;  %5253 = vmatpush3.bf16.msra.mxu0 %v8339_v40 }
0x2389   : > { %5232 = vmatprep.subr.bf16.mxu1 %v8340_v41  ;;  %5254 = vmatprep.subr.bf16.mxu0 %v8341_v29 }
0x238c   : > { %5233 = vmatpush3.bf16.msra.mxu1 %v8342_v15  ;;  %5255 = vmatpush3.bf16.msra.mxu0 %v8343_v32 }
0x242f   : > { %v4469_v51 = vpop.f32.mrf.mxu1  ;;  %v4510_v49 = vpop.f32.mrf.mxu0 }
0x2430   : > { %v4470_v47 = vadd.f32 %v4469_v51, %v8344_v36  ;;  %v4511_v27 = vadd.f32 %v4510_v49, %v8345_v61 }
0x2431   : > { %v4471_v24 = vpop.f32.mrf.mxu1  ;;  %v4512_v26 = vpop.f32.mrf.mxu0 }
0x2432   : > { %v4517_v4 = vmul.f32 %v4470_v47, %v4470_v47  ;;  %v4519_v44 = vmul.f32 %v4511_v27, %v4511_v27  ;;  %v4472_v33 = vadd.f32 %v4471_v24, %v8346_v56  ;;  %v4513_v31 = vadd.f32 %v4512_v26, %v7027_v8 }
0x2433   : > { %v4473_v16 = vpop.f32.mrf.mxu1  ;;  %v4514_v38 = vpop.f32.mrf.mxu0 }
0x2434   : > { %v4521_v58 = vmul.f32 %v4517_v4, %v4470_v47  ;;  %v4523_v5 = vmul.f32 %v4519_v44, %v4511_v27  ;;  %v4518_v54 = vmul.f32 %v4472_v33, %v4472_v33  ;;  %v4520_v2 = vmul.f32 %v4513_v31, %v4513_v31 }
0x2435   : > { %v4474_v23 = vpop.f32.mrf.mxu1  ;;  %v4515_v63 = vpop.f32.mrf.mxu0 }
0x2436   : > { %v4525_v0 = vmul.f32 0.044715, %v4521_v58  ;;  %v4527_v21 = vmul.f32 0.044715, %v4523_v5  ;;  %v4522_v46 = vmul.f32 %v4518_v54, %v4472_v33  ;;  %v4524_v50 = vmul.f32 %v4520_v2, %v4513_v31 }
0x2438   : > { %v4529_v48 = vadd.f32 %v4525_v0, %v4470_v47  ;;  %v4531_v57 = vadd.f32 %v4527_v21, %v4511_v27  ;;  %v4526_v17 = vmul.f32 0.044715, %v4522_v46  ;;  %v4528_v37 = vmul.f32 0.044715, %v4524_v50 }
0x243a   : > { %v4533_v52 = vmul.f32 0.7978846, %v4529_v48  ;;  %v4535_v22 = vmul.f32 0.7978846, %v4531_v57  ;;  %v4530_v25 = vadd.f32 %v4526_v17, %v4472_v33  ;;  %v4532_v8 = vadd.f32 %v4528_v37, %v4513_v31 }
0x243c   : > { %5940 = vtanh.f32 %v4533_v52  ;;  %v4534_v18 = vmul.f32 0.7978846, %v4530_v25  ;;  %v4536_v10 = vmul.f32 0.7978846, %v4532_v8 }
0x243d   : > { %5942 = vtanh.f32 %v4535_v22 }
0x243e   : > { %5944 = vtanh.f32 %v4534_v18 }
0x243f   : > { %5946 = vtanh.f32 %v4536_v10 }
0x2449   : > { %v5941_v45 = vpop.eup %5940 }
0x244a   : > { %v5943_v12 = vpop.eup %5942  ;;  %v4541_v19 = vadd.f32 1.0, %v5941_v45 }
0x244b   : > { %v5945_v39 = vpop.eup %5944  ;;  %v4543_v1 = vadd.f32 1.0, %v5943_v12 }
0x244c   : > { %v5947_v7 = vpop.eup %5946  ;;  %v4545_v13 = vmul.f32 0.5, %v4541_v19  ;;  %v4542_v28 = vadd.f32 1.0, %v5945_v39 }
0x244d   : > { %v4544_v34 = vadd.f32 1.0, %v5947_v7  ;;  %v4547_v42 = vmul.f32 0.5, %v4543_v1 }
0x244e   : > { %v4546_v43 = vmul.f32 0.5, %v4542_v28  ;;  %v4549_v59 = vmul.f32 %v4545_v13, %v4470_v47 }
0x244f   : > { %v4548_v30 = vmul.f32 0.5, %v4544_v34  ;;  %v4551_v35 = vmul.f32 %v4547_v42, %v4511_v27 }
0x2450   : > { %v4550_v11 = vmul.f32 %v4546_v43, %v4472_v33  ;;  %v4553_v20 = vpack.c.bf16 %v4549_v59, %v4549_v59 }
0x2451   : > { %v4552_v6 = vmul.f32 %v4548_v30, %v4513_v31  ;;  %v4555_v53 = vpack.c.bf16 %v4551_v35, %v4551_v35 }
0x2452   : > { %v4554_v9 = vpack.c.bf16 %v4550_v11, %v4550_v11 }
0x2453   : > { %v4556_v55 = vpack.c.bf16 %v4552_v6, %v4552_v6 }
0x2454   : > { %4589 = vmatprep.mubr.bf16.mxu1 %v4554_v9 }
0x2455   : > { %4629 = vmatprep.mubr.bf16.mxu0 %v4556_v55  ;;  %4590 = vmatmul.mubr.bf16.vlgmr.msra.gmra.mxu1 %v4553_v20 }
0x2456   : > { %4630 = vmatmul.mubr.bf16.vlgmr.msra.gmra.mxu0 %v4555_v53 }
0x2515   : > { %v5234_v40 = vpop.f32.mrf.mxu1 }
0x2516   : > { %v5256_v41 = vpop.f32.mrf.mxu0 }
0x2517   : > { %v5235_v29 = vpop.f32.mrf.mxu1 }
0x2518   : > { %v5236_v15 = vadd.f32 %v5235_v29, %v5234_v40  ;;  %v5257_v32 = vpop.f32.mrf.mxu0 }
0x2519   : > { %v5237_v51 = vpop.f32.mrf.mxu1  ;;  %v5258_v36 = vadd.f32 %v5257_v32, %v5256_v41 }
0x251a   : > { %v4592_v49 = vadd.f32 %v7704_v14, %v5236_v15  ;;  %v5259_v47 = vpop.f32.mrf.mxu0 }
0x251b   : > { %v5238_v61 = vpop.f32.mrf.mxu1 }
0x251c   : > { %v4632_v27 = vadd.f32 %v5258_v36, %v4592_v49  ;;  %v5260_v24 = vpop.f32.mrf.mxu0 }
0x251e   : > { %v4637_v26 = vadd.f32 %v4632_v27, %v7856_v60 }
0x2520   : > { %4638 = vadd.xlane.f32.xlu0 %v4637_v26 }
0x25a9   : > { %v4639_v4 = vpop.xlane.xlu0 %4638 }
0x25aa   : > { %v4640_v44 = vmul.f32 0.0078125, %v4639_v4 }
0x25ac   : > { %v4641_v56 = vsub.f32 %v4637_v26, %v4640_v44 }
0x25ae   : > { %v4642_v33 = vmul.f32 %v4641_v56, %v4641_v56 }
0x25b0   : > { %4643 = vadd.xlane.f32.xlu0 %v4642_v33 }
0x2639   : > { %v4644_v31 = vpop.xlane.xlu0 %4643 }
0x263a   : > { %v4645_v16 = vmul.f32 0.0078125, %v4644_v31 }
0x263c   : > { %v4646_v14 = vadd.f32 1e-12, %v4645_v16 }
0x263e   : > { %5948 = vrsqrt.f32 %v4646_v14 }
0x264b   : > { %v5949_v38 = vpop.eup %5948 }
0x264c   : > { %v4648_v58 = vmul.f32 %v5949_v38, %v4641_v56 }
0x264e   : > { %v4649_v60 = vmul.f32 %v7711_v3, %v4648_v58 }
0x2650   : > { %v4650_v5 = vadd.f32 %v7717_v62, %v4649_v60 }
0x2652   : > { %4651 = vst [vmem:[%s574_s4] sm:$0xff] %v4650_v5 }
0x2653   : > { %6250 = shalt.err (!%p6247_p10)
}
0x2654   : > { %s6251_s17 = scalar_lea.hbm %s4664_s2, 128  ;;  %s6255_s15 = scalar_lea.hbm %s8348_s24, 256 }
0x2655   : > { %p6252_p3 = scmp.ne.s32.totalorder %s4664_s2, %s6251_s17  ;;  %p6256_p8 = scmp.lt.s32.totalorder %s4664_s2, %s8348_s24 }
0x2656   : > { %p6257_p13 = scmp.lt.s32.totalorder %s6255_s15, %s6251_s17 }
0x2657   : > { %p6253_p7 = pnand %p6252_p3, %p8349_p9 }
0x2658   : > { %p6258_p0 = por %p6257_p13, %p6256_p8 }
0x2659   : > { %p6254_p5 = pneg %p6253_p7 }
0x265b   : > { %p6259_p2 = pnand %p6258_p0, %p6254_p5 }
0x265d   : > { %6262 = shalt.err (!%p6259_p2)
}
0x265e   : > { %5634 = dma.vmem_to_hbm [thread:$0]  (%p8349_p9), %s4667_s27, 128, %s4664_s2, %s4653_s10  }
0x265f PF: > { %s8350_s23 = sld [smem:[#allocation20_spill]]  ;;  %p8353_p12 = scmp.ge.s32.totalorder %s6317_s16, 2 }
0x2660   : > { %s8351_s4 = sld [smem:[#allocation24_spill]] }
0x2665   : > { %s4678_s26 = sand.u32 1, %s8350_s23  }
0x2666   : > { %p8352_p11 = scmp.ne.s32.totalorder %s8351_s4, 0  ;;  %s4679_s22 = scalar_lea.sflag [#allocation4], %s4678_s26 }
0x2668   : > { %p5657_p1 = pnand %p8353_p12, %p8352_p11 }
0x266a   : > { %p5658_p4 = pneg %p5657_p1 }
0x266c   : > { %6300 = dma.done.wait (%p5658_p4), %s4679_s22, 128  }
0x266d   : > { %6302 = vsyncadd (%p5658_p4), %s4679_s22, 4294967168  ;;  %s8354_s16 = sld [smem:[#allocation22_spill]]  ;;  %s8357_s29 = smov %s6309_s30 }
0x266e   : > { %s8355_s20 = sld [smem:[#allocation21_spill]] }
0x266f   : > { %s8356_s15 = sld [smem:[#allocation23_spill]] }
0x2673   : > { %p32_p6 = scmp.ge.s32.totalorder %s8354_s16, 4  }
0x2674   : > { %s8358_s30 = smov %s8355_s20 }
0x2675   :  { %34 = sbr.rel (!%p32_p6) target bundleno = 16 (0x10), region = 150 }
0x267a   :  { %4684 = vsyncpa [#allocation3], 1 }
0x267b   :  { %4686 = vsyncpa [#allocation3 + $0x1], 1 }
0x267c   :  { %4687 = vsyncpa [#allocation6], 1 }
0x267d   :  { %4689 = vsyncpa [#allocation6 + $0x1], 1 }
0x267e   :  { %4690 = vsyncpa [#allocation9], 1 }
0x267f   :  { %4691 = vsyncpa [#allocation12], 1 }
0x2680   :  { %4692 = vsyncpa [#allocation4], 1 }
0x2681   :  { %4694 = vsyncpa [#allocation4 + $0x1], 1 }

</bundles_post_ra>
